<compile_context>
chip_gen: v5e
topology: v5e:2x2
jax: 0.10.0
libtpu: 0.0.40
codegen_flags: <defaults>
</compile_context>

<pallas_src>
import jax
import jax.numpy as jnp
from jax import lax
from jax.experimental import pallas as pl
from jax.experimental.pallas import tpu as pltpu


def _round_up(v, m):
    return ((v + m - 1) // m) * m


def _pick_batch_block(n, rows_per_image, target_rows=256, max_rows=4096):
    """Smallest divisor of n whose block reaches `target_rows` MXU rows,
    preferring blocks that stay within `max_rows` rows per grid step."""
    divisors = [b for b in range(1, n + 1) if n % b == 0]
    fitting = [b for b in divisors if b * rows_per_image <= max_rows]
    candidates = fitting if fitting else divisors[:1]        # at worst 1 image/step
    for b in candidates:
        if b * rows_per_image >= target_rows:
            return b
    return candidates[-1]


# --------------------------------------------------------------------------
# Fused kernel: down-conv (K=16*cin) + ReLU + 4-phase up-conv (K=4*ICP) + BN stats
# --------------------------------------------------------------------------
def _fused_down_up_kernel(xcol_ref, wd_ref, wu_ref, y_ref, stats_ref, stage_ref):
    blk, rows, kd = xcol_ref.shape           # rows == ho*wo
    _, hs, ws, kup = stage_ref.shape         # (blk, ho+1, wo+1, 4*ICP)
    ho, wo = hs - 1, ws - 1
    icp = kup // 4
    ocp = y_ref.shape[-1]
    m = blk * rows

    # ---- down conv: single (M, 16*cin) x (16*cin, ICP) matmul, then ReLU -------
    # Input was LeakyReLU'd once (host side, pre-duplication) and is bf16.
    h = jnp.dot(xcol_ref[...].reshape(m, kd), wd_ref[...],
                preferred_element_type=jnp.float32)
    h = jnp.maximum(h, 0.0).astype(jnp.bfloat16).reshape(blk, ho, wo, icp)

    # ---- build the 2x2 shift stack: stage[b,i,j,(a,c)*ICP+ci] = hpad[b,i+a,j+c,ci]
    # Zero only the halo borders (interior is fully rewritten by the 4 tap stores
    # below; zeroing every step keeps the "parallel" grid correct per-core).
    zrow = jnp.zeros((blk, 1, ws, kup), jnp.bfloat16)
    zcol = jnp.zeros((blk, hs, 1, kup), jnp.bfloat16)
    stage_ref[:, 0:1, :, :] = zrow
    stage_ref[:, ho:ho + 1, :, :] = zrow
    stage_ref[:, :, 0:1, :] = zcol
    stage_ref[:, :, wo:wo + 1, :] = zcol
    for a in (0, 1):
        for c in (0, 1):
            t = a * 2 + c
            stage_ref[:, 1 - a:1 - a + ho, 1 - c:1 - c + wo,
                      t * icp:(t + 1) * icp] = h

    # ---- up conv: 4 output phases, each ONE K=4*ICP matmul (+ BN partials) -----
    psum = jnp.zeros((1, ocp), jnp.float32)
    psq = jnp.zeros((1, ocp), jnp.float32)
    for qy in range(2):
        for qx in range(2):
            p = qy * 2 + qx
            lhs = stage_ref[:, qy:qy + ho, qx:qx + wo, :].reshape(m, kup)
            yp = jnp.dot(lhs, wu_ref[p], preferred_element_type=jnp.float32)
            y_ref[:, p, :, :] = yp.reshape(blk, rows, ocp)
            psum = psum + jnp.sum(yp, axis=0, keepdims=True)
            psq = psq + jnp.sum(yp * yp, axis=0, keepdims=True)

    # Per-grid-step partial statistics (reduced outside the kernel).
    stats_ref[0, 0:1, :] = psum
    stats_ref[0, 1:2, :] = psq


# --------------------------------------------------------------------------
# Module forward
# --------------------------------------------------------------------------
def unet_innermost_forward(x, params):
    N, cin, H, W = x.shape
    assert H % 2 == 0 and W % 2 == 0
    w_down = params["w_down"]            # (inner_nc, cin, 4, 4)       torch Conv2d
    w_up = params["w_up"]                # (inner_nc, outer_nc, 4, 4)  torch ConvTranspose2d
    gamma, beta = params["gamma"], params["beta"]
    inner_nc = w_down.shape[0]
    outer_nc = w_up.shape[1]
    ho, wo = H // 2, W // 2
    hh, wh = ho + 1, wo + 1
    ICP = _round_up(inner_nc, 128)       # lane-dense h channels
    OCP = _round_up(outer_nc, 128)       # lane-dense y channels
    KD = 16 * cin                        # folded down-conv contraction dim

    # ---- batch blocking so the matmul M dimension fills the MXU ----------------
    per_row_bytes = 2 * (2 * KD) + 2 * (16 * OCP) + 11 * ICP
    max_rows = max(256, (24 * 1024 * 1024) // per_row_bytes)
    B_blk = _pick_batch_block(N, ho * wo, target_rows=256, max_rows=max_rows)
    G = N // B_blk

    # ---- host-side layout glue: LeakyReLU once, phase-stack, tap fold ----------
    xn = jnp.transpose(x, (0, 2, 3, 1))                         # NHWC
    xa = jnp.where(xn >= 0, xn, 0.2 * xn)                       # LeakyReLU(0.2)
    xp = jnp.pad(xa, ((0, 0), (1, 1), (1, 1), (0, 0)))
    xs = xp.reshape(N, hh, 2, wh, 2, cin)
    xs = jnp.transpose(xs, (0, 1, 3, 2, 4, 5)).reshape(N, hh, wh, 4 * cin)
    # Fold the 4 (ry, rx) taps into the contraction dim -> (N, ho*wo, 16*cin) bf16.
    xcol = jnp.concatenate(
        [xs[:, ry:ry + ho, rx:rx + wo, :] for ry in (0, 1) for rx in (0, 1)],
        axis=-1).reshape(N, ho * wo, KD).astype(jnp.bfloat16)

    # Down-conv weight as a single (16*cin, ICP) matrix; K row = (ry,rx,py,px,ci).
    w_r = w_down.reshape(inner_nc, cin, 2, 2, 2, 2)             # [co, ci, ry, py, rx, px]
    w_r = jnp.transpose(w_r, (2, 4, 3, 5, 1, 0))                # [ry, rx, py, px, ci, co]
    wd = w_r.reshape(KD, inner_nc)
    wd = jnp.pad(wd, ((0, 0), (0, ICP - inner_nc))).astype(jnp.bfloat16)

    # Up-conv weights: 4 output phases, each (4*ICP, OCP).  Phase (qy,qx), tap
    # (a,c) uses kernel element (3-qy-2a, 3-qx-2c) of the ConvTranspose2d filter.
    wu_p = jnp.pad(w_up, ((0, ICP - inner_nc), (0, OCP - outer_nc), (0, 0), (0, 0)))
    phases = []
    for qy in range(2):
        for qx in range(2):
            taps = [wu_p[:, :, 3 - qy - 2 * a, 3 - qx - 2 * c]
                    for a in (0, 1) for c in (0, 1)]
            phases.append(jnp.concatenate(taps, axis=0))        # (4*ICP, OCP)
    wu = jnp.stack(phases, axis=0).astype(jnp.bfloat16)         # (4, 4*ICP, OCP)

    # ---- VMEM budget derived from the actual buffer footprint ------------------
    vmem_need = (2 * (B_blk * ho * wo * KD * 2                  # xcol block (x2 buf)
                      + KD * ICP * 2                            # wd
                      + 4 * 4 * ICP * OCP * 2                   # wu
                      + B_blk * 4 * ho * wo * OCP * 4           # y block
                      + 2 * OCP * 4)                            # stats block
                 + B_blk * hh * wh * 4 * ICP * 2)               # stage scratch
    vmem_limit = int(min(max(2 * vmem_need, 16 * 1024 * 1024), 96 * 1024 * 1024))

    flops = 2 * N * ho * wo * (KD * ICP + 16 * ICP * OCP)
    bytes_acc = (N * ho * wo * KD * 2 + KD * ICP * 2 + 16 * ICP * OCP * 2
                 + N * 4 * ho * wo * OCP * 4 + G * 2 * OCP * 4)

    y_ph, stats = pl.pallas_call(
        _fused_down_up_kernel,
        out_shape=(
            jax.ShapeDtypeStruct((N, 4, ho * wo, OCP), jnp.float32),
            jax.ShapeDtypeStruct((G, 2, OCP), jnp.float32),
        ),
        grid_spec=pltpu.PrefetchScalarGridSpec(
            num_scalar_prefetch=0,
            grid=(G,),
            in_specs=[
                pl.BlockSpec((B_blk, ho * wo, KD), lambda g: (g, 0, 0)),
                pl.BlockSpec((KD, ICP), lambda g: (0, 0)),
                pl.BlockSpec((4, 4 * ICP, OCP), lambda g: (0, 0, 0)),
            ],
            out_specs=(
                pl.BlockSpec((B_blk, 4, ho * wo, OCP), lambda g: (g, 0, 0, 0)),
                pl.BlockSpec((1, 2, OCP), lambda g: (g, 0, 0)),
            ),
            scratch_shapes=[pltpu.VMEM((B_blk, hh, wh, 4 * ICP), jnp.bfloat16)],
        ),
        compiler_params=pltpu.CompilerParams(
            dimension_semantics=("parallel",),        # per-step outputs -> no race
            vmem_limit_bytes=vmem_limit,
        ),
        cost_estimate=pl.CostEstimate(flops=flops, transcendentals=0,
                                      bytes_accessed=bytes_acc),
    )(xcol, wd, wu)

    # ---- fold BatchNorm (training-mode batch stats) into one FMA (XLA-fused) ---
    count = float(N * H * W)
    tot = jnp.sum(stats, axis=0)                                # (2, OCP) f32
    mean = tot[0] / count
    var = jnp.maximum(tot[1] / count - mean * mean, 0.0)
    rstd = lax.rsqrt(var + 1e-5)
    gamma_p = jnp.pad(gamma, (0, OCP - outer_nc))
    beta_p = jnp.pad(beta, (0, OCP - outer_nc))
    scale = (gamma_p * rstd).reshape(1, 1, 1, OCP)
    shift = (beta_p - mean * gamma_p * rstd).reshape(1, 1, 1, OCP)
    y_norm = y_ph * scale + shift                 # fused into the epilogue by XLA

    # ---- depth-to-space reassembly, channel un-pad, NCHW, skip concat ----------
    y6 = y_norm.reshape(N, 2, 2, ho, wo, OCP)
    y_nhwc = jnp.transpose(y6, (0, 3, 1, 4, 2, 5)).reshape(N, H, W, OCP)
    y_nchw = jnp.transpose(y_nhwc[..., :outer_nc], (0, 3, 1, 2))
    return jnp.concatenate([x, y_nchw], axis=1)


# --------------------------------------------------------------------------
# Pure-JAX reference (same bf16 mixed precision) for the correctness check
# --------------------------------------------------------------------------
def _reference_forward(x, params):
    w_down, w_up = params["w_down"], params["w_up"]
    gamma, beta = params["gamma"], params["beta"]
    xa = jnp.where(x >= 0, x, 0.2 * x).astype(jnp.bfloat16)
    h = lax.conv_general_dilated(
        xa, w_down.astype(jnp.bfloat16), (2, 2), [(1, 1), (1, 1)],
        dimension_numbers=("NCHW", "OIHW", "NCHW"),
        preferred_element_type=jnp.float32)
    h = jnp.maximum(h, 0.0).astype(jnp.bfloat16)
    w_conv = jnp.transpose(w_up.astype(jnp.bfloat16), (1, 0, 2, 3))[:, :, ::-1, ::-1]
    y = lax.conv_general_dilated(
        h, w_conv, (1, 1), [(2, 2), (2, 2)], lhs_dilation=(2, 2),
        dimension_numbers=("NCHW", "OIHW", "NCHW"),
        preferred_element_type=jnp.float32)
    mean = jnp.mean(y, axis=(0, 2, 3), keepdims=True)
    var = jnp.mean((y - mean) ** 2, axis=(0, 2, 3), keepdims=True)
    y = (y - mean) * lax.rsqrt(var + 1e-5) * gamma.reshape(1, -1, 1, 1) \
        + beta.reshape(1, -1, 1, 1)
    return jnp.concatenate([x, y], axis=1)


if __name__ == "__main__":
    key = jax.random.PRNGKey(0)
    outer_nc, inner_nc = 4, 8            # input_nc defaults to outer_nc
    N, H, W = 2, 16, 16
    k1, k2, k3 = jax.random.split(key, 3)

    x = jax.random.normal(k1, (N, outer_nc, H, W), jnp.float32)
    params = {
        "w_down": 0.1 * jax.random.normal(k2, (inner_nc, outer_nc, 4, 4), jnp.float32),
        "w_up":   0.1 * jax.random.normal(k3, (inner_nc, outer_nc, 4, 4), jnp.float32),
        "gamma":  jnp.ones((outer_nc,), jnp.float32),    # BatchNorm2d affine init
        "beta":   jnp.zeros((outer_nc,), jnp.float32),
    }

    out = jax.jit(unet_innermost_forward)(x, params)
    jax.block_until_ready(out)

    ref = _reference_forward(x, params)
    assert out.shape == (N, 2 * outer_nc, H, W), out.shape
    assert jnp.allclose(out, ref, atol=1e-3, rtol=1e-3), "mismatch vs reference"
    print("KERNEL_OK")
</pallas_src>

<mosaic_0001>
module attributes {stable_mosaic.version = 11 : i64} {
  func.func @_fused_down_up_kernel(%arg0: i32, %arg1: memref<2x64x64xbf16, #tpu.memory_space<vmem>>, %arg2: memref<64x128xbf16, #tpu.memory_space<vmem>>, %arg3: memref<4x512x128xbf16, #tpu.memory_space<vmem>>, %arg4: memref<2x4x64x128xf32, #tpu.memory_space<vmem>>, %arg5: memref<1x2x128xf32, #tpu.memory_space<vmem>>, %arg6: memref<2x9x9x512xbf16, #tpu.memory_space<vmem>>) attributes {dimension_semantics = [#tpu.dimension_semantics<parallel>], iteration_bounds = array<i64: 1>, scalar_prefetch = 0 : i64, scratch_operands = 1 : i64, tpu.core_type = #tpu.core_type<tc>, window_params = [{transform_indices = @transform_0, window_bounds = array<i64: 2, 64, 64>}, {pipeline_mode = #tpu.pipeline_mode<synchronous>, transform_indices = @transform_1, window_bounds = array<i64: 64, 128>}, {pipeline_mode = #tpu.pipeline_mode<synchronous>, transform_indices = @transform_2, window_bounds = array<i64: 4, 512, 128>}, {transform_indices = @transform_3, window_bounds = array<i64: 2, 4, 64, 128>}, {transform_indices = @transform_4, window_bounds = array<i64: 1, 2, 128>}]} {
    %c0 = arith.constant 0 : index
    %c0_0 = arith.constant 0 : index
    %c0_1 = arith.constant 0 : index
    %0 = vector.load %arg1[%c0, %c0_0, %c0_1] : memref<2x64x64xbf16, #tpu.memory_space<vmem>>, vector<2x64x64xbf16>
    %1 = vector.shape_cast %0 : vector<2x64x64xbf16> to vector<128x64xbf16>
    %c0_2 = arith.constant 0 : index
    %c0_3 = arith.constant 0 : index
    %2 = vector.load %arg2[%c0_2, %c0_3] : memref<64x128xbf16, #tpu.memory_space<vmem>>, vector<64x128xbf16>
    %cst = arith.constant dense<0.000000e+00> : vector<128x128xf32>
    %3 = tpu.matmul %1, %2, %cst {dimension_numbers = #tpu.dot_dimension_numbers<[1], [0], [0], [1], [0, 0, 1, 1], [], []>} : vector<128x64xbf16>, vector<64x128xbf16>, vector<128x128xf32> -> vector<128x128xf32>
    %cst_4 = arith.constant 0.000000e+00 : f32
    %4 = vector.broadcast %cst_4 : f32 to vector<128x128xf32>
    %5 = arith.maximumf %3, %4 : vector<128x128xf32>
    %6 = arith.truncf %5 : vector<128x128xf32> to vector<128x128xbf16>
    %7 = vector.shape_cast %6 : vector<128x128xbf16> to vector<2x8x8x128xbf16>
    %cst_5 = arith.constant 0.000000e+00 : bf16
    %8 = vector.broadcast %cst_5 : bf16 to vector<2x1x9x512xbf16>
    %cst_6 = arith.constant 0.000000e+00 : bf16
    %9 = vector.broadcast %cst_6 : bf16 to vector<2x9x1x512xbf16>
    %c0_7 = arith.constant 0 : index
    %c0_8 = arith.constant 0 : index
    %c0_9 = arith.constant 0 : index
    %c0_10 = arith.constant 0 : index
    %10 = vector.load %arg6[%c0_7, %c0_8, %c0_9, %c0_10] : memref<2x9x9x512xbf16, #tpu.memory_space<vmem>>, vector<2x1x9x512xbf16>
    tpu.vector_store %arg6[%c0_7, %c0_8, %c0_9, %c0_10], %8 {strides = array<i32>} : memref<2x9x9x512xbf16, #tpu.memory_space<vmem>>, vector<2x1x9x512xbf16>,
    %c0_11 = arith.constant 0 : index
    %c8 = arith.constant 8 : index
    %c0_12 = arith.constant 0 : index
    %c0_13 = arith.constant 0 : index
    %11 = vector.load %arg6[%c0_11, %c8, %c0_12, %c0_13] : memref<2x9x9x512xbf16, #tpu.memory_space<vmem>>, vector<2x1x9x512xbf16>
    tpu.vector_store %arg6[%c0_11, %c8, %c0_12, %c0_13], %8 {strides = array<i32>} : memref<2x9x9x512xbf16, #tpu.memory_space<vmem>>, vector<2x1x9x512xbf16>,
    %c0_14 = arith.constant 0 : index
    %c0_15 = arith.constant 0 : index
    %c0_16 = arith.constant 0 : index
    %c0_17 = arith.constant 0 : index
    %12 = vector.load %arg6[%c0_14, %c0_15, %c0_16, %c0_17] : memref<2x9x9x512xbf16, #tpu.memory_space<vmem>>, vector<2x9x1x512xbf16>
    tpu.vector_store %arg6[%c0_14, %c0_15, %c0_16, %c0_17], %9 {strides = array<i32>} : memref<2x9x9x512xbf16, #tpu.memory_space<vmem>>, vector<2x9x1x512xbf16>,
    %c0_18 = arith.constant 0 : index
    %c0_19 = arith.constant 0 : index
    %c8_20 = arith.constant 8 : index
    %c0_21 = arith.constant 0 : index
    %13 = vector.load %arg6[%c0_18, %c0_19, %c8_20, %c0_21] : memref<2x9x9x512xbf16, #tpu.memory_space<vmem>>, vector<2x9x1x512xbf16>
    tpu.vector_store %arg6[%c0_18, %c0_19, %c8_20, %c0_21], %9 {strides = array<i32>} : memref<2x9x9x512xbf16, #tpu.memory_space<vmem>>, vector<2x9x1x512xbf16>,
    %c0_22 = arith.constant 0 : index
    %c1 = arith.constant 1 : index
    %c1_23 = arith.constant 1 : index
    %c0_24 = arith.constant 0 : index
    %14 = vector.load %arg6[%c0_22, %c1, %c1_23, %c0_24] : memref<2x9x9x512xbf16, #tpu.memory_space<vmem>>, vector<2x8x8x128xbf16>
    tpu.vector_store %arg6[%c0_22, %c1, %c1_23, %c0_24], %7 {strides = array<i32>} : memref<2x9x9x512xbf16, #tpu.memory_space<vmem>>, vector<2x8x8x128xbf16>,
    %c0_25 = arith.constant 0 : index
    %c1_26 = arith.constant 1 : index
    %c0_27 = arith.constant 0 : index
    %c128 = arith.constant 128 : index
    %15 = vector.load %arg6[%c0_25, %c1_26, %c0_27, %c128] : memref<2x9x9x512xbf16, #tpu.memory_space<vmem>>, vector<2x8x8x128xbf16>
    tpu.vector_store %arg6[%c0_25, %c1_26, %c0_27, %c128], %7 {strides = array<i32>} : memref<2x9x9x512xbf16, #tpu.memory_space<vmem>>, vector<2x8x8x128xbf16>,
    %c0_28 = arith.constant 0 : index
    %c0_29 = arith.constant 0 : index
    %c1_30 = arith.constant 1 : index
    %c256 = arith.constant 256 : index
    %16 = vector.load %arg6[%c0_28, %c0_29, %c1_30, %c256] : memref<2x9x9x512xbf16, #tpu.memory_space<vmem>>, vector<2x8x8x128xbf16>
    tpu.vector_store %arg6[%c0_28, %c0_29, %c1_30, %c256], %7 {strides = array<i32>} : memref<2x9x9x512xbf16, #tpu.memory_space<vmem>>, vector<2x8x8x128xbf16>,
    %c0_31 = arith.constant 0 : index
    %c0_32 = arith.constant 0 : index
    %c0_33 = arith.constant 0 : index
    %c384 = arith.constant 384 : index
    %17 = vector.load %arg6[%c0_31, %c0_32, %c0_33, %c384] : memref<2x9x9x512xbf16, #tpu.memory_space<vmem>>, vector<2x8x8x128xbf16>
    tpu.vector_store %arg6[%c0_31, %c0_32, %c0_33, %c384], %7 {strides = array<i32>} : memref<2x9x9x512xbf16, #tpu.memory_space<vmem>>, vector<2x8x8x128xbf16>,
    %cst_34 = arith.constant 0.000000e+00 : f32
    %18 = vector.broadcast %cst_34 : f32 to vector<1x128xf32>
    %cst_35 = arith.constant 0.000000e+00 : f32
    %19 = vector.broadcast %cst_35 : f32 to vector<1x128xf32>
    %c0_36 = arith.constant 0 : index
    %c0_37 = arith.constant 0 : index
    %c0_38 = arith.constant 0 : index
    %c0_39 = arith.constant 0 : index
    %20 = vector.load %arg6[%c0_36, %c0_37, %c0_38, %c0_39] : memref<2x9x9x512xbf16, #tpu.memory_space<vmem>>, vector<2x8x8x512xbf16>
    %21 = vector.shape_cast %20 : vector<2x8x8x512xbf16> to vector<128x512xbf16>
    %c0_40 = arith.constant 0 : index
    %c0_41 = arith.constant 0 : index
    %c0_42 = arith.constant 0 : index
    %22 = vector.load %arg3[%c0_40, %c0_41, %c0_42] : memref<4x512x128xbf16, #tpu.memory_space<vmem>>, vector<1x512x128xbf16>
    %23 = vector.shape_cast %22 : vector<1x512x128xbf16> to vector<512x128xbf16>
    %cst_43 = arith.constant dense<0.000000e+00> : vector<128x128xf32>
    %24 = tpu.matmul %21, %23, %cst_43 {dimension_numbers = #tpu.dot_dimension_numbers<[1], [0], [0], [1], [0, 0, 1, 1], [], []>} : vector<128x512xbf16>, vector<512x128xbf16>, vector<128x128xf32> -> vector<128x128xf32>
    %25 = vector.shape_cast %24 : vector<128x128xf32> to vector<2x64x128xf32>
    %c0_44 = arith.constant 0 : index
    %c0_45 = arith.constant 0 : index
    %c0_46 = arith.constant 0 : index
    %c0_47 = arith.constant 0 : index
    %26 = vector.load %arg4[%c0_44, %c0_45, %c0_46, %c0_47] : memref<2x4x64x128xf32, #tpu.memory_space<vmem>>, vector<2x1x64x128xf32>
    %27 = vector.shape_cast %26 : vector<2x1x64x128xf32> to vector<2x64x128xf32>
    %28 = vector.shape_cast %25 : vector<2x64x128xf32> to vector<2x1x64x128xf32>
    tpu.vector_store %arg4[%c0_44, %c0_45, %c0_46, %c0_47], %28 {strides = array<i32>} : memref<2x4x64x128xf32, #tpu.memory_space<vmem>>, vector<2x1x64x128xf32>,
    %cst_48 = arith.constant dense<0.000000e+00> : vector<128xf32>
    %29 = vector.multi_reduction <add>, %24, %cst_48 [0] : vector<128x128xf32> to vector<128xf32>
    %30 = vector.shape_cast %29 : vector<128xf32> to vector<1x128xf32>
    %31 = arith.addf %18, %30 : vector<1x128xf32>
    %32 = arith.mulf %24, %24 : vector<128x128xf32>
    %cst_49 = arith.constant dense<0.000000e+00> : vector<128xf32>
    %33 = vector.multi_reduction <add>, %32, %cst_49 [0] : vector<128x128xf32> to vector<128xf32>
    %34 = vector.shape_cast %33 : vector<128xf32> to vector<1x128xf32>
    %35 = arith.addf %19, %34 : vector<1x128xf32>
    %c0_50 = arith.constant 0 : index
    %c0_51 = arith.constant 0 : index
    %c1_52 = arith.constant 1 : index
    %c0_53 = arith.constant 0 : index
    %36 = vector.load %arg6[%c0_50, %c0_51, %c1_52, %c0_53] : memref<2x9x9x512xbf16, #tpu.memory_space<vmem>>, vector<2x8x8x512xbf16>
    %37 = vector.shape_cast %36 : vector<2x8x8x512xbf16> to vector<128x512xbf16>
    %c1_54 = arith.constant 1 : index
    %c0_55 = arith.constant 0 : index
    %c0_56 = arith.constant 0 : index
    %38 = vector.load %arg3[%c1_54, %c0_55, %c0_56] : memref<4x512x128xbf16, #tpu.memory_space<vmem>>, vector<1x512x128xbf16>
    %39 = vector.shape_cast %38 : vector<1x512x128xbf16> to vector<512x128xbf16>
    %cst_57 = arith.constant dense<0.000000e+00> : vector<128x128xf32>
    %40 = tpu.matmul %37, %39, %cst_57 {dimension_numbers = #tpu.dot_dimension_numbers<[1], [0], [0], [1], [0, 0, 1, 1], [], []>} : vector<128x512xbf16>, vector<512x128xbf16>, vector<128x128xf32> -> vector<128x128xf32>
    %41 = vector.shape_cast %40 : vector<128x128xf32> to vector<2x64x128xf32>
    %c0_58 = arith.constant 0 : index
    %c1_59 = arith.constant 1 : index
    %c0_60 = arith.constant 0 : index
    %c0_61 = arith.constant 0 : index
    %42 = vector.load %arg4[%c0_58, %c1_59, %c0_60, %c0_61] : memref<2x4x64x128xf32, #tpu.memory_space<vmem>>, vector<2x1x64x128xf32>
    %43 = vector.shape_cast %42 : vector<2x1x64x128xf32> to vector<2x64x128xf32>
    %44 = vector.shape_cast %41 : vector<2x64x128xf32> to vector<2x1x64x128xf32>
    tpu.vector_store %arg4[%c0_58, %c1_59, %c0_60, %c0_61], %44 {strides = array<i32>} : memref<2x4x64x128xf32, #tpu.memory_space<vmem>>, vector<2x1x64x128xf32>,
    %cst_62 = arith.constant dense<0.000000e+00> : vector<128xf32>
    %45 = vector.multi_reduction <add>, %40, %cst_62 [0] : vector<128x128xf32> to vector<128xf32>
    %46 = vector.shape_cast %45 : vector<128xf32> to vector<1x128xf32>
    %47 = arith.addf %31, %46 : vector<1x128xf32>
    %48 = arith.mulf %40, %40 : vector<128x128xf32>
    %cst_63 = arith.constant dense<0.000000e+00> : vector<128xf32>
    %49 = vector.multi_reduction <add>, %48, %cst_63 [0] : vector<128x128xf32> to vector<128xf32>
    %50 = vector.shape_cast %49 : vector<128xf32> to vector<1x128xf32>
    %51 = arith.addf %35, %50 : vector<1x128xf32>
    %c0_64 = arith.constant 0 : index
    %c1_65 = arith.constant 1 : index
    %c0_66 = arith.constant 0 : index
    %c0_67 = arith.constant 0 : index
    %52 = vector.load %arg6[%c0_64, %c1_65, %c0_66, %c0_67] : memref<2x9x9x512xbf16, #tpu.memory_space<vmem>>, vector<2x8x8x512xbf16>
    %53 = vector.shape_cast %52 : vector<2x8x8x512xbf16> to vector<128x512xbf16>
    %c2 = arith.constant 2 : index
    %c0_68 = arith.constant 0 : index
    %c0_69 = arith.constant 0 : index
    %54 = vector.load %arg3[%c2, %c0_68, %c0_69] : memref<4x512x128xbf16, #tpu.memory_space<vmem>>, vector<1x512x128xbf16>
    %55 = vector.shape_cast %54 : vector<1x512x128xbf16> to vector<512x128xbf16>
    %cst_70 = arith.constant dense<0.000000e+00> : vector<128x128xf32>
    %56 = tpu.matmul %53, %55, %cst_70 {dimension_numbers = #tpu.dot_dimension_numbers<[1], [0], [0], [1], [0, 0, 1, 1], [], []>} : vector<128x512xbf16>, vector<512x128xbf16>, vector<128x128xf32> -> vector<128x128xf32>
    %57 = vector.shape_cast %56 : vector<128x128xf32> to vector<2x64x128xf32>
    %c0_71 = arith.constant 0 : index
    %c2_72 = arith.constant 2 : index
    %c0_73 = arith.constant 0 : index
    %c0_74 = arith.constant 0 : index
    %58 = vector.load %arg4[%c0_71, %c2_72, %c0_73, %c0_74] : memref<2x4x64x128xf32, #tpu.memory_space<vmem>>, vector<2x1x64x128xf32>
    %59 = vector.shape_cast %58 : vector<2x1x64x128xf32> to vector<2x64x128xf32>
    %60 = vector.shape_cast %57 : vector<2x64x128xf32> to vector<2x1x64x128xf32>
    tpu.vector_store %arg4[%c0_71, %c2_72, %c0_73, %c0_74], %60 {strides = array<i32>} : memref<2x4x64x128xf32, #tpu.memory_space<vmem>>, vector<2x1x64x128xf32>,
    %cst_75 = arith.constant dense<0.000000e+00> : vector<128xf32>
    %61 = vector.multi_reduction <add>, %56, %cst_75 [0] : vector<128x128xf32> to vector<128xf32>
    %62 = vector.shape_cast %61 : vector<128xf32> to vector<1x128xf32>
    %63 = arith.addf %47, %62 : vector<1x128xf32>
    %64 = arith.mulf %56, %56 : vector<128x128xf32>
    %cst_76 = arith.constant dense<0.000000e+00> : vector<128xf32>
    %65 = vector.multi_reduction <add>, %64, %cst_76 [0] : vector<128x128xf32> to vector<128xf32>
    %66 = vector.shape_cast %65 : vector<128xf32> to vector<1x128xf32>
    %67 = arith.addf %51, %66 : vector<1x128xf32>
    %c0_77 = arith.constant 0 : index
    %c1_78 = arith.constant 1 : index
    %c1_79 = arith.constant 1 : index
    %c0_80 = arith.constant 0 : index
    %68 = vector.load %arg6[%c0_77, %c1_78, %c1_79, %c0_80] : memref<2x9x9x512xbf16, #tpu.memory_space<vmem>>, vector<2x8x8x512xbf16>
    %69 = vector.shape_cast %68 : vector<2x8x8x512xbf16> to vector<128x512xbf16>
    %c3 = arith.constant 3 : index
    %c0_81 = arith.constant 0 : index
    %c0_82 = arith.constant 0 : index
    %70 = vector.load %arg3[%c3, %c0_81, %c0_82] : memref<4x512x128xbf16, #tpu.memory_space<vmem>>, vector<1x512x128xbf16>
    %71 = vector.shape_cast %70 : vector<1x512x128xbf16> to vector<512x128xbf16>
    %cst_83 = arith.constant dense<0.000000e+00> : vector<128x128xf32>
    %72 = tpu.matmul %69, %71, %cst_83 {dimension_numbers = #tpu.dot_dimension_numbers<[1], [0], [0], [1], [0, 0, 1, 1], [], []>} : vector<128x512xbf16>, vector<512x128xbf16>, vector<128x128xf32> -> vector<128x128xf32>
    %73 = vector.shape_cast %72 : vector<128x128xf32> to vector<2x64x128xf32>
    %c0_84 = arith.constant 0 : index
    %c3_85 = arith.constant 3 : index
    %c0_86 = arith.constant 0 : index
    %c0_87 = arith.constant 0 : index
    %74 = vector.load %arg4[%c0_84, %c3_85, %c0_86, %c0_87] : memref<2x4x64x128xf32, #tpu.memory_space<vmem>>, vector<2x1x64x128xf32>
    %75 = vector.shape_cast %74 : vector<2x1x64x128xf32> to vector<2x64x128xf32>
    %76 = vector.shape_cast %73 : vector<2x64x128xf32> to vector<2x1x64x128xf32>
    tpu.vector_store %arg4[%c0_84, %c3_85, %c0_86, %c0_87], %76 {strides = array<i32>} : memref<2x4x64x128xf32, #tpu.memory_space<vmem>>, vector<2x1x64x128xf32>,
    %cst_88 = arith.constant dense<0.000000e+00> : vector<128xf32>
    %77 = vector.multi_reduction <add>, %72, %cst_88 [0] : vector<128x128xf32> to vector<128xf32>
    %78 = vector.shape_cast %77 : vector<128xf32> to vector<1x128xf32>
    %79 = arith.addf %63, %78 : vector<1x128xf32>
    %80 = arith.mulf %72, %72 : vector<128x128xf32>
    %cst_89 = arith.constant dense<0.000000e+00> : vector<128xf32>
    %81 = vector.multi_reduction <add>, %80, %cst_89 [0] : vector<128x128xf32> to vector<128xf32>
    %82 = vector.shape_cast %81 : vector<128xf32> to vector<1x128xf32>
    %83 = arith.addf %67, %82 : vector<1x128xf32>
    %c0_90 = arith.constant 0 : index
    %c0_91 = arith.constant 0 : index
    %c0_92 = arith.constant 0 : index
    %84 = vector.load %arg5[%c0_90, %c0_91, %c0_92] : memref<1x2x128xf32, #tpu.memory_space<vmem>>, vector<1x1x128xf32>
    %85 = vector.shape_cast %84 : vector<1x1x128xf32> to vector<1x128xf32>
    %86 = vector.shape_cast %79 : vector<1x128xf32> to vector<1x1x128xf32>
    tpu.vector_store %arg5[%c0_90, %c0_91, %c0_92], %86 {strides = array<i32>} : memref<1x2x128xf32, #tpu.memory_space<vmem>>, vector<1x1x128xf32>,
    %c0_93 = arith.constant 0 : index
    %c1_94 = arith.constant 1 : index
    %c0_95 = arith.constant 0 : index
    %87 = vector.load %arg5[%c0_93, %c1_94, %c0_95] : memref<1x2x128xf32, #tpu.memory_space<vmem>>, vector<1x1x128xf32>
    %88 = vector.shape_cast %87 : vector<1x1x128xf32> to vector<1x128xf32>
    %89 = vector.shape_cast %83 : vector<1x128xf32> to vector<1x1x128xf32>
    tpu.vector_store %arg5[%c0_93, %c1_94, %c0_95], %89 {strides = array<i32>} : memref<1x2x128xf32, #tpu.memory_space<vmem>>, vector<1x1x128xf32>,
    return
  }
  func.func @transform_0(%arg0: i32) -> (i32, i32, i32) {
    %c0_i32 = arith.constant 0 : i32
    %c0_i32_0 = arith.constant 0 : i32
    %c0_i32_1 = arith.constant 0 : i32
    return %arg0, %c0_i32, %c0_i32_0 : i32, i32, i32
  }
  func.func @transform_1(%arg0: i32) -> (i32, i32) {
    %c0_i32 = arith.constant 0 : i32
    %c0_i32_0 = arith.constant 0 : i32
    %c0_i32_1 = arith.constant 0 : i32
    return %c0_i32, %c0_i32_0 : i32, i32
  }
  func.func @transform_2(%arg0: i32) -> (i32, i32, i32) {
    %c0_i32 = arith.constant 0 : i32
    %c0_i32_0 = arith.constant 0 : i32
    %c0_i32_1 = arith.constant 0 : i32
    %c0_i32_2 = arith.constant 0 : i32
    return %c0_i32, %c0_i32_0, %c0_i32_1 : i32, i32, i32
  }
  func.func @transform_3(%arg0: i32) -> (i32, i32, i32, i32) {
    %c0_i32 = arith.constant 0 : i32
    %c0_i32_0 = arith.constant 0 : i32
    %c0_i32_1 = arith.constant 0 : i32
    %c0_i32_2 = arith.constant 0 : i32
    return %arg0, %c0_i32, %c0_i32_0, %c0_i32_1 : i32, i32, i32, i32
  }
  func.func @transform_4(%arg0: i32) -> (i32, i32, i32) {
    %c0_i32 = arith.constant 0 : i32
    %c0_i32_0 = arith.constant 0 : i32
    %c0_i32_1 = arith.constant 0 : i32
    return %arg0, %c0_i32, %c0_i32_0 : i32, i32, i32
  }
}

</mosaic_0001>

<bundles_post_ra>
// kernel: unet_innermost_forward.1
= control target key start
LH: loop header
LB: loop body
LE: loop exit
PB: predicated region body
PF: predicated region fallthrough
CT: control target
= control target key end

     0   :  { %vm105_vm0 = vcmask 523264   ;;  %vm213_vm1 = vcmask 1040384   ;;  %vm214_vm2 = vsmask.f32 256  ;;  %vm216_vm3 = vcmask 1044484   ;;  %s7459_s1 = inlined_call_operand.vmem [shape: bf16[64,128], index: 1, kind: input, shape index: {}]   ;;  %s7460_s0 = inlined_call_operand.vmem [shape: bf16[2,64,64], index: 0, kind: input, shape index: {}]   ;;  %s7461_s2 = inlined_call_operand.vmem [shape: bf16[4,512,128], index: 2, kind: input, shape index: {}]   ;;  %s7462_s3 = inlined_call_operand.vmem [shape: f32[2,4,64,128], index: 3, kind: output, shape index: {0}]   ;;  %s7463_s4 = inlined_call_operand.vmem [shape: f32[1,2,128], index: 4, kind: output, shape index: {1}]  }
   0x1   :  { %v5725_v0 = vld [vmem:[%s7459_s1 + $0x18] sm:$0xff]  ;;  %v5724_v1 = vld [vmem:[%s7459_s1 + $0x10] sm:$0xff]  ;;  %v5723_v2 = vld [vmem:[%s7459_s1 + $0x8] sm:$0xff]  ;;  %vm217_vm4 = vsmask.f32 4352  ;;  %v5931_v25 = vmov 0  }
   0x2   :  { %134 = vmatpush.bf16.msra.mxu0 %v5725_v0  ;;  %5918 = vmatpush.bf16.msra.mxu1 %v5725_v0  ;;  %v5722_v3 = vld [vmem:[%s7459_s1] sm:$0xff]  ;;  %v5716_v5 = vld [vmem:[%s7460_s0 + $0x10] sm:$0xff]  ;;  %v5721_v7 = vld [vmem:[%s7460_s0 + $0x38] sm:$0xff]  ;;  %212 = vst [vmem:[#allocation2 + $0x8] sm:$0xff] %v5931_v25  ;;  %vm628_vm8 = vcmask 1043456  }
   0x3   :  { %5919 = vmatpush.bf16.msra.mxu2 %v5725_v0  ;;  %5920 = vmatpush.bf16.msra.mxu3 %v5725_v0  ;;  %v5714_v4 = vld [vmem:[%s7460_s0] sm:$0xff]  ;;  %v5773_v8 = vld [vmem:[%s7461_s2 + $0x78] sm:$0xff]  ;;  %v5772_v11 = vld [vmem:[%s7461_s2 + $0x70] sm:$0xff]  ;;  %211 = vst [vmem:[#allocation2] sm:$0xff] %v5931_v25  ;;  %vm629_vm9 = vsmask.f32 7938 }
   0x4   :  { %v5718_v6 = vld [vmem:[%s7460_s0 + $0x20] sm:$0xff]  ;;  %v5765_v9 = vld [vmem:[%s7461_s2 + $0x38] sm:$0xff]  ;;  %v5764_v12 = vld [vmem:[%s7461_s2 + $0x30] sm:$0xff]  ;;  %226 = vst [vmem:[#allocation2 + $0x120] sm:$0xff] %v5931_v25  ;;  %vm1639_vm11 = vsmask.f32 3328 }
   0x5   :  { %v5789_v10 = vld [vmem:[%s7461_s2 + $0xf8] sm:$0xff]  ;;  %v5788_v13 = vld [vmem:[%s7461_s2 + $0xf0] sm:$0xff]  ;;  %v5771_v15 = vld [vmem:[%s7461_s2 + $0x68] sm:$0xff]  ;;  %227 = vst [vmem:[#allocation2 + $0x128] sm:$0xff] %v5931_v25  ;;  %vm1640_vm12 = vsmask.f32 7440 }
   0x6   :  { %135 = vmatpush.bf16.msra.mxu0 %v5724_v1  ;;  %5921 = vmatpush.bf16.msra.mxu1 %v5724_v1  ;;  %v5781_v14 = vld [vmem:[%s7461_s2 + $0xb8] sm:$0xff]  ;;  %v5763_v16 = vld [vmem:[%s7461_s2 + $0x28] sm:$0xff]  ;;  %v5770_v17 = vld [vmem:[%s7461_s2 + $0x60] sm:$0xff]  ;;  %235 = vst [vmem:[#allocation2 + $0x100] sm:$0xff] %v5931_v25 }
   0x7   :  { %5922 = vmatpush.bf16.msra.mxu2 %v5724_v1  ;;  %5923 = vmatpush.bf16.msra.mxu3 %v5724_v1  ;;  %v5715_v18 = vld [vmem:[%s7460_s0 + $0x8] sm:$0xff]  ;;  %v5717_v19 = vld [vmem:[%s7460_s0 + $0x18] sm:$0xff]  ;;  %v5720_v21 = vld [vmem:[%s7460_s0 + $0x30] sm:$0xff]  ;;  %236 = vst [vmem:[#allocation2 + $0x108] sm:$0xff] %v5931_v25 }
   0x8   :  { %v5719_v20 = vld [vmem:[%s7460_s0 + $0x28] sm:$0xff]  ;;  %vm6031_vm5 = vmand %vm213_vm1, %vm214_vm2  ;;  %v223_v23 = vld [vmem:[#allocation2 + $0x18] sm:$0x11]  ;;  %243 = vst [vmem:[#allocation2 + $0x220] sm:$0xff] %v5931_v25 }
   0x9   :  { %vm218_vm6 = vmand %vm216_vm3, %vm217_vm4  ;;  %v254_v27 = vld [vmem:[#allocation2 + $0x8] sm:$0x11]  ;;  %v257_v28 = vld [vmem:[#allocation2 + $0x20] sm:$0x11]  ;;  %244 = vst [vmem:[#allocation2 + $0x228] sm:$0xff] %v5931_v25 }
   0xa   :  { %136 = vmatpush.bf16.msra.mxu0 %v5723_v2  ;;  %5924 = vmatpush.bf16.msra.mxu1 %v5723_v2  ;;  %vm6037_vm7 = vmor %vm218_vm6, %vm6031_vm5  ;;  %v365_v29 = vld [vmem:[#allocation2 + $0x30] sm:$0x11]  ;;  %v5769_v35 = vld [vmem:[%s7461_s2 + $0x58] sm:$0xff] }
   0xb   :  { %5925 = vmatpush.bf16.msra.mxu2 %v5723_v2  ;;  %5926 = vmatpush.bf16.msra.mxu3 %v5723_v2  ;;  %v224_v26 = vsel %vm6037_vm7, 0, %v223_v23  ;;  %v255_v30 = vsel %vm6037_vm7, 0, %v254_v27  ;;  %v258_v31 = vsel %vm6037_vm7, 0, %v257_v28  ;;  %v366_v34 = vsel %vm6037_vm7, 0, %v365_v29  ;;  %v5787_v36 = vld [vmem:[%s7461_s2 + $0xe8] sm:$0xff]  ;;  %v5762_v37 = vld [vmem:[%s7461_s2 + $0x20] sm:$0xff]  ;;  %vm6151_vm10 = vmand %vm628_vm8, %vm629_vm9 }
   0xc   :  { %225 = vst [vmem:[#allocation2 + $0x18] sm:$0x11] %v224_v26  ;;  %v5780_v38 = vld [vmem:[%s7461_s2 + $0xb0] sm:$0xff]  ;;  %v5786_v40 = vld [vmem:[%s7461_s2 + $0xe0] sm:$0xff]  ;;  %v5761_v42 = vld [vmem:[%s7461_s2 + $0x18] sm:$0xff] }
   0xd   :  { %256 = vst [vmem:[#allocation2 + $0x8] sm:$0x11] %v255_v30  ;;  %v5768_v39 = vld [vmem:[%s7461_s2 + $0x50] sm:$0xff]  ;;  %v251_v41 = vld [vmem:[#allocation2] sm:$0x11]  ;;  %v5779_v43 = vld [vmem:[%s7461_s2 + $0xa8] sm:$0xff] }
   0xe   :  { %137 = vmatpush.bf16.msra.mxu0 %v5722_v3  ;;  %5927 = vmatpush.bf16.msra.mxu1 %v5722_v3  ;;  %259 = vst [vmem:[#allocation2 + $0x20] sm:$0x11] %v258_v31  ;;  %v252_v44 = vsel %vm6037_vm7, 0, %v251_v41  ;;  %v5767_v45 = vld [vmem:[%s7461_s2 + $0x48] sm:$0xff]  ;;  %v5785_v46 = vld [vmem:[%s7461_s2 + $0xd8] sm:$0xff]  ;;  %v5760_v54 = vld [vmem:[%s7461_s2 + $0x10] sm:$0xff] }
   0xf   :  { %5928 = vmatpush.bf16.msra.mxu2 %v5722_v3  ;;  %5929 = vmatpush.bf16.msra.mxu3 %v5722_v3  ;;  %367 = vst [vmem:[#allocation2 + $0x30] sm:$0x11] %v366_v34  ;;  %v260_v47 = vld [vmem:[#allocation2 + $0x28] sm:$0x11]  ;;  %v263_v48 = vld [vmem:[#allocation2 + $0x40] sm:$0x11]  ;;  %vm6590_vm13 = vmor %vm1639_vm11, %vm1640_vm12 }
  0x10   :  { %253 = vst [vmem:[#allocation2] sm:$0x11] %v252_v44  ;;  %v261_v49 = vsel %vm6037_vm7, 0, %v260_v47  ;;  %v264_v50 = vsel %vm6037_vm7, 0, %v263_v48  ;;  %v368_v51 = vld [vmem:[#allocation2 + $0x38] sm:$0x11] }
  0x11   :  { %4698 = vmatmul.msk.bf16.vlgmr.msra.gmra.mxu0 %vm105_vm0, %v5714_v4  ;;  %4700 = vmatmul.msk.bf16.vlgmr.msra.gmra.mxu1 %vm105_vm0, %v5716_v5  ;;  %262 = vst [vmem:[#allocation2 + $0x28] sm:$0x11] %v261_v49  ;;  %v369_v52 = vsel %vm6037_vm7, 0, %v368_v51  ;;  %v371_v53 = vld [vmem:[#allocation2 + $0x50] sm:$0x11]  ;;  %v5778_v56 = vld [vmem:[%s7461_s2 + $0xa0] sm:$0xff] }
  0x12   :  { %4702 = vmatmul.msk.bf16.vlgmr.msra.gmra.mxu2 %vm105_vm0, %v5718_v6  ;;  %4705 = vmatmul.msk.bf16.vlgmr.msra.gmra.mxu3 %vm105_vm0, %v5721_v7  ;;  %265 = vst [vmem:[#allocation2 + $0x40] sm:$0x11] %v264_v50  ;;  %v372_v55 = vsel %vm6037_vm7, 0, %v371_v53  ;;  %v5766_v57 = vld [vmem:[%s7461_s2 + $0x40] sm:$0xff]  ;;  %v5784_v58 = vld [vmem:[%s7461_s2 + $0xd0] sm:$0xff]  ;;  %v5759_v59 = vld [vmem:[%s7461_s2 + $0x8] sm:$0xff] }
  0x13   :  { %1352 = vmatpush.bf16.msrb.mxu2 %v5773_v8  ;;  %1303 = vmatpush.bf16.msrb.mxu1 %v5765_v9  ;;  %v362_v32 = vld [vmem:[#allocation2 + $0x18] sm:$0x11]  ;;  %370 = vst [vmem:[#allocation2 + $0x38] sm:$0x11] %v369_v52  ;;  %v5783_v61 = vld [vmem:[%s7461_s2 + $0xc8] sm:$0xff]  ;;  %v5758_v1 = vld [vmem:[%s7461_s2] sm:$0xff] }
  0x14   :  { %1450 = vmatpush.bf16.msrb.mxu0 %v5789_v10  ;;  %1401 = vmatpush.bf16.msrb.mxu3 %v5781_v14  ;;  %v363_v33 = vsel %vm6037_vm7, 0, %v362_v32  ;;  %373 = vst [vmem:[#allocation2 + $0x50] sm:$0x11] %v372_v55  ;;  %v5777_v60 = vld [vmem:[%s7461_s2 + $0x98] sm:$0xff]  ;;  %v266_v62 = vld [vmem:[#allocation2 + $0x48] sm:$0x11] }
  0x15   :  { %364 = vst [vmem:[#allocation2 + $0x18] sm:$0x11] %v363_v33  ;;  %v267_v63 = vsel %vm6037_vm7, 0, %v266_v62  ;;  %v269_v0 = vld [vmem:[#allocation2 + $0x60] sm:$0x11] }
  0x16   :  { %268 = vst [vmem:[#allocation2 + $0x48] sm:$0x11] %v267_v63  ;;  %v278_v2 = vld [vmem:[#allocation2 + $0x88] sm:$0x11]  ;;  %v281_v3 = vld [vmem:[#allocation2 + $0xa0] sm:$0x11] }
  0x17   :  { %1353 = vmatpush.bf16.msrb.mxu2 %v5772_v11  ;;  %1304 = vmatpush.bf16.msrb.mxu1 %v5764_v12  ;;  %v374_v4 = vld [vmem:[#allocation2 + $0x58] sm:$0x11]  ;;  %v279_v5 = vsel %vm6037_vm7, 0, %v278_v2  ;;  %v282_v6 = vsel %vm6037_vm7, 0, %v281_v3  ;;  %v389_v8 = vld [vmem:[#allocation2 + $0xb0] sm:$0x11] }
  0x18   :  { %1451 = vmatpush.bf16.msrb.mxu0 %v5788_v13  ;;  %1402 = vmatpush.bf16.msrb.mxu3 %v5780_v38  ;;  %v386_v7 = vld [vmem:[#allocation2 + $0x98] sm:$0x11]  ;;  %280 = vst [vmem:[#allocation2 + $0x88] sm:$0x11] %v279_v5  ;;  %v390_v10 = vsel %vm6037_vm7, 0, %v389_v8  ;;  %v270_v12 = vsel %vm6037_vm7, 0, %v269_v0 }
  0x19   :  { %v387_v9 = vsel %vm6037_vm7, 0, %v386_v7  ;;  %v377_v11 = vld [vmem:[#allocation2 + $0x70] sm:$0x11]  ;;  %283 = vst [vmem:[#allocation2 + $0xa0] sm:$0x11] %v282_v6  ;;  %v5782_v14 = vld [vmem:[%s7461_s2 + $0xc0] sm:$0xff] }
  0x1a   :  { %v5776_v13 = vld [vmem:[%s7461_s2 + $0x90] sm:$0xff]  ;;  %388 = vst [vmem:[#allocation2 + $0x98] sm:$0x11] %v387_v9  ;;  %v392_v26 = vld [vmem:[#allocation2 + $0xb8] sm:$0x11]  ;;  %v5774_v2 = vld [vmem:[%s7461_s2 + $0x80] sm:$0xff] }
  0x1b   :  { %1354 = vmatpush.bf16.msrb.mxu2 %v5771_v15  ;;  %1305 = vmatpush.bf16.msrb.mxu1 %v5763_v16  ;;  %v375_v15 = vsel %vm6037_vm7, 0, %v374_v4  ;;  %391 = vst [vmem:[#allocation2 + $0xb0] sm:$0x11] %v390_v10  ;;  %v378_v16 = vsel %vm6037_vm7, 0, %v377_v11  ;;  %v393_v29 = vsel %vm6037_vm7, 0, %v392_v26  ;;  %v5790_v22 = vld [vmem:[%s7461_s2 + $0x100] sm:$0xff] }
  0x1c   :  { %1452 = vmatpush.bf16.msrb.mxu0 %v5787_v36  ;;  %1403 = vmatpush.bf16.msrb.mxu3 %v5779_v43  ;;  %271 = vst [vmem:[#allocation2 + $0x60] sm:$0x11] %v270_v12  ;;  %v395_v32 = vld [vmem:[#allocation2 + $0xd0] sm:$0x11]  ;;  %v631_v36 = vld [vmem:[#allocation2 + $0x20] sm:$0xf] }
  0x1d   :  { %376 = vst [vmem:[#allocation2 + $0x58] sm:$0x11] %v375_v15  ;;  %v396_v38 = vsel %vm6037_vm7, 0, %v395_v32  ;;  %v634_v44 = vld [vmem:[#allocation2 + $0x30] sm:$0x1] }
  0x1e   :  { %379 = vst [vmem:[#allocation2 + $0x70] sm:$0x11] %v378_v16  ;;  %v746_v49 = vld [vmem:[#allocation2 + $0x18] sm:$0x1]  ;;  %v5726_v52 = vld [vmem:[#allocation2 + $0x4] sm:$0xf] }
  0x1f   :  { %1355 = vmatpush.bf16.msrb.mxu2 %v5770_v17  ;;  %1306 = vmatpush.bf16.msrb.mxu1 %v5762_v37  ;;  %v5775_v17 = vld [vmem:[%s7461_s2 + $0x88] sm:$0xff]  ;;  %394 = vst [vmem:[#allocation2 + $0xb8] sm:$0x11] %v393_v29  ;;  %v637_v5 = vld [vmem:[#allocation2 + $0x40] sm:$0xf] }
  0x20   :  { %1453 = vmatpush.bf16.msrb.mxu0 %v5786_v40  ;;  %1404 = vmatpush.bf16.msrb.mxu3 %v5778_v56  ;;  %v743_v37 = vld [vmem:[#allocation2 + $0x8] sm:$0xf]  ;;  %397 = vst [vmem:[#allocation2 + $0xd0] sm:$0x11] %v396_v38  ;;  %v640_v6 = vld [vmem:[#allocation2 + $0x50] sm:$0x1] }
  0x21   :  { %4699 = vmatmul.msk.bf16.gmra.mxu0 %vm105_vm0, %v5715_v18  ;;  %4701 = vmatmul.msk.bf16.gmra.mxu1 %vm105_vm0, %v5717_v19  ;;  %v284_v18 = vld [vmem:[#allocation2 + $0xa8] sm:$0x11]  ;;  %v287_v19 = vld [vmem:[#allocation2 + $0xc0] sm:$0x11]  ;;  %v752_v11 = vld [vmem:[#allocation2 + $0x38] sm:$0x1] }
  0x22   :  { %4703 = vmatmul.msk.bf16.gmra.mxu2 %vm105_vm0, %v5719_v20  ;;  %v285_v23 = vsel %vm6037_vm7, 0, %v284_v18  ;;  %v288_v25 = vsel %vm6037_vm7, 0, %v287_v19  ;;  %v658_v63 = vld [vmem:[#allocation2 + $0xb0] sm:$0x1]  ;;  %v767_v4 = vld [vmem:[#allocation2 + $0x88] sm:$0xf] }
  0x23   :  { %1356 = vmatpush.bf16.msrb.mxu2 %v5769_v35  ;;  %1307 = vmatpush.bf16.msrb.mxu1 %v5761_v42  ;;  %286 = vst [vmem:[#allocation2 + $0xa8] sm:$0x11] %v285_v23  ;;  %v272_v35 = vld [vmem:[#allocation2 + $0x68] sm:$0x11] }
  0x24   :  { %1454 = vmatpush.bf16.msrb.mxu0 %v5785_v46  ;;  %1405 = vmatpush.bf16.msrb.mxu3 %v5777_v60  ;;  %289 = vst [vmem:[#allocation2 + $0xc0] sm:$0x11] %v288_v25  ;;  %v273_v46 = vsel %vm6037_vm7, 0, %v272_v35  ;;  %v749_v7 = vld [vmem:[#allocation2 + $0x28] sm:$0xf] }
  0x25   :  { %274 = vst [vmem:[#allocation2 + $0x68] sm:$0x11] %v273_v46  ;;  %v646_v38 = vld [vmem:[#allocation2 + $0x70] sm:$0x1] }
  0x27   :  { %1357 = vmatpush.bf16.msrb.mxu2 %v5768_v39  ;;  %1308 = vmatpush.bf16.msrb.mxu1 %v5760_v54 }
  0x28   :  { %1455 = vmatpush.bf16.msrb.mxu0 %v5784_v58  ;;  %1406 = vmatpush.bf16.msrb.mxu3 %v5776_v13  ;;  %v655_v58 = vld [vmem:[#allocation2 + $0xa0] sm:$0xf] }
  0x2b   :  { %1358 = vmatpush.bf16.msrb.mxu2 %v5767_v45  ;;  %1309 = vmatpush.bf16.msrb.mxu1 %v5759_v59 }
  0x2c   :  { %1456 = vmatpush.bf16.msrb.mxu0 %v5783_v61  ;;  %1407 = vmatpush.bf16.msrb.mxu3 %v5775_v17  ;;  %v4708_v17 = vld [vmem:[#allocation2] sm:$0xf] }
  0x2f   :  { %1359 = vmatpush.bf16.msrb.mxu2 %v5766_v57  ;;  %1310 = vmatpush.bf16.msrb.mxu1 %v5758_v1 }
  0x30   :  { %1457 = vmatpush.bf16.msrb.mxu0 %v5782_v14  ;;  %1408 = vmatpush.bf16.msrb.mxu3 %v5774_v2 }
  0x32   :  { %4704 = vmatmul.msk.bf16.gmra.mxu2 %vm105_vm0, %v5720_v21 }
  0x8e   :  { %v139_v20 = vpop.f32.mrf.mxu0  ;;  %v149_v21 = vpop.f32.mrf.mxu1 }
  0x8f   :  { %v179_v27 = vmax.f32 %v139_v20, 0.0  ;;  %v183_v28 = vmax.f32 %v149_v21, 0.0  ;;  %v770_v20 = vld [vmem:[#allocation2 + $0x98] sm:$0x1] }
  0x91   :  { %v195_v30 = vpack.c.bf16 %v179_v27, %v179_v27  ;;  %v199_v31 = vpack.c.bf16 %v183_v28, %v183_v28 }
  0x93   :  { %v468_v33 = vshrl.u32 %v195_v30, 16  ;;  %727 = vst [vmem:[#allocation2 + $0x24] sm:$0xf] %v195_v30  ;;  %v500_v34 = vshrl.u32 %v199_v31, 16  ;;  %v471_v40 = vshll.u32 %v195_v30, 16  ;;  %v503_v42 = vshll.u32 %v199_v31, 16 }
  0x94   :  { %839 = vst [vmem:[#allocation2 + $0xc] sm:$0xf] %v195_v30 }
  0x95   :  { %v470_v39 = vrot.slane %v468_v33, 7  ;;  %v6148_v41 = vrot.slane %v500_v34, 7  ;;  %731 = vst [vmem:[#allocation2 + $0xa4] sm:$0xf] %v199_v31  ;;  %v643_v33 = vld [vmem:[#allocation2 + $0x60] sm:$0xf] }
  0x96   :  { %v141_v45 = vpop.f32.mrf.mxu0  ;;  %843 = vst [vmem:[#allocation2 + $0x8c] sm:$0xf] %v199_v31  ;;  %v151_v51 = vpop.f32.mrf.mxu1  ;;  %v755_v34 = vld [vmem:[#allocation2 + $0x48] sm:$0xf] }
  0x97   :  { %v473_v47 = vor.u32 %v471_v40, %v470_v39  ;;  %v474_v48 = vrot.slane %v470_v39, 4  ;;  %v180_v50 = vmax.f32 %v141_v45, 0.0  ;;  %v184_v53 = vmax.f32 %v151_v51, 0.0  ;;  %v758_v39 = vld [vmem:[#allocation2 + $0x58] sm:$0x1] }
  0x98   :  { %v505_v57 = vor.u32 %v503_v42, %v6148_v41  ;;  %v506_v61 = vrot.slane %v6148_v41, 4  ;;  %v664_v51 = vld [vmem:[#allocation2 + $0xd0] sm:$0x1] }
  0x99   :  { %v632_v54 = vsel %vm6151_vm10, %v473_v47, %v631_v36  ;;  %v635_v55 = vsel %vm6031_vm5, %v474_v48, %v634_v44  ;;  %v744_v56 = vsel %vm6151_vm10, %v473_v47, %v743_v37  ;;  %v747_v59 = vsel %vm6031_vm5, %v474_v48, %v746_v49  ;;  %v661_v47 = vld [vmem:[#allocation2 + $0xc0] sm:$0xf] }
  0x9a   :  { %633 = vst [vmem:[#allocation2 + $0x20] sm:$0xf] %v632_v54  ;;  %v196_v60 = vpack.c.bf16 %v180_v50, %v180_v50  ;;  %v4710_v62 = vld [vmem:[#allocation2 + $0x20] sm:$0xf0]  ;;  %v6167_v1 = vpack.c.bf16 %v184_v53, %v184_v53  ;;  %v656_v8 = vsel %vm6151_vm10, %v505_v57, %v655_v58  ;;  %v659_v12 = vsel %vm6031_vm5, %v506_v61, %v658_v63  ;;  %v776_v63 = vld [vmem:[#allocation2 + $0xb8] sm:$0x1] }
  0x9b   :  { %636 = vst [vmem:[#allocation2 + $0x30] sm:$0x1] %v635_v55  ;;  %v4713_v0 = vor.u32 %v5726_v52, %v4710_v62  ;;  %v768_v15 = vsel %vm6151_vm10, %v505_v57, %v767_v4  ;;  %v771_v32 = vsel %vm6031_vm5, %v506_v61, %v770_v20  ;;  %v5727_v41 = vld [vmem:[#allocation2 + $0xc] sm:$0xf]  ;;  %v5805_v55 = vld [vmem:[%s7461_s2 + $0x178] sm:$0xff] }
  0x9c   :  { %745 = vst [vmem:[#allocation2 + $0x8] sm:$0xf] %v744_v56  ;;  %v476_v3 = vshrl.u32 %v196_v60, 16  ;;  %v479_v10 = vshll.u32 %v196_v60, 16  ;;  %v508_v14 = vshrl.u32 %v6167_v1, 16  ;;  %v511_v23 = vshll.u32 %v6167_v1, 16  ;;  %2524 = vmatpush.bf16.msra.mxu2 %v5805_v55 }
  0x9d   :  { %748 = vst [vmem:[#allocation2 + $0x18] sm:$0x1] %v747_v59  ;;  %1360 = vmatmul.bf16.vlgmr.msrb.gmra.mxu2 %v4713_v0  ;;  %v5813_v56 = vld [vmem:[%s7461_s2 + $0x1b8] sm:$0xff]  ;;  %v773_v59 = vld [vmem:[#allocation2 + $0xa8] sm:$0xf] }
  0x9e   :  { %v478_v9 = vrot.slane %v476_v3, 7  ;;  %728 = vst [vmem:[#allocation2 + $0x44] sm:$0xf] %v196_v60  ;;  %v144_v13 = vpop.f32.mrf.mxu0  ;;  %v6186_v29 = vrot.slane %v508_v14, 7  ;;  %v5797_v57 = vld [vmem:[%s7461_s2 + $0x138] sm:$0xff]  ;;  %v154_v0 = vpop.f32.mrf.mxu1  ;;  %2573 = vmatpush.bf16.msra.mxu3 %v5813_v56 }
  0x9f   :  { %840 = vst [vmem:[#allocation2 + $0x2c] sm:$0xf] %v196_v60  ;;  %v181_v16 = vmax.f32 %v144_v13, 0.0  ;;  %v5821_v61 = vld [vmem:[%s7461_s2 + $0x1f8] sm:$0xff]  ;;  %2475 = vmatpush.bf16.msra.mxu1 %v5797_v57 }
  0xa0   :  { %v481_v18 = vor.u32 %v479_v10, %v478_v9  ;;  %v482_v19 = vrot.slane %v478_v9, 4  ;;  %657 = vst [vmem:[#allocation2 + $0xa0] sm:$0xf] %v656_v8  ;;  %v513_v40 = vor.u32 %v511_v23, %v6186_v29  ;;  %v514_v50 = vrot.slane %v6186_v29, 4  ;;  %2622 = vmatpush.bf16.msra.mxu0 %v5821_v61  ;;  %v290_v29 = vld [vmem:[#allocation2 + $0xc8] sm:$0x11] }
  0xa1   :  { %660 = vst [vmem:[#allocation2 + $0xb0] sm:$0x1] %v659_v12  ;;  %v197_v21 = vpack.c.bf16 %v181_v16, %v181_v16  ;;  %v5728_v25 = vld [vmem:[#allocation2 + $0x1c] sm:$0xf0]  ;;  %v5812_v61 = vld [vmem:[%s7461_s2 + $0x1b0] sm:$0xff] }
  0xa2   :  { %v638_v26 = vsel %vm6151_vm10, %v481_v18, %v637_v5  ;;  %v641_v27 = vsel %vm6031_vm5, %v482_v19, %v640_v6  ;;  %v750_v28 = vsel %vm6151_vm10, %v481_v18, %v749_v7  ;;  %769 = vst [vmem:[#allocation2 + $0x88] sm:$0xf] %v768_v15  ;;  %v753_v30 = vsel %vm6031_vm5, %v482_v19, %v752_v11  ;;  %v275_v6 = vld [vmem:[#allocation2 + $0x80] sm:$0x11]  ;;  %v380_v7 = vld [vmem:[#allocation2 + $0x78] sm:$0x11] }
  0xa3   :  { %639 = vst [vmem:[#allocation2 + $0x40] sm:$0xf] %v638_v26  ;;  %v484_v31 = vshrl.u32 %v197_v21, 16  ;;  %v4709_v35 = vor.u32 %v5728_v25, %v4708_v17  ;;  %v487_v37 = vshll.u32 %v197_v21, 16  ;;  %v662_v62 = vsel %vm6151_vm10, %v513_v40, %v661_v47  ;;  %v4716_v2 = vld [vmem:[#allocation2 + $0x8] sm:$0xf]  ;;  %2574 = vmatpush.bf16.msra.mxu3 %v5812_v61 }
  0xa4   :  { %642 = vst [vmem:[#allocation2 + $0x50] sm:$0x1] %v641_v27  ;;  %v665_v3 = vsel %vm6031_vm5, %v514_v50, %v664_v51  ;;  %v774_v9 = vsel %vm6151_vm10, %v513_v40, %v773_v59  ;;  %v185_v11 = vmax.f32 %v154_v0, 0.0  ;;  %v777_v13 = vsel %vm6031_vm5, %v514_v50, %v776_v63  ;;  %v383_v17 = vld [vmem:[#allocation2 + $0x90] sm:$0x11] }
  0xa5   :  { %751 = vst [vmem:[#allocation2 + $0x28] sm:$0xf] %v750_v28  ;;  %v486_v36 = vrot.slane %v484_v31, 7  ;;  %1311 = vmatmul.bf16.vlgmr.msrb.gmra.mxu1 %v4709_v35  ;;  %v5730_v12 = vld [vmem:[#allocation2 + $0x44] sm:$0xf]  ;;  %v276_v16 = vsel %vm6037_vm7, 0, %v275_v6 }
  0xa6   :  { %754 = vst [vmem:[#allocation2 + $0x38] sm:$0x1] %v753_v30  ;;  %v4718_v42 = vld [vmem:[#allocation2 + $0x28] sm:$0xf0]  ;;  %v146_v44 = vpop.f32.mrf.mxu0  ;;  %v381_v23 = vsel %vm6037_vm7, 0, %v380_v7  ;;  %v6227_v26 = vpack.c.bf16 %v185_v11, %v185_v11  ;;  %v384_v28 = vsel %vm6037_vm7, 0, %v383_v17 }
  0xa7   :  { %772 = vst [vmem:[#allocation2 + $0x98] sm:$0x1] %v771_v32  ;;  %v489_v45 = vor.u32 %v487_v37, %v486_v36  ;;  %v490_v46 = vrot.slane %v486_v36, 4  ;;  %v4721_v48 = vor.u32 %v5727_v41, %v4718_v42  ;;  %v182_v49 = vmax.f32 %v146_v44, 0.0  ;;  %v761_v25 = vld [vmem:[#allocation2 + $0x68] sm:$0xf] }
  0xa8   :  { %729 = vst [vmem:[#allocation2 + $0x64] sm:$0xf] %v197_v21  ;;  %v293_v31 = vld [vmem:[#allocation2 + $0xe0] sm:$0x11]  ;;  %v398_v32 = vld [vmem:[#allocation2 + $0xd8] sm:$0x11] }
  0xa9   :  { %v644_v52 = vsel %vm6151_vm10, %v489_v45, %v643_v33  ;;  %v647_v53 = vsel %vm6031_vm5, %v490_v46, %v646_v38  ;;  %v756_v54 = vsel %vm6151_vm10, %v489_v45, %v755_v34  ;;  %841 = vst [vmem:[#allocation2 + $0x4c] sm:$0xf] %v197_v21  ;;  %v759_v58 = vsel %vm6031_vm5, %v490_v46, %v758_v39  ;;  %v401_v36 = vld [vmem:[#allocation2 + $0xf0] sm:$0x11]  ;;  %v4742_v45 = vld [vmem:[#allocation2 + $0xa0] sm:$0xf0] }
  0xaa   :  { %645 = vst [vmem:[#allocation2 + $0x60] sm:$0xf] %v644_v52  ;;  %1458 = vmatmul.bf16.vlgmr.msrb.gmra.mxu0 %v4721_v48  ;;  %v198_v60 = vpack.c.bf16 %v182_v49, %v182_v49  ;;  %v4724_v20 = vld [vmem:[#allocation2 + $0x40] sm:$0xf]  ;;  %v516_v33 = vshrl.u32 %v6227_v26, 16  ;;  %v291_v34 = vsel %vm6037_vm7, 0, %v290_v29 }
  0xab   :  { %648 = vst [vmem:[#allocation2 + $0x70] sm:$0x1] %v647_v53  ;;  %v294_v35 = vsel %vm6037_vm7, 0, %v293_v31  ;;  %v399_v38 = vsel %vm6037_vm7, 0, %v398_v32  ;;  %v519_v39 = vshll.u32 %v6227_v26, 16  ;;  %v402_v48 = vsel %vm6037_vm7, 0, %v401_v36 }
  0xac   :  { %757 = vst [vmem:[#allocation2 + $0x48] sm:$0xf] %v756_v54  ;;  %v492_v4 = vshrl.u32 %v198_v60, 16  ;;  %v5729_v5 = vld [vmem:[#allocation2 + $0x24] sm:$0xf0]  ;;  %v495_v14 = vshll.u32 %v198_v60, 16 }
  0xad   :  { %760 = vst [vmem:[#allocation2 + $0x58] sm:$0x1] %v759_v58  ;;  %v4717_v8 = vor.u32 %v5729_v5, %v4716_v2  ;;  %v6242_v40 = vrot.slane %v516_v33, 7  ;;  %v237_v42 = vld [vmem:[#allocation2 + $0x110] sm:$0x11]  ;;  %v159_v2 = vpop.f32.mrf.mxu2 }
  0xae   :  { %663 = vst [vmem:[#allocation2 + $0xc0] sm:$0xf] %v662_v62  ;;  %v494_v10 = vrot.slane %v492_v4, 7  ;;  %v238_v52 = vsel %vm6037_vm7, 0, %v237_v42  ;;  %v296_v58 = vld [vmem:[#allocation2 + $0xe8] sm:$0x11] }
  0xaf   :  { %666 = vst [vmem:[#allocation2 + $0xd0] sm:$0x1] %v665_v3  ;;  %1409 = vmatmul.bf16.vlgmr.msrb.gmra.mxu3 %v4717_v8  ;;  %v4726_v15 = vld [vmem:[#allocation2 + $0x60] sm:$0xf0]  ;;  %v522_v51 = vrot.slane %v6242_v40, 4  ;;  %v521_v54 = vor.u32 %v519_v39, %v6242_v40  ;;  %v5804_v59 = vld [vmem:[%s7461_s2 + $0x170] sm:$0xff] }
  0xb0   :  { %732 = vst [vmem:[#allocation2 + $0xc4] sm:$0xf] %v6167_v1  ;;  %v4729_v18 = vor.u32 %v5730_v12, %v4726_v15  ;;  %v497_v19 = vor.u32 %v495_v14, %v494_v10  ;;  %v498_v37 = vrot.slane %v494_v10, 4  ;;  %v5731_v62 = vld [vmem:[#allocation2 + $0x4c] sm:$0xf]  ;;  %2525 = vmatpush.bf16.msra.mxu2 %v5804_v59  ;;  %v187_v11 = vmax.f32 %v159_v2, 0.0 }
  0xb1   :  { %775 = vst [vmem:[#allocation2 + $0xa8] sm:$0xf] %v774_v9  ;;  %v5732_v21 = vld [vmem:[#allocation2 + $0x5c] sm:$0xf0]  ;;  %v404_v7 = vld [vmem:[#allocation2 + $0xf8] sm:$0x11] }
  0xb2   :  { %778 = vst [vmem:[#allocation2 + $0xb8] sm:$0x1] %v777_v13  ;;  %1365 = vmatmul.bf16.gmra.mxu2 %v4729_v18  ;;  %v4725_v27 = vor.u32 %v5732_v21, %v4724_v20  ;;  %v762_v30 = vsel %vm6151_vm10, %v497_v19, %v761_v25  ;;  %v299_v0 = vld [vmem:[#allocation2 + $0x100] sm:$0x11]  ;;  %v405_v18 = vsel %vm6037_vm7, 0, %v404_v7  ;;  %v5820_v31 = vld [vmem:[%s7461_s2 + $0x1f0] sm:$0xff] }
  0xb3   :  { %844 = vst [vmem:[#allocation2 + $0xac] sm:$0xf] %v6167_v1  ;;  %v156_v1 = vpop.f32.mrf.mxu1  ;;  %v4732_v56 = vld [vmem:[#allocation2 + $0x48] sm:$0xf]  ;;  %v5736_v14 = vld [vmem:[#allocation2 + $0x9c] sm:$0xf0]  ;;  %2623 = vmatpush.bf16.msra.mxu0 %v5820_v31 }
  0xb4   :  { %277 = vst [vmem:[#allocation2 + $0x80] sm:$0x11] %v276_v16  ;;  %v186_v41 = vmax.f32 %v156_v1, 0.0  ;;  %v297_v16 = vsel %vm6037_vm7, 0, %v296_v58  ;;  %v300_v17 = vsel %vm6037_vm7, 0, %v299_v0  ;;  %v5803_v2 = vld [vmem:[%s7461_s2 + $0x168] sm:$0xff] }
  0xb5   :  { %382 = vst [vmem:[#allocation2 + $0x78] sm:$0x11] %v381_v23  ;;  %1316 = vmatmul.bf16.gmra.mxu1 %v4725_v27  ;;  %v6282_v23 = vpack.c.bf16 %v187_v11, %v187_v11  ;;  %v231_v25 = vld [vmem:[#allocation2 + $0x138] sm:$0x11]  ;;  %v5735_v42 = vld [vmem:[#allocation2 + $0x8c] sm:$0xf]  ;;  %2526 = vmatpush.bf16.msra.mxu2 %v5803_v2 }
  0xb6   :  { %385 = vst [vmem:[#allocation2 + $0x90] sm:$0x11] %v384_v28  ;;  %v6256_v55 = vpack.c.bf16 %v186_v41, %v186_v41  ;;  %v308_v28 = vld [vmem:[#allocation2 + $0x128] sm:$0x11]  ;;  %v232_v33 = vsel %vm6037_vm7, 0, %v231_v25 }
  0xb7   :  { %730 = vst [vmem:[#allocation2 + $0x84] sm:$0xf] %v198_v60  ;;  %v532_v1 = vshrl.u32 %v6282_v23, 16  ;;  %v5738_v40 = vld [vmem:[#allocation2 + $0xc4] sm:$0xf] }
  0xb8   :  { %763 = vst [vmem:[#allocation2 + $0x68] sm:$0xf] %v762_v30  ;;  %v524_v10 = vshrl.u32 %v6256_v55, 16  ;;  %v527_v21 = vshll.u32 %v6256_v55, 16  ;;  %v5796_v30 = vld [vmem:[%s7461_s2 + $0x130] sm:$0xff] }
  0xb9   :  { %842 = vst [vmem:[#allocation2 + $0x6c] sm:$0xf] %v198_v60  ;;  %2476 = vmatpush.bf16.msra.mxu1 %v5796_v30  ;;  %v419_v41 = vld [vmem:[#allocation2 + $0x150] sm:$0x11]  ;;  %v4756_v0 = vld [vmem:[#allocation2 + $0xc0] sm:$0xf] }
  0xba   :  { %292 = vst [vmem:[#allocation2 + $0xc8] sm:$0x11] %v291_v34  ;;  %v6279_v20 = vrot.slane %v524_v10, 7  ;;  %v309_v34 = vsel %vm6037_vm7, 0, %v308_v28  ;;  %v420_v59 = vsel %vm6037_vm7, 0, %v419_v41 }
  0xbb   :  { %v649_v44 = vld [vmem:[#allocation2 + $0x80] sm:$0xf]  ;;  %295 = vst [vmem:[#allocation2 + $0xe0] sm:$0x11] %v294_v35  ;;  %v161_v35 = vpop.f32.mrf.mxu2  ;;  %v326_v2 = vld [vmem:[#allocation2 + $0x188] sm:$0x11] }
  0xbc   :  { %v650_v46 = vsel %vm6151_vm10, %v497_v19, %v649_v44  ;;  %v764_v47 = vld [vmem:[#allocation2 + $0x78] sm:$0x1]  ;;  %400 = vst [vmem:[#allocation2 + $0xd8] sm:$0x11] %v399_v38  ;;  %v530_v32 = vrot.slane %v6279_v20, 4  ;;  %v529_v36 = vor.u32 %v527_v21, %v6279_v20  ;;  %v535_v38 = vshll.u32 %v6282_v23, 16 }
  0xbd   :  { %651 = vst [vmem:[#allocation2 + $0x80] sm:$0xf] %v650_v46  ;;  %v652_v49 = vld [vmem:[#allocation2 + $0x90] sm:$0x1]  ;;  %v765_v50 = vsel %vm6031_vm5, %v498_v37, %v764_v47  ;;  %v188_v39 = vmax.f32 %v161_v35, 0.0  ;;  %v5795_v35 = vld [vmem:[%s7461_s2 + $0x128] sm:$0xff] }
  0xbe   :  { %v653_v53 = vsel %vm6031_vm5, %v498_v37, %v652_v49  ;;  %766 = vst [vmem:[#allocation2 + $0x78] sm:$0x1] %v765_v50  ;;  %v5734_v57 = vld [vmem:[#allocation2 + $0x84] sm:$0xf]  ;;  %v4750_v44 = vld [vmem:[#allocation2 + $0xa8] sm:$0xf0]  ;;  %2477 = vmatpush.bf16.msra.mxu1 %v5795_v35 }
  0xbf   :  { %654 = vst [vmem:[#allocation2 + $0x90] sm:$0x1] %v653_v53  ;;  %v5733_v60 = vld [vmem:[#allocation2 + $0x64] sm:$0xf0]  ;;  %v4745_v4 = vor.u32 %v5734_v57, %v4742_v45  ;;  %v311_v37 = vld [vmem:[#allocation2 + $0x140] sm:$0x11]  ;;  %v4753_v61 = vor.u32 %v5735_v42, %v4750_v44 }
  0xc0   :  { %403 = vst [vmem:[#allocation2 + $0xf0] sm:$0x11] %v402_v48  ;;  %v4734_v63 = vld [vmem:[#allocation2 + $0x68] sm:$0xf0]  ;;  %v4733_v3 = vor.u32 %v5733_v60, %v4732_v56  ;;  %v4748_v45 = vld [vmem:[#allocation2 + $0x88] sm:$0xf]  ;;  %v6314_v60 = vpack.c.bf16 %v188_v39, %v188_v39 }
  0xc1   :  { %733 = vst [vmem:[#allocation2 + $0xe4] sm:$0xf] %v6227_v26  ;;  %v779_v5 = vld [vmem:[#allocation2 + $0xc8] sm:$0xf]  ;;  %v4737_v6 = vor.u32 %v5731_v62, %v4734_v63  ;;  %v425_v21 = vld [vmem:[#allocation2 + $0x170] sm:$0x11] }
  0xc2   :  { %v667_v8 = vld [vmem:[#allocation2 + $0xe0] sm:$0xf]  ;;  %v780_v9 = vsel %vm6151_vm10, %v521_v54, %v779_v5  ;;  %845 = vst [vmem:[#allocation2 + $0xcc] sm:$0xf] %v6227_v26  ;;  %1414 = vmatmul.bf16.gmra.mxu3 %v4733_v3  ;;  %1370 = vmatmul.bf16.gmra.mxu2 %v4745_v4  ;;  %v5737_v46 = vld [vmem:[#allocation2 + $0xa4] sm:$0xf0] }
  0xc3   :  { %v668_v12 = vsel %vm6151_vm10, %v521_v54, %v667_v8  ;;  %781 = vst [vmem:[#allocation2 + $0xc8] sm:$0xf] %v780_v9  ;;  %v782_v13 = vld [vmem:[#allocation2 + $0xd8] sm:$0x1]  ;;  %1463 = vmatmul.bf16.gmra.mxu0 %v4737_v6  ;;  %v312_v54 = vsel %vm6037_vm7, 0, %v311_v37  ;;  %v4749_v56 = vor.u32 %v5737_v46, %v4748_v45  ;;  %v5811_v3 = vld [vmem:[%s7461_s2 + $0x1a8] sm:$0xff]  ;;  %v164_v7 = vpop.f32.mrf.mxu2 }
  0xc4   :  { %669 = vst [vmem:[#allocation2 + $0xe0] sm:$0xf] %v668_v12  ;;  %v783_v15 = vsel %vm6031_vm5, %v522_v51, %v782_v13  ;;  %v4740_v19 = vld [vmem:[#allocation2 + $0x80] sm:$0xf]  ;;  %v314_v6 = vld [vmem:[#allocation2 + $0x148] sm:$0x11]  ;;  %2575 = vmatpush.bf16.msra.mxu3 %v5811_v3 }
  0xc5   :  { %784 = vst [vmem:[#allocation2 + $0xd8] sm:$0x1] %v783_v15  ;;  %v4741_v26 = vor.u32 %v5736_v14, %v4740_v19  ;;  %v540_v10 = vshrl.u32 %v6314_v60, 16  ;;  %v317_v13 = vld [vmem:[#allocation2 + $0x160] sm:$0x11]  ;;  %v543_v28 = vshll.u32 %v6314_v60, 16 }
  0xc6   :  { %239 = vst [vmem:[#allocation2 + $0x110] sm:$0x11] %v238_v52  ;;  %v422_v19 = vld [vmem:[#allocation2 + $0x158] sm:$0x11]  ;;  %v318_v20 = vsel %vm6037_vm7, 0, %v317_v13  ;;  %v426_v31 = vsel %vm6037_vm7, 0, %v425_v21 }
  0xc7   :  { %v670_v27 = vld [vmem:[#allocation2 + $0xf0] sm:$0x1]  ;;  %298 = vst [vmem:[#allocation2 + $0xe8] sm:$0x11] %v297_v16  ;;  %1321 = vmatmul.bf16.gmra.mxu1 %v4741_v26  ;;  %v423_v30 = vsel %vm6037_vm7, 0, %v422_v19  ;;  %v5794_v19 = vld [vmem:[%s7461_s2 + $0x120] sm:$0xff] }
  0xc8   :  { %v671_v29 = vsel %vm6031_vm5, %v522_v51, %v670_v27  ;;  %301 = vst [vmem:[#allocation2 + $0x100] sm:$0x11] %v300_v17  ;;  %v4758_v48 = vld [vmem:[#allocation2 + $0xe0] sm:$0xf0]  ;;  %v6304_v51 = vrot.slane %v532_v1, 7  ;;  %v315_v17 = vsel %vm6037_vm7, 0, %v314_v6  ;;  %2478 = vmatpush.bf16.msra.mxu1 %v5794_v19 }
  0xc9   :  { %672 = vst [vmem:[#allocation2 + $0xf0] sm:$0x1] %v671_v29  ;;  %v4761_v57 = vor.u32 %v5738_v40, %v4758_v48  ;;  %v542_v27 = vrot.slane %v540_v10, 7  ;;  %v323_v41 = vld [vmem:[#allocation2 + $0x180] sm:$0x11] }
  0xca   :  { %406 = vst [vmem:[#allocation2 + $0xf8] sm:$0x11] %v405_v18  ;;  %v537_v63 = vor.u32 %v535_v38, %v6304_v51  ;;  %v538_v16 = vrot.slane %v6304_v51, 4  ;;  %v189_v18 = vmax.f32 %v164_v7, 0.0  ;;  %v4764_v40 = vld [vmem:[#allocation2 + $0xc8] sm:$0xf] }
  0xcb   :  { %734 = vst [vmem:[#allocation2 + $0x104] sm:$0xf] %v6256_v55  ;;  %v5740_v4 = vld [vmem:[#allocation2 + $0xdc] sm:$0xf0]  ;;  %v545_v38 = vor.u32 %v543_v28, %v542_v27  ;;  %v166_v42 = vpop.f32.mrf.mxu2  ;;  %v546_v51 = vrot.slane %v542_v27, 4 }
  0xcc   :  { %846 = vst [vmem:[#allocation2 + $0xec] sm:$0xf] %v6256_v55  ;;  %v4757_v14 = vor.u32 %v5740_v4, %v4756_v0  ;;  %v190_v48 = vmax.f32 %v166_v42, 0.0  ;;  %v5802_v4 = vld [vmem:[%s7461_s2 + $0x160] sm:$0xff] }
  0xcd   :  { %v407_v47 = vld [vmem:[#allocation2 + $0x110] sm:$0x11]  ;;  %233 = vst [vmem:[#allocation2 + $0x138] sm:$0x11] %v232_v33  ;;  %v320_v33 = vld [vmem:[#allocation2 + $0x168] sm:$0x11]  ;;  %2527 = vmatpush.bf16.msra.mxu2 %v5802_v4 }
  0xce   :  { %v408_v49 = vsel %vm6037_vm7, 0, %v407_v47  ;;  %v785_v50 = vld [vmem:[#allocation2 + $0xe8] sm:$0xf]  ;;  %310 = vst [vmem:[#allocation2 + $0x128] sm:$0x11] %v309_v34  ;;  %v321_v47 = vsel %vm6037_vm7, 0, %v320_v33 }
  0xcf   :  { %409 = vst [vmem:[#allocation2 + $0x110] sm:$0x11] %v408_v49  ;;  %v673_v52 = vld [vmem:[#allocation2 + $0x100] sm:$0xf]  ;;  %v786_v53 = vsel %vm6151_vm10, %v529_v36, %v785_v50  ;;  %v5739_v34 = vld [vmem:[#allocation2 + $0xcc] sm:$0xf] }
  0xd0   :  { %v674_v55 = vsel %vm6151_vm10, %v529_v36, %v673_v52  ;;  %787 = vst [vmem:[#allocation2 + $0xe8] sm:$0xf] %v786_v53  ;;  %v5819_v36 = vld [vmem:[%s7461_s2 + $0x1e8] sm:$0xff]  ;;  %v324_v53 = vsel %vm6037_vm7, 0, %v323_v41  ;;  %v5818_v21 = vld [vmem:[%s7461_s2 + $0x1e0] sm:$0xff] }
  0xd1   :  { %675 = vst [vmem:[#allocation2 + $0x100] sm:$0xf] %v674_v55  ;;  %v788_v58 = vld [vmem:[#allocation2 + $0xf8] sm:$0x1]  ;;  %2624 = vmatpush.bf16.msra.mxu0 %v5819_v36 }
  0xd2   :  { %v789_v62 = vsel %vm6031_vm5, %v530_v32, %v788_v58  ;;  %313 = vst [vmem:[#allocation2 + $0x140] sm:$0x11] %v312_v54  ;;  %1419 = vmatmul.bf16.gmra.mxu3 %v4749_v56  ;;  %1375 = vmatmul.bf16.gmra.mxu2 %v4761_v57  ;;  %v428_v54 = vld [vmem:[#allocation2 + $0x178] sm:$0x11]  ;;  %v431_v56 = vld [vmem:[#allocation2 + $0x190] sm:$0x11] }
  0xd3   :  { %790 = vst [vmem:[#allocation2 + $0xf8] sm:$0x1] %v789_v62  ;;  %1468 = vmatmul.bf16.gmra.mxu0 %v4753_v61  ;;  %v4766_v39 = vld [vmem:[#allocation2 + $0xe8] sm:$0xf0]  ;;  %v6376_v62 = vpack.c.bf16 %v190_v48, %v190_v48  ;;  %v432_v0 = vsel %vm6037_vm7, 0, %v431_v56  ;;  %v169_v10 = vpop.f32.mrf.mxu2 }
  0xd4   :  { %v416_v5 = vld [vmem:[#allocation2 + $0x138] sm:$0x11]  ;;  %421 = vst [vmem:[#allocation2 + $0x150] sm:$0x11] %v420_v59  ;;  %v4769_v49 = vor.u32 %v5739_v34, %v4766_v39 }
  0xd5   :  { %v417_v8 = vsel %vm6037_vm7, 0, %v416_v5  ;;  %735 = vst [vmem:[#allocation2 + $0x144] sm:$0xf] %v6282_v23  ;;  %v791_v9 = vld [vmem:[#allocation2 + $0x128] sm:$0xf]  ;;  %v5810_v5 = vld [vmem:[%s7461_s2 + $0x1a0] sm:$0xff]  ;;  %2625 = vmatpush.bf16.msra.mxu0 %v5818_v21 }
  0xd6   :  { %v676_v11 = vld [vmem:[#allocation2 + $0x110] sm:$0x1]  ;;  %418 = vst [vmem:[#allocation2 + $0x138] sm:$0x11] %v417_v8  ;;  %v792_v12 = vsel %vm6151_vm10, %v537_v63, %v791_v9  ;;  %v329_v8 = vld [vmem:[#allocation2 + $0x1a0] sm:$0x11]  ;;  %2576 = vmatpush.bf16.msra.mxu3 %v5810_v5 }
  0xd7   :  { %v677_v15 = vsel %vm6031_vm5, %v530_v32, %v676_v11  ;;  %793 = vst [vmem:[#allocation2 + $0x128] sm:$0xf] %v792_v12  ;;  %1326 = vmatmul.bf16.gmra.mxu1 %v4757_v14  ;;  %v6352_v32 = vpack.c.bf16 %v189_v18, %v189_v18  ;;  %v5741_v45 = vld [vmem:[#allocation2 + $0xe4] sm:$0xf0]  ;;  %v556_v9 = vshrl.u32 %v6376_v62, 16  ;;  %v327_v12 = vsel %vm6037_vm7, 0, %v326_v2 }
  0xd8   :  { %678 = vst [vmem:[#allocation2 + $0x110] sm:$0x1] %v677_v15  ;;  %v4765_v50 = vor.u32 %v5741_v45, %v4764_v40  ;;  %v434_v14 = vld [vmem:[#allocation2 + $0x198] sm:$0x11]  ;;  %v191_v18 = vmax.f32 %v169_v10, 0.0 }
  0xd9   :  { %v679_v25 = vld [vmem:[#allocation2 + $0x140] sm:$0xf]  ;;  %847 = vst [vmem:[#allocation2 + $0x12c] sm:$0xf] %v6282_v23  ;;  %v548_v44 = vshrl.u32 %v6352_v32, 16  ;;  %v551_v59 = vshll.u32 %v6352_v32, 16 }
  0xda   :  { %v680_v26 = vsel %vm6151_vm10, %v537_v63, %v679_v25  ;;  %316 = vst [vmem:[#allocation2 + $0x148] sm:$0x11] %v315_v17  ;;  %v437_v17 = vld [vmem:[#allocation2 + $0x1b0] sm:$0x11]  ;;  %v5801_v5 = vld [vmem:[%s7461_s2 + $0x158] sm:$0xff] }
  0xdb   :  { %681 = vst [vmem:[#allocation2 + $0x140] sm:$0xf] %v680_v26  ;;  %v682_v29 = vld [vmem:[#allocation2 + $0x150] sm:$0x1]  ;;  %v550_v58 = vrot.slane %v548_v44, 7  ;;  %v559_v26 = vshll.u32 %v6376_v62, 16  ;;  %v171_v44 = vpop.f32.mrf.mxu2  ;;  %2528 = vmatpush.bf16.msra.mxu2 %v5801_v5 }
  0xdc   :  { %v683_v23 = vsel %vm6031_vm5, %v538_v16, %v682_v29  ;;  %319 = vst [vmem:[#allocation2 + $0x160] sm:$0x11] %v318_v20  ;;  %v558_v20 = vrot.slane %v556_v9, 7  ;;  %v438_v34 = vsel %vm6037_vm7, 0, %v437_v17  ;;  %v341_v9 = vld [vmem:[#allocation2 + $0x1e0] sm:$0x11] }
  0xdd   :  { %684 = vst [vmem:[#allocation2 + $0x150] sm:$0x1] %v683_v23  ;;  %v794_v1 = vld [vmem:[#allocation2 + $0x138] sm:$0x1]  ;;  %v553_v7 = vor.u32 %v551_v59, %v550_v58  ;;  %v554_v11 = vrot.slane %v550_v58, 4  ;;  %v5807_v5 = vld [vmem:[%s7461_s2 + $0x188] sm:$0xff] }
  0xde   :  { %v795_v37 = vsel %vm6031_vm5, %v538_v16, %v794_v1  ;;  %424 = vst [vmem:[#allocation2 + $0x158] sm:$0x11] %v423_v30  ;;  %v330_v16 = vsel %vm6037_vm7, 0, %v329_v8  ;;  %v561_v36 = vor.u32 %v559_v26, %v558_v20  ;;  %v562_v40 = vrot.slane %v558_v20, 4  ;;  %v338_v8 = vld [vmem:[#allocation2 + $0x1c8] sm:$0x11] }
  0xdf   :  { %796 = vst [vmem:[#allocation2 + $0x138] sm:$0x1] %v795_v37  ;;  %v332_v37 = vld [vmem:[#allocation2 + $0x1a8] sm:$0x11]  ;;  %v339_v19 = vsel %vm6037_vm7, 0, %v338_v8  ;;  %v342_v20 = vsel %vm6037_vm7, 0, %v341_v9 }
  0xe0   :  { %427 = vst [vmem:[#allocation2 + $0x170] sm:$0x11] %v426_v31  ;;  %v5743_v28 = vld [vmem:[#allocation2 + $0x12c] sm:$0xf]  ;;  %v435_v31 = vsel %vm6037_vm7, 0, %v434_v14  ;;  %v333_v42 = vsel %vm6037_vm7, 0, %v332_v37 }
  0xe1   :  { %736 = vst [vmem:[#allocation2 + $0x164] sm:$0xf] %v6314_v60  ;;  %v797_v46 = vld [vmem:[#allocation2 + $0x148] sm:$0xf]  ;;  %v446_v26 = vld [vmem:[#allocation2 + $0x1d8] sm:$0x11] }
  0xe2   :  { %v798_v52 = vsel %vm6151_vm10, %v545_v38, %v797_v46  ;;  %848 = vst [vmem:[#allocation2 + $0x14c] sm:$0xf] %v6314_v60  ;;  %1424 = vmatmul.bf16.gmra.mxu3 %v4765_v50  ;;  %v429_v60 = vsel %vm6037_vm7, 0, %v428_v54  ;;  %v440_v46 = vld [vmem:[#allocation2 + $0x1b8] sm:$0x11]  ;;  %v192_v54 = vmax.f32 %v171_v44, 0.0 }
  0xe3   :  { %v685_v55 = vld [vmem:[#allocation2 + $0x160] sm:$0xf]  ;;  %799 = vst [vmem:[#allocation2 + $0x148] sm:$0xf] %v798_v52  ;;  %1473 = vmatmul.bf16.gmra.mxu0 %v4769_v49 }
  0xe4   :  { %v686_v57 = vsel %vm6151_vm10, %v545_v38, %v685_v55  ;;  %322 = vst [vmem:[#allocation2 + $0x168] sm:$0x11] %v321_v47  ;;  %v335_v38 = vld [vmem:[#allocation2 + $0x1c0] sm:$0x11]  ;;  %v443_v47 = vld [vmem:[#allocation2 + $0x1d0] sm:$0x11]  ;;  %v6443_v4 = vpack.c.bf16 %v192_v54, %v192_v54 }
  0xe5   :  { %687 = vst [vmem:[#allocation2 + $0x160] sm:$0xf] %v686_v57  ;;  %v800_v61 = vld [vmem:[#allocation2 + $0x158] sm:$0x1]  ;;  %v336_v49 = vsel %vm6037_vm7, 0, %v335_v38  ;;  %v441_v57 = vsel %vm6037_vm7, 0, %v440_v46 }
  0xe6   :  { %v801_v63 = vsel %vm6031_vm5, %v546_v51, %v800_v61  ;;  %325 = vst [vmem:[#allocation2 + $0x180] sm:$0x11] %v324_v53  ;;  %v4780_v55 = vld [vmem:[#allocation2 + $0x128] sm:$0xf]  ;;  %v572_v17 = vshrl.u32 %v6443_v4, 16 }
  0xe7   :  { %v688_v3 = vld [vmem:[#allocation2 + $0x170] sm:$0x1]  ;;  %802 = vst [vmem:[#allocation2 + $0x158] sm:$0x1] %v801_v63 }
  0xe8   :  { %v689_v6 = vsel %vm6031_vm5, %v546_v51, %v688_v3  ;;  %430 = vst [vmem:[#allocation2 + $0x178] sm:$0x11] %v429_v60  ;;  %v305_v51 = vld [vmem:[#allocation2 + $0x120] sm:$0x11]  ;;  %v444_v60 = vsel %vm6037_vm7, 0, %v443_v47 }
  0xe9   :  { %690 = vst [vmem:[#allocation2 + $0x170] sm:$0x1] %v689_v6  ;;  %v4782_v29 = vld [vmem:[#allocation2 + $0x148] sm:$0xf0]  ;;  %v306_v3 = vsel %vm6037_vm7, 0, %v305_v51  ;;  %v5809_v6 = vld [vmem:[%s7461_s2 + $0x198] sm:$0xff] }
  0xea   :  { %433 = vst [vmem:[#allocation2 + $0x190] sm:$0x11] %v432_v0  ;;  %v4785_v1 = vor.u32 %v5743_v28, %v4782_v29  ;;  %v5745_v59 = vld [vmem:[#allocation2 + $0x144] sm:$0xf0]  ;;  %2577 = vmatpush.bf16.msra.mxu3 %v5809_v6  ;;  %v449_v28 = vld [vmem:[#allocation2 + $0x1f0] sm:$0x11] }
  0xeb   :  { %737 = vst [vmem:[#allocation2 + $0x184] sm:$0xf] %v6352_v32  ;;  %v803_v13 = vld [vmem:[#allocation2 + $0x168] sm:$0xf]  ;;  %v4781_v63 = vor.u32 %v5745_v59, %v4780_v55  ;;  %v450_v37 = vsel %vm6037_vm7, 0, %v449_v28 }
  0xec   :  { %v804_v15 = vsel %vm6151_vm10, %v553_v7, %v803_v13  ;;  %849 = vst [vmem:[#allocation2 + $0x16c] sm:$0xf] %v6352_v32  ;;  %v6412_v32 = vpack.c.bf16 %v191_v18, %v191_v18  ;;  %v455_v55 = vld [vmem:[#allocation2 + $0x210] sm:$0x11]  ;;  %v4788_v28 = vld [vmem:[#allocation2 + $0x160] sm:$0xf] }
  0xed   :  { %v691_v25 = vld [vmem:[#allocation2 + $0x180] sm:$0xf]  ;;  %805 = vst [vmem:[#allocation2 + $0x168] sm:$0xf] %v804_v15 }
  0xee   :  { %v692_v27 = vsel %vm6151_vm10, %v553_v7, %v691_v25  ;;  %328 = vst [vmem:[#allocation2 + $0x188] sm:$0x11] %v327_v12  ;;  %v564_v39 = vshrl.u32 %v6412_v32, 16  ;;  %v567_v50 = vshll.u32 %v6412_v32, 16  ;;  %v5793_v7 = vld [vmem:[%s7461_s2 + $0x118] sm:$0xff] }
  0xef   :  { %693 = vst [vmem:[#allocation2 + $0x180] sm:$0xf] %v692_v27  ;;  %v806_v30 = vld [vmem:[#allocation2 + $0x178] sm:$0x1]  ;;  %2479 = vmatpush.bf16.msra.mxu1 %v5793_v7  ;;  %v456_v7 = vsel %vm6037_vm7, 0, %v455_v55 }
  0xf0   :  { %v807_v23 = vsel %vm6031_vm5, %v554_v11, %v806_v30  ;;  %331 = vst [vmem:[#allocation2 + $0x1a0] sm:$0x11] %v330_v16  ;;  %v6430_v53 = vrot.slane %v564_v39, 7  ;;  %v347_v39 = vld [vmem:[#allocation2 + $0x200] sm:$0x11] }
  0xf1   :  { %v694_v33 = vld [vmem:[#allocation2 + $0x190] sm:$0x1]  ;;  %808 = vst [vmem:[#allocation2 + $0x178] sm:$0x1] %v807_v23  ;;  %v575_v23 = vshll.u32 %v6443_v4, 16  ;;  %v348_v51 = vsel %vm6037_vm7, 0, %v347_v39 }
  0xf2   :  { %v695_v35 = vsel %vm6031_vm5, %v554_v11, %v694_v33  ;;  %436 = vst [vmem:[#allocation2 + $0x198] sm:$0x11] %v435_v31  ;;  %v569_v2 = vor.u32 %v567_v50, %v6430_v53  ;;  %1429 = vmatmul.bf16.gmra.mxu3 %v4781_v63  ;;  %v5817_v11 = vld [vmem:[%s7461_s2 + $0x1d8] sm:$0xff]  ;;  %v570_v15 = vrot.slane %v6430_v53, 4  ;;  %v6473_v31 = vrot.slane %v572_v17, 7  ;;  %v5808_v53 = vld [vmem:[%s7461_s2 + $0x190] sm:$0xff] }
  0xf3   :  { %696 = vst [vmem:[#allocation2 + $0x190] sm:$0x1] %v695_v35  ;;  %1478 = vmatmul.bf16.gmra.mxu0 %v4785_v1  ;;  %v5747_v12 = vld [vmem:[#allocation2 + $0x16c] sm:$0xf]  ;;  %v447_v1 = vsel %vm6037_vm7, 0, %v446_v26  ;;  %2578 = vmatpush.bf16.msra.mxu3 %v5808_v53 }
  0xf4   :  { %439 = vst [vmem:[#allocation2 + $0x1b0] sm:$0x11] %v438_v34  ;;  %2626 = vmatpush.bf16.msra.mxu0 %v5817_v11  ;;  %v4774_v34 = vld [vmem:[#allocation2 + $0x140] sm:$0xf0]  ;;  %v4796_v44 = vld [vmem:[#allocation2 + $0x168] sm:$0xf] }
  0xf5   :  { %738 = vst [vmem:[#allocation2 + $0x1a4] sm:$0xf] %v6376_v62  ;;  %v809_v41 = vld [vmem:[#allocation2 + $0x188] sm:$0xf]  ;;  %v578_v50 = vrot.slane %v6473_v31, 4 }
  0xf6   :  { %v810_v45 = vsel %vm6151_vm10, %v561_v36, %v809_v41  ;;  %850 = vst [vmem:[#allocation2 + $0x18c] sm:$0xf] %v6376_v62  ;;  %v174_v62 = vpop.f32.mrf.mxu3  ;;  %v577_v41 = vor.u32 %v575_v23, %v6473_v31  ;;  %v5746_v26 = vld [vmem:[#allocation2 + $0x164] sm:$0xf]  ;;  %v220_v39 = vld [vmem:[#allocation2 + $0x10] sm:$0x11] }
  0xf7   :  { %v697_v48 = vld [vmem:[#allocation2 + $0x1a0] sm:$0xf]  ;;  %811 = vst [vmem:[#allocation2 + $0x188] sm:$0xf] %v810_v45  ;;  %v193_v10 = vmax.f32 %v174_v62, 0.0  ;;  %v5816_v62 = vld [vmem:[%s7461_s2 + $0x1d0] sm:$0xff]  ;;  %2579 = vmatpush.bf16.msra.mxu3 %v5807_v5 }
  0xf8   :  { %v698_v52 = vsel %vm6151_vm10, %v561_v36, %v697_v48  ;;  %334 = vst [vmem:[#allocation2 + $0x1a8] sm:$0x11] %v333_v42  ;;  %v5744_v36 = vld [vmem:[#allocation2 + $0x13c] sm:$0xf0]  ;;  %v452_v42 = vld [vmem:[#allocation2 + $0x1f8] sm:$0x11]  ;;  %2627 = vmatpush.bf16.msra.mxu0 %v5816_v62 }
  0xf9   :  { %699 = vst [vmem:[#allocation2 + $0x1a0] sm:$0xf] %v698_v52  ;;  %v812_v56 = vld [vmem:[#allocation2 + $0x198] sm:$0x1]  ;;  %v6469_v29 = vpack.c.bf16 %v193_v10, %v193_v10  ;;  %v5800_v52 = vld [vmem:[%s7461_s2 + $0x150] sm:$0xff] }
  0xfa   :  { %v813_v58 = vsel %vm6031_vm5, %v562_v40, %v812_v56  ;;  %337 = vst [vmem:[#allocation2 + $0x1c0] sm:$0x11] %v336_v49  ;;  %2529 = vmatpush.bf16.msra.mxu2 %v5800_v52  ;;  %v1580_v52 = vld [vmem:[#allocation2 + $0x28] sm:$0xff] }
  0xfb   :  { %v700_v61 = vld [vmem:[#allocation2 + $0x1b0] sm:$0x1]  ;;  %814 = vst [vmem:[#allocation2 + $0x198] sm:$0x1] %v813_v58 }
  0xfc   :  { %v701_v0 = vsel %vm6031_vm5, %v562_v40, %v700_v61  ;;  %442 = vst [vmem:[#allocation2 + $0x1b8] sm:$0x11] %v441_v57  ;;  %v580_v40 = vshrl.u32 %v6469_v29, 16  ;;  %v583_v61 = vshll.u32 %v6469_v29, 16 }
  0xfd   :  { %702 = vst [vmem:[#allocation2 + $0x1b0] sm:$0x1] %v701_v0  ;;  %v4798_v14 = vld [vmem:[#allocation2 + $0x188] sm:$0xf0]  ;;  %v453_v0 = vsel %vm6037_vm7, 0, %v452_v42 }
  0xfe   :  { %445 = vst [vmem:[#allocation2 + $0x1d0] sm:$0x11] %v444_v60  ;;  %v4801_v21 = vor.u32 %v5747_v12, %v4798_v14  ;;  %v5749_v45 = vld [vmem:[#allocation2 + $0x184] sm:$0xf0]  ;;  %v176_v56 = vpop.f32.mrf.mxu3  ;;  %v6499_v59 = vrot.slane %v580_v40, 7  ;;  %v5792_v60 = vld [vmem:[%s7461_s2 + $0x110] sm:$0xff] }
  0xff   :  { %739 = vst [vmem:[#allocation2 + $0x1c4] sm:$0xf] %v6412_v32  ;;  %v815_v13 = vld [vmem:[#allocation2 + $0x1a8] sm:$0xf]  ;;  %v4797_v57 = vor.u32 %v5749_v45, %v4796_v44  ;;  %2480 = vmatpush.bf16.msra.mxu1 %v5792_v60  ;;  %v245_v14 = vld [vmem:[#allocation2 + $0x230] sm:$0x11] }
 0x100   :  { %v816_v16 = vsel %vm6151_vm10, %v569_v2, %v815_v13  ;;  %851 = vst [vmem:[#allocation2 + $0x1ac] sm:$0xf] %v6412_v32  ;;  %v344_v32 = vld [vmem:[#allocation2 + $0x1e8] sm:$0x11]  ;;  %v585_v10 = vor.u32 %v583_v61, %v6499_v59  ;;  %v246_v31 = vsel %vm6037_vm7, 0, %v245_v14 }
 0x101   :  { %v703_v18 = vld [vmem:[#allocation2 + $0x1c0] sm:$0xf]  ;;  %817 = vst [vmem:[#allocation2 + $0x1a8] sm:$0xf] %v816_v16  ;;  %v345_v38 = vsel %vm6037_vm7, 0, %v344_v32  ;;  %v586_v16 = vrot.slane %v6499_v59, 4 }
 0x102   :  { %v704_v25 = vsel %vm6151_vm10, %v569_v2, %v703_v18  ;;  %307 = vst [vmem:[#allocation2 + $0x120] sm:$0x11] %v306_v3  ;;  %1434 = vmatmul.bf16.gmra.mxu3 %v4797_v57  ;;  %v5799_v2 = vld [vmem:[%s7461_s2 + $0x148] sm:$0xff]  ;;  %v458_v32 = vld [vmem:[#allocation2 + $0x218] sm:$0x11]  ;;  %v1688_v59 = vshll.u32 %v1580_v52, 16 }
 0x103   :  { %705 = vst [vmem:[#allocation2 + $0x1c0] sm:$0xf] %v704_v25  ;;  %v818_v27 = vld [vmem:[#allocation2 + $0x1b8] sm:$0x1]  ;;  %1483 = vmatmul.bf16.gmra.mxu0 %v4801_v21  ;;  %2530 = vmatpush.bf16.msra.mxu2 %v5799_v2  ;;  %v350_v21 = vld [vmem:[#allocation2 + $0x208] sm:$0x11] }
 0x104   :  { %v819_v30 = vsel %vm6031_vm5, %v570_v15, %v818_v27  ;;  %340 = vst [vmem:[#allocation2 + $0x1c8] sm:$0x11] %v339_v19  ;;  %v353_v25 = vld [vmem:[#allocation2 + $0x220] sm:$0x11] }
 0x105   :  { %v706_v33 = vld [vmem:[#allocation2 + $0x1d0] sm:$0x1]  ;;  %820 = vst [vmem:[#allocation2 + $0x1b8] sm:$0x1] %v819_v30  ;;  %v4790_v27 = vld [vmem:[#allocation2 + $0x180] sm:$0xf0] }
 0x106   :  { %v707_v35 = vsel %vm6031_vm5, %v570_v15, %v706_v33  ;;  %343 = vst [vmem:[#allocation2 + $0x1e0] sm:$0x11] %v342_v20  ;;  %v5748_v30 = vld [vmem:[#allocation2 + $0x17c] sm:$0xf0] }
 0x107   :  { %708 = vst [vmem:[#allocation2 + $0x1d0] sm:$0x1] %v707_v35  ;;  %v5751_v11 = vld [vmem:[#allocation2 + $0x1ac] sm:$0xf]  ;;  %v354_v35 = vsel %vm6037_vm7, 0, %v353_v25  ;;  %v4789_v42 = vor.u32 %v5748_v30, %v4788_v28 }
 0x108   :  { %448 = vst [vmem:[#allocation2 + $0x1d8] sm:$0x11] %v447_v1  ;;  %v351_v1 = vsel %vm6037_vm7, 0, %v350_v21 }
 0x109   :  { %v5742_v46 = vld [vmem:[#allocation2 + $0x124] sm:$0xf]  ;;  %v4772_v47 = vld [vmem:[#allocation2 + $0x120] sm:$0xf]  ;;  %451 = vst [vmem:[#allocation2 + $0x1f0] sm:$0x11] %v450_v37 }
 0x10a   :  { %v4777_v48 = vor.u32 %v5742_v46, %v4774_v34  ;;  %v4773_v49 = vor.u32 %v5744_v36, %v4772_v47  ;;  %740 = vst [vmem:[#allocation2 + $0x1e4] sm:$0xf] %v6443_v4  ;;  %v4812_v37 = vld [vmem:[#allocation2 + $0x1a8] sm:$0xf] }
 0x10b   :  { %v821_v54 = vld [vmem:[#allocation2 + $0x1c8] sm:$0xf]  ;;  %852 = vst [vmem:[#allocation2 + $0x1cc] sm:$0xf] %v6443_v4  ;;  %v194_v4 = vmax.f32 %v176_v56, 0.0 }
 0x10c   :  { %1380 = vmatmul.bf16.gmra.mxu2 %v4777_v48  ;;  %1331 = vmatmul.bf16.gmra.mxu1 %v4773_v49  ;;  %v822_v58 = vsel %vm6151_vm10, %v577_v41, %v821_v54  ;;  %346 = vst [vmem:[#allocation2 + $0x1e8] sm:$0x11] %v345_v38  ;;  %v5791_v48 = vld [vmem:[%s7461_s2 + $0x108] sm:$0xff]  ;;  %v5806_v54 = vld [vmem:[%s7461_s2 + $0x180] sm:$0xff] }
 0x10d   :  { %v709_v63 = vld [vmem:[#allocation2 + $0x1e0] sm:$0xf]  ;;  %823 = vst [vmem:[#allocation2 + $0x1c8] sm:$0xf] %v822_v58  ;;  %v210_v13 = vpack.c.bf16 %v194_v4, %v194_v4  ;;  %v5815_v49 = vld [vmem:[%s7461_s2 + $0x1c8] sm:$0xff]  ;;  %2481 = vmatpush.bf16.msra.mxu1 %v5791_v48  ;;  %2580 = vmatpush.bf16.msra.mxu3 %v5806_v54  ;;  %v1685_v58 = vshrl.u32 %v1580_v52, 16 }
 0x10e   :  { %v710_v3 = vsel %vm6151_vm10, %v577_v41, %v709_v63  ;;  %349 = vst [vmem:[#allocation2 + $0x200] sm:$0x11] %v348_v51  ;;  %v4793_v41 = vor.u32 %v5746_v26, %v4790_v27  ;;  %v221_v51 = vsel %vm6037_vm7, 0, %v220_v39  ;;  %2628 = vmatpush.bf16.msra.mxu0 %v5815_v49  ;;  %v1576_v56 = vld [vmem:[#allocation2 + $0x8] sm:$0xff]  ;;  %v1578_v26 = vld [vmem:[#allocation2 + $0x18] sm:$0x11] }
 0x10f   :  { %711 = vst [vmem:[#allocation2 + $0x1e0] sm:$0xf] %v710_v3  ;;  %v824_v6 = vld [vmem:[#allocation2 + $0x1d8] sm:$0x1]  ;;  %v588_v33 = vshrl.u32 %v210_v13, 16  ;;  %v591_v45 = vshll.u32 %v210_v13, 16 }
 0x110   :  { %v712_v8 = vld [vmem:[#allocation2 + $0x1f0] sm:$0x1]  ;;  %v825_v9 = vsel %vm6031_vm5, %v578_v50, %v824_v6  ;;  %454 = vst [vmem:[#allocation2 + $0x1f8] sm:$0x11] %v453_v0  ;;  %v1657_v0 = vshrl.u32 %v1576_v56, 16  ;;  %v1660_v2 = vshll.u32 %v1576_v56, 16 }
 0x111   :  { %v713_v12 = vsel %vm6031_vm5, %v578_v50, %v712_v8  ;;  %826 = vst [vmem:[#allocation2 + $0x1d8] sm:$0x1] %v825_v9  ;;  %v590_v44 = vrot.slane %v588_v33, 7  ;;  %v5798_v50 = vld [vmem:[%s7461_s2 + $0x140] sm:$0xff]  ;;  %v1687_v6 = vrot.slane %v1685_v58, 4  ;;  %2482 = vmatpush.bf16.msra.mxu1 %v5790_v22  ;;  %v1584_v48 = vld [vmem:[#allocation2 + $0x48] sm:$0xff] }
 0x112   :  { %714 = vst [vmem:[#allocation2 + $0x1f0] sm:$0x1] %v713_v12  ;;  %v4814_v15 = vld [vmem:[#allocation2 + $0x1c8] sm:$0xf0]  ;;  %2531 = vmatpush.bf16.msra.mxu2 %v5798_v50  ;;  %v5750_v9 = vld [vmem:[#allocation2 + $0x1a4] sm:$0xf] }
 0x113   :  { %457 = vst [vmem:[#allocation2 + $0x210] sm:$0x11] %v456_v7  ;;  %v827_v17 = vld [vmem:[#allocation2 + $0x1e8] sm:$0xf]  ;;  %v4817_v18 = vor.u32 %v5751_v11, %v4814_v15  ;;  %v593_v53 = vor.u32 %v591_v45, %v590_v44  ;;  %v594_v61 = vrot.slane %v590_v44, 4  ;;  %v1690_v7 = vrot.slane %v1688_v59, 5 }
 0x114   :  { %741 = vst [vmem:[#allocation2 + $0x204] sm:$0xf] %v6469_v29  ;;  %v828_v19 = vsel %vm6151_vm10, %v585_v10, %v827_v17  ;;  %v5753_v38 = vld [vmem:[#allocation2 + $0x1c4] sm:$0xf0]  ;;  %v4804_v11 = vld [vmem:[#allocation2 + $0x1a0] sm:$0xf] }
 0x115   :  { %v715_v20 = vld [vmem:[#allocation2 + $0x200] sm:$0xf]  ;;  %829 = vst [vmem:[#allocation2 + $0x1e8] sm:$0xf] %v828_v19  ;;  %1488 = vmatmul.bf16.gmra.mxu0 %v4817_v18  ;;  %v4813_v47 = vor.u32 %v5753_v38, %v4812_v37  ;;  %v1662_v14 = vrot.slane %v1660_v2, 5  ;;  %v1691_v25 = vor.u32 %v1690_v7, %v1687_v6  ;;  %v5869_v38 = vld [vmem:[%s7461_s2 + $0x278] sm:$0xff] }
 0x116   :  { %v716_v23 = vsel %vm6151_vm10, %v585_v10, %v715_v20  ;;  %853 = vst [vmem:[#allocation2 + $0x1ec] sm:$0xf] %v6469_v29  ;;  %v459_v29 = vsel %vm6037_vm7, 0, %v458_v32  ;;  %v4806_v10 = vld [vmem:[#allocation2 + $0x1c0] sm:$0xf0]  ;;  %3246 = vmatpush.bf16.msrb.mxu2 %v5869_v38  ;;  %v1713_v58 = vshrl.u32 %v1584_v48, 16 }
 0x117   :  { %717 = vst [vmem:[#allocation2 + $0x200] sm:$0xf] %v716_v23  ;;  %v830_v34 = vld [vmem:[#allocation2 + $0x1f8] sm:$0x1]  ;;  %1439 = vmatmul.bf16.gmra.mxu3 %v4813_v47  ;;  %v5752_v15 = vld [vmem:[#allocation2 + $0x1bc] sm:$0xf0]  ;;  %v4809_v27 = vor.u32 %v5750_v9, %v4806_v10 }
 0x118   :  { %v831_v36 = vsel %vm6031_vm5, %v586_v16, %v830_v34  ;;  %247 = vst [vmem:[#allocation2 + $0x230] sm:$0x11] %v246_v31  ;;  %v1582_v17 = vld [vmem:[#allocation2 + $0x38] sm:$0x11]  ;;  %v4805_v28 = vor.u32 %v5752_v15, %v4804_v11  ;;  %v1579_v31 = vld [vmem:[#allocation2 + $0x20] sm:$0xff]  ;;  %v1692_v37 = vrot.slane %v1691_v25, 4 }
 0x119   :  { %832 = vst [vmem:[#allocation2 + $0x1f8] sm:$0x1] %v831_v36  ;;  %v1694_v32 = vshll.u32 %v1582_v17, 16  ;;  %v1666_v36 = vshll.u32 %v1578_v26, 16  ;;  %v1674_v39 = vshll.u32 %v1579_v31, 16  ;;  %v1575_v44 = vld [vmem:[#allocation2] sm:$0xff] }
 0x11a   :  { %v718_v40 = vld [vmem:[#allocation2 + $0x210] sm:$0x1]  ;;  %352 = vst [vmem:[#allocation2 + $0x208] sm:$0x11] %v351_v1  ;;  %v1646_v54 = vshll.u32 %v1575_v44, 16  ;;  %v1716_v59 = vshll.u32 %v1584_v48, 16 }
 0x11b   :  { %v719_v46 = vsel %vm6031_vm5, %v586_v16, %v718_v40  ;;  %355 = vst [vmem:[#allocation2 + $0x220] sm:$0x11] %v354_v35  ;;  %v5814_v35 = vld [vmem:[%s7461_s2 + $0x1c0] sm:$0xff]  ;;  %v1668_v49 = vrot.slane %v1666_v36, 5  ;;  %v1676_v56 = vrot.slane %v1674_v39, 5  ;;  %v1596_v39 = vld [vmem:[#allocation2 + $0xa8] sm:$0xff] }
 0x11c   :  { %720 = vst [vmem:[#allocation2 + $0x210] sm:$0x1] %v719_v46  ;;  %1385 = vmatmul.bf16.gmra.mxu2 %v4793_v41  ;;  %1336 = vmatmul.bf16.gmra.mxu1 %v4789_v42  ;;  %v4828_v19 = vld [vmem:[#allocation2 + $0x1e8] sm:$0xf]  ;;  %v5877_v41 = vld [vmem:[%s7461_s2 + $0x2b8] sm:$0xff]  ;;  %v1696_v46 = vrot.slane %v1694_v32, 5 }
 0x11d   :  { %460 = vst [vmem:[#allocation2 + $0x218] sm:$0x11] %v459_v29  ;;  %v5755_v4 = vld [vmem:[#allocation2 + $0x1ec] sm:$0xf]  ;;  %v1671_v29 = vshrl.u32 %v1579_v31, 16  ;;  %2629 = vmatpush.bf16.msra.mxu0 %v5814_v35  ;;  %3295 = vmatpush.bf16.msrb.mxu3 %v5877_v41  ;;  %v1648_v7 = vrot.slane %v1646_v54, 5 }
 0x11e   :  { %742 = vst [vmem:[#allocation2 + $0x224] sm:$0xf] %v210_v13  ;;  %v1588_v42 = vld [vmem:[#allocation2 + $0x68] sm:$0xff]  ;;  %v1697_v50 = vsel %vm6590_vm13, %v1692_v37, %v1696_v46  ;;  %v4822_v10 = vld [vmem:[#allocation2 + $0x200] sm:$0xf0] }
 0x11f   :  { %v461_v55 = vld [vmem:[#allocation2 + $0x230] sm:$0x11]  ;;  %854 = vst [vmem:[#allocation2 + $0x20c] sm:$0xf] %v210_v13  ;;  %v1659_v13 = vrot.slane %v1657_v0, 4  ;;  %v1744_v52 = vshll.u32 %v1588_v42, 16  ;;  %v2161_v17 = vunpack.c.l.b16 %v1697_v50 }
 0x120   :  { %v462_v57 = vsel %vm6037_vm7, 0, %v461_v55  ;;  %222 = vst [vmem:[#allocation2 + $0x10] sm:$0x11] %v221_v51  ;;  %v6570_v34 = vpop.f32.mrf.mxu2  ;;  %v1741_v51 = vshrl.u32 %v1588_v42, 16  ;;  %v1673_v55 = vrot.slane %v1671_v29, 4  ;;  %v1583_v0 = vld [vmem:[#allocation2 + $0x40] sm:$0xff] }
 0x121   :  { %463 = vst [vmem:[#allocation2 + $0x230] sm:$0x11] %v462_v57  ;;  %v833_v60 = vld [vmem:[#allocation2 + $0x208] sm:$0xf]  ;;  %v1663_v23 = vor.u32 %v1662_v14, %v1659_v13  ;;  %v1715_v13 = vrot.slane %v1713_v58, 4  ;;  %v1718_v14 = vrot.slane %v1716_v59, 5 }
 0x122   :  { %v721_v62 = vld [vmem:[#allocation2 + $0x220] sm:$0xf]  ;;  %v834_v63 = vsel %vm6151_vm10, %v593_v53, %v833_v60  ;;  %v6575_v1 = vpop.f32.mrf.mxu1  ;;  %v1581_v60 = vld [vmem:[#allocation2 + $0x30] sm:$0x11]  ;;  %v1743_v2 = vrot.slane %v1741_v51, 4  ;;  %v1592_v29 = vld [vmem:[#allocation2 + $0x88] sm:$0xff] }
 0x123   :  { %v722_v3 = vsel %vm6151_vm10, %v593_v53, %v721_v62  ;;  %835 = vst [vmem:[#allocation2 + $0x208] sm:$0xf] %v834_v63  ;;  %v1664_v45 = vrot.slane %v1663_v23, 4  ;;  %v1643_v53 = vshrl.u32 %v1575_v44, 16  ;;  %v5756_v15 = vld [vmem:[#allocation2 + $0x1fc] sm:$0xf0]  ;;  %v1719_v32 = vor.u32 %v1718_v14, %v1715_v13 }
 0x124   :  { %723 = vst [vmem:[#allocation2 + $0x220] sm:$0xf] %v722_v3  ;;  %v836_v5 = vld [vmem:[#allocation2 + $0x218] sm:$0x1]  ;;  %v1746_v3 = vrot.slane %v1744_v52, 5  ;;  %v1362_v35 = vadd.f32 %v6570_v34, %v6575_v1  ;;  %v1587_v37 = vld [vmem:[#allocation2 + $0x60] sm:$0xff] }
 0x125   :  { %v837_v8 = vsel %vm6031_vm5, %v594_v61, %v836_v5  ;;  %v1669_v57 = vsel %vm6590_vm13, %v1664_v45, %v1668_v49  ;;  %v4820_v5 = vld [vmem:[#allocation2 + $0x1e0] sm:$0xf]  ;;  %v1645_v6 = vrot.slane %v1643_v53, 4  ;;  %v5861_v44 = vld [vmem:[%s7461_s2 + $0x238] sm:$0xff]  ;;  %v5868_v34 = vld [vmem:[%s7461_s2 + $0x270] sm:$0xff]  ;;  %v1769_v58 = vshrl.u32 %v1592_v29, 16 }
 0x126   :  { %838 = vst [vmem:[#allocation2 + $0x218] sm:$0x1] %v837_v8  ;;  %v4830_v12 = vld [vmem:[#allocation2 + $0x208] sm:$0xf0]  ;;  %v1677_v8 = vor.u32 %v1676_v56, %v1673_v55  ;;  %v2158_v9 = vunpack.c.h.b16 %v1669_v57  ;;  %v1747_v25 = vor.u32 %v1746_v3, %v1743_v2  ;;  %v4821_v23 = vor.u32 %v5756_v15, %v4820_v5  ;;  %v5885_v45 = vld [vmem:[%s7461_s2 + $0x2f8] sm:$0xff]  ;;  %v5876_v53 = vld [vmem:[%s7461_s2 + $0x2b0] sm:$0xff]  ;;  %3197 = vmatpush.bf16.msrb.mxu1 %v5861_v44 }
 0x127   :  { %v4833_v16 = vor.u32 %v5755_v4, %v4830_v12  ;;  %v359_v43 = vld [vmem:[#allocation2 + $0x10] sm:$0x11]  ;;  %v6583_v40 = vpop.f32.mrf.mxu0  ;;  %v5754_v4 = vld [vmem:[#allocation2 + $0x1e4] sm:$0xf]  ;;  %3344 = vmatpush.bf16.msrb.mxu0 %v5885_v45  ;;  %v1720_v56 = vrot.slane %v1719_v32, 4  ;;  %v1772_v59 = vshll.u32 %v1592_v29, 16  ;;  %3247 = vmatpush.bf16.msrb.mxu2 %v5868_v34 }
 0x128   :  { %v724_v18 = vld [vmem:[#allocation2 + $0x230] sm:$0x1]  ;;  %v360_v21 = vsel %vm6037_vm7, 0, %v359_v43  ;;  %v6598_v62 = vpop.f32.mrf.mxu2  ;;  %v4825_v31 = vor.u32 %v5754_v4, %v4822_v10  ;;  %v1748_v48 = vrot.slane %v1747_v25, 4  ;;  %3296 = vmatpush.bf16.msrb.mxu3 %v5876_v53  ;;  %v1800_v2 = vshll.u32 %v1596_v39, 16 }
 0x129   :  { %v725_v20 = vsel %vm6031_vm5, %v594_v61, %v724_v18  ;;  %1493 = vmatmul.bf16.gmra.mxu0 %v4833_v16  ;;  %361 = vst [vmem:[#allocation2 + $0x10] sm:$0x11] %v360_v21  ;;  %v2162_v61 = vunpack.c.h.b16 %v1697_v50  ;;  %v1680_v16 = vshll.u32 %v1581_v60, 16  ;;  %v1699_v18 = vshrl.u32 %v1583_v0, 16  ;;  %v1585_v54 = vld [vmem:[#allocation2 + $0x50] sm:$0x11] }
 0x12a   :  { %726 = vst [vmem:[#allocation2 + $0x230] sm:$0x1] %v725_v20  ;;  %v5757_v30 = vld [vmem:[#allocation2 + $0x204] sm:$0xf0]  ;;  %v6600_v63 = vpop.f32.mrf.mxu1  ;;  %v1702_v21 = vshll.u32 %v1583_v0, 16  ;;  %v1649_v20 = vor.u32 %v1648_v7, %v1645_v6  ;;  %v1797_v0 = vshrl.u32 %v1596_v39, 16 }
 0x12b   :  { %v4829_v33 = vor.u32 %v5757_v30, %v4828_v19  ;;  %v2222_v43 = vpack.c.b16 %v2162_v61, %v2158_v9  ;;  %v1590_v19 = vld [vmem:[#allocation2 + $0x78] sm:$0x11]  ;;  %v1682_v22 = vrot.slane %v1680_v16, 5  ;;  %v1701_v38 = vrot.slane %v1699_v18, 4  ;;  %v1589_v32 = vld [vmem:[#allocation2 + $0x70] sm:$0x11] }
 0x12c   :  { %1390 = vmatmul.bf16.gmra.mxu2 %v4809_v27  ;;  %1341 = vmatmul.bf16.gmra.mxu1 %v4805_v28  ;;  %v1678_v27 = vrot.slane %v1677_v8, 4  ;;  %v2157_v28 = vunpack.c.l.b16 %v1669_v57  ;;  %v1586_v30 = vld [vmem:[#allocation2 + $0x58] sm:$0x11]  ;;  %v1704_v41 = vrot.slane %v1702_v21, 5  ;;  %v1650_v1 = vrot.slane %v1649_v20, 4 }
 0x12d   :  { %1444 = vmatmul.bf16.gmra.mxu3 %v4829_v33  ;;  %v1750_v33 = vshll.u32 %v1590_v19, 16  ;;  %v1722_v46 = vshll.u32 %v1586_v30, 16  ;;  %v1727_v61 = vshrl.u32 %v1587_v37, 16  ;;  %v1730_v4 = vshll.u32 %v1587_v37, 16  ;;  %v1594_v16 = vld [vmem:[#allocation2 + $0x98] sm:$0x11] }
 0x12e   :  { %v2221_v36 = vpack.c.b16 %v2161_v17, %v2157_v28  ;;  %v6617_v50 = vsel %vm6590_vm13, %v1678_v27, %v1682_v22  ;;  %v1705_v3 = vor.u32 %v1704_v41, %v1701_v38  ;;  %v1708_v9 = vshll.u32 %v1585_v54, 16 }
 0x12f   :  { %v6602_v12 = vpop.f32.mrf.mxu0  ;;  %v1752_v57 = vrot.slane %v1750_v33, 5  ;;  %v1724_v6 = vrot.slane %v1722_v46, 5  ;;  %v1774_v13 = vrot.slane %v1772_v59, 5  ;;  %v1364_v14 = vadd.f32 %v6598_v62, %v6600_v63 }
 0x130   :  { %v1577_v11 = vld [vmem:[#allocation2 + $0x10] sm:$0x11]  ;;  %v1802_v17 = vrot.slane %v1800_v2, 5  ;;  %v1706_v19 = vrot.slane %v1705_v3, 4  ;;  %v1729_v21 = vrot.slane %v1727_v61, 4  ;;  %v1732_v25 = vrot.slane %v1730_v4, 5 }
 0x131   :  { %v1652_v26 = vshll.u32 %v1577_v11, 16  ;;  %v1753_v7 = vsel %vm6590_vm13, %v1748_v48, %v1752_v57  ;;  %v1725_v10 = vsel %vm6590_vm13, %v1720_v56, %v1724_v6  ;;  %v1771_v11 = vrot.slane %v1769_v58, 4  ;;  %v1595_v58 = vld [vmem:[#allocation2 + $0xa0] sm:$0xff]  ;;  %v1604_v2 = vld [vmem:[#allocation2 + $0xe8] sm:$0xff]  ;;  %v5860_v4 = vld [vmem:[%s7461_s2 + $0x230] sm:$0xff] }
 0x132   :  { %v1410_v42 = vpop.f32.mrf.mxu3  ;;  %v6624_v55 = vpop.f32.mrf.mxu1  ;;  %v2170_v15 = vunpack.c.h.b16 %v1753_v7  ;;  %v2159_v27 = vunpack.c.l.b16 %v6617_v50  ;;  %v1710_v28 = vrot.slane %v1708_v9, 5  ;;  %v2166_v30 = vunpack.c.h.b16 %v1725_v10  ;;  %v5884_v6 = vld [vmem:[%s7461_s2 + $0x2f0] sm:$0xff]  ;;  %3198 = vmatpush.bf16.msrb.mxu1 %v5860_v4 }
 0x133   :  { %v1654_v49 = vrot.slane %v1652_v26, 5  ;;  %v1411_v51 = vadd.f32 %v1410_v42, %v1362_v35  ;;  %v1598_v26 = vld [vmem:[#allocation2 + $0xb8] sm:$0x11]  ;;  %v2169_v33 = vunpack.c.l.b16 %v1753_v7  ;;  %v1775_v22 = vor.u32 %v1774_v13, %v1771_v11  ;;  %3345 = vmatpush.bf16.msrb.mxu0 %v5884_v6 }
 0x134   :  { %v1778_v62 = vshll.u32 %v1594_v16, 16  ;;  %v2226_v63 = vpack.c.b16 %v2170_v15, %v2166_v30  ;;  %v1806_v38 = vshll.u32 %v1598_v26, 16  ;;  %v6647_v39 = vsel %vm6590_vm13, %v1706_v19, %v1710_v28 }
 0x135   :  { %v6619_v52 = vpop.f32.mrf.mxu2  ;;  %v1460_v60 = vadd.f32 %v6583_v40, %v1411_v51  ;;  %v1655_v8 = vsel %vm6590_vm13, %v1650_v1, %v1654_v49  ;;  %v2160_v40 = vunpack.c.h.b16 %v6617_v50  ;;  %v1733_v41 = vor.u32 %v1732_v25, %v1729_v21  ;;  %v228_v1 = vld [vmem:[#allocation2 + $0x130] sm:$0x11]  ;;  %v1591_v51 = vld [vmem:[#allocation2 + $0x80] sm:$0xff] }
 0x136   :  { %v2156_v18 = vunpack.c.h.b16 %v1655_v8  ;;  %v2165_v45 = vunpack.c.l.b16 %v1725_v10  ;;  %v1736_v46 = vshll.u32 %v1589_v32, 16  ;;  %v1776_v53 = vrot.slane %v1775_v22, 4  ;;  %v5875_v10 = vld [vmem:[%s7461_s2 + $0x2a8] sm:$0xff] }
 0x137   :  { %1499 = vst [vmem:[%s7462_s3] sm:$0xff] %v1460_v60  ;;  %v1537_v48 = vmul.f32 %v1460_v60, %v1460_v60  ;;  %v1780_v54 = vrot.slane %v1778_v62, 5  ;;  %v1367_v56 = vadd.f32 %v6619_v52, %v6624_v55  ;;  %v1808_v61 = vrot.slane %v1806_v38, 5  ;;  %v5867_v52 = vld [vmem:[%s7461_s2 + $0x268] sm:$0xff]  ;;  %3297 = vmatpush.bf16.msrb.mxu3 %v5875_v10  ;;  %v1602_v38 = vld [vmem:[#allocation2 + $0xd8] sm:$0x11] }
 0x138   :  { %v2220_v29 = vpack.c.b16 %v2160_v40, %v2156_v18  ;;  %v2225_v50 = vpack.c.b16 %v2169_v33, %v2165_v45  ;;  %v1734_v3 = vrot.slane %v1733_v41, 4  ;;  %v229_v55 = vsel %vm6037_vm7, 0, %v228_v1  ;;  %3248 = vmatpush.bf16.msrb.mxu2 %v5867_v52 }
 0x139   :  { %2630 = vmatmul.bf16.vlgmr.msra.gmra.mxu0 %v2222_v43  ;;  %v1799_v43 = vrot.slane %v1797_v0, 4  ;;  %v1600_v0 = vld [vmem:[#allocation2 + $0xc8] sm:$0xff]  ;;  %v1738_v7 = vrot.slane %v1736_v46, 5  ;;  %v1758_v9 = vshll.u32 %v1591_v51, 16  ;;  %230 = vst [vmem:[#allocation2 + $0x130] sm:$0x11] %v229_v55  ;;  %v2164_v11 = vunpack.c.h.b16 %v6647_v39 }
 0x13a   :  { %v1412_v20 = vpop.f32.mrf.mxu3  ;;  %v6649_v42 = vpop.f32.mrf.mxu1  ;;  %v6675_v13 = vsel %vm6590_vm13, %v1776_v53, %v1780_v54  ;;  %v1828_v15 = vshll.u32 %v1600_v0, 16  ;;  %v1856_v18 = vshll.u32 %v1604_v2, 16  ;;  %v2163_v21 = vunpack.c.l.b16 %v6647_v39 }
 0x13b   :  { %v1803_v37 = vor.u32 %v1802_v17, %v1799_v43  ;;  %v1853_v17 = vshrl.u32 %v1604_v2, 16  ;;  %v1739_v19 = vsel %vm6590_vm13, %v1734_v3, %v1738_v7  ;;  %v1783_v25 = vshrl.u32 %v1595_v58, 16 }
 0x13c   :  { %1395 = vmatmul.bf16.gmra.mxu2 %v4825_v31  ;;  %1346 = vmatmul.bf16.gmra.mxu1 %v4821_v23  ;;  %v1413_v31 = vadd.f32 %v1412_v20, %v1364_v14  ;;  %v2155_v23 = vunpack.c.l.b16 %v1655_v8  ;;  %v1755_v8 = vshrl.u32 %v1591_v51, 16  ;;  %v1825_v14 = vshrl.u32 %v1600_v0, 16 }
 0x13d   :  { %2581 = vmatmul.bf16.vlgmr.msra.gmra.mxu3 %v2221_v36  ;;  %v6643_v36 = vpop.f32.mrf.mxu2  ;;  %v1804_v59 = vrot.slane %v1803_v37, 4  ;;  %v1786_v20 = vshll.u32 %v1595_v58, 16  ;;  %v1760_v28 = vrot.slane %v1758_v9, 5  ;;  %v2174_v33 = vunpack.c.h.b16 %v6675_v13 }
 0x13e   :  { %v1462_v35 = vadd.f32 %v6602_v12, %v1413_v31  ;;  %v2219_v49 = vpack.c.b16 %v2159_v27, %v2155_v23  ;;  %v1757_v27 = vrot.slane %v1755_v8, 4  ;;  %v1593_v23 = vld [vmem:[#allocation2 + $0x90] sm:$0x11]  ;;  %v1827_v62 = vrot.slane %v1825_v14, 4  ;;  %v1599_v8 = vld [vmem:[#allocation2 + $0xc0] sm:$0xff] }
 0x13f   :  { %v1809_v43 = vsel %vm6590_vm13, %v1804_v59, %v1808_v61  ;;  %v1858_v39 = vrot.slane %v1856_v18, 5  ;;  %v2168_v41 = vunpack.c.h.b16 %v1739_v19  ;;  %v2167_v45 = vunpack.c.l.b16 %v1739_v19 }
 0x140   :  { %v6627_v5 = vpop.f32.mrf.mxu0  ;;  %1500 = vst [vmem:[%s7462_s3 + $0x8] sm:$0xff] %v1462_v35  ;;  %v1515_v12 = vadd.f32 %v1462_v35, %v1460_v60  ;;  %v1538_v34 = vmul.f32 %v1462_v35, %v1462_v35  ;;  %v2178_v22 = vunpack.c.h.b16 %v1809_v43  ;;  %v1369_v35 = vadd.f32 %v6643_v36, %v6649_v42  ;;  %v413_v1 = vld [vmem:[#allocation2 + $0x130] sm:$0x11] }
 0x141   :  { %v1785_v46 = vrot.slane %v1783_v25, 4  ;;  %v1764_v51 = vshll.u32 %v1593_v23, 16  ;;  %v414_v54 = vsel %vm6037_vm7, 0, %v413_v1  ;;  %v2173_v36 = vunpack.c.l.b16 %v6675_v13 }
 0x142   :  { %v1553_v57 = vadd.f32 %v1538_v34, %v1537_v48  ;;  %v1788_v48 = vrot.slane %v1786_v20, 5  ;;  %v1606_v34 = vld [vmem:[#allocation2 + $0xf8] sm:$0x11]  ;;  %v2177_v42 = vunpack.c.l.b16 %v1809_v43  ;;  %415 = vst [vmem:[#allocation2 + $0x130] sm:$0x11] %v414_v54  ;;  %v2230_v58 = vpack.c.b16 %v2178_v22, %v2174_v33  ;;  %v1608_v43 = vld [vmem:[#allocation2 + $0x128] sm:$0xff] }
 0x143   :  { %v1862_v0 = vshll.u32 %v1606_v34, 16  ;;  %v2224_v2 = vpack.c.b16 %v2168_v41, %v2164_v11  ;;  %v2223_v6 = vpack.c.b16 %v2167_v45, %v2163_v21  ;;  %v1766_v9 = vrot.slane %v1764_v51, 5  ;;  %v5874_v33 = vld [vmem:[%s7461_s2 + $0x2a0] sm:$0xff] }
 0x144   :  { %v1322_v32 = vpop.f32.mrf.mxu1  ;;  %v1789_v3 = vor.u32 %v1788_v48, %v1785_v46  ;;  %v1811_v25 = vshrl.u32 %v1599_v8, 16  ;;  %v1814_v23 = vshll.u32 %v1599_v8, 16  ;;  %3298 = vmatpush.bf16.msrb.mxu3 %v5874_v33 }
 0x145   :  { %v1415_v60 = vpop.f32.mrf.mxu3  ;;  %v1371_v31 = vpop.f32.mrf.mxu2 }
 0x146   :  { %v1416_v40 = vadd.f32 %v1415_v60, %v1367_v56  ;;  %v1372_v13 = vadd.f32 %v1371_v31, %v1322_v32  ;;  %v1790_v18 = vrot.slane %v1789_v3, 4  ;;  %v1603_v31 = vld [vmem:[#allocation2 + $0xe0] sm:$0xff]  ;;  %v1813_v45 = vrot.slane %v1811_v25, 4 }
 0x147   :  { %v1839_v46 = vshrl.u32 %v1603_v31, 16  ;;  %v1816_v34 = vrot.slane %v1814_v23, 5  ;;  %v1842_v1 = vshll.u32 %v1603_v31, 16 }
 0x148   :  { %v6651_v44 = vpop.f32.mrf.mxu0  ;;  %v1465_v16 = vadd.f32 %v6627_v5, %v1416_v40  ;;  %v2229_v40 = vpack.c.b16 %v2177_v42, %v2173_v36 }
 0x149   :  { %2635 = vmatmul.bf16.gmra.mxu0 %v2226_v63  ;;  %v1830_v63 = vrot.slane %v1828_v15, 5 }
 0x14a   :  { %1501 = vst [vmem:[%s7462_s3 + $0x10] sm:$0xff] %v1465_v16  ;;  %v1516_v5 = vadd.f32 %v1515_v12, %v1465_v16  ;;  %v1539_v30 = vmul.f32 %v1465_v16, %v1465_v16  ;;  %v1864_v16 = vrot.slane %v1862_v0, 5 }
 0x14b   :  { %v1831_v56 = vor.u32 %v1830_v63, %v1827_v62  ;;  %v1881_v62 = vshrl.u32 %v1608_v43, 16  ;;  %v1884_v63 = vshll.u32 %v1608_v43, 16 }
 0x14c   :  { %2532 = vmatmul.bf16.vlgmr.msra.gmra.mxu2 %v2220_v29  ;;  %2483 = vmatmul.bf16.vlgmr.msra.gmra.mxu1 %v2219_v49  ;;  %v1554_v37 = vadd.f32 %v1553_v57, %v1539_v30  ;;  %v1855_v29 = vrot.slane %v1853_v17, 4  ;;  %v1597_v49 = vld [vmem:[#allocation2 + $0xb0] sm:$0x11]  ;;  %v1834_v57 = vshll.u32 %v1602_v38, 16  ;;  %v1612_v17 = vld [vmem:[#allocation2 + $0x148] sm:$0xff]  ;;  %v1324_v21 = vpop.f32.mrf.mxu1 }
 0x14d   :  { %2586 = vmatmul.bf16.gmra.mxu3 %v2225_v50  ;;  %v1417_v12 = vpop.f32.mrf.mxu3  ;;  %v1761_v50 = vor.u32 %v1760_v28, %v1757_v27  ;;  %v1792_v60 = vshll.u32 %v1597_v49, 16  ;;  %v1373_v14 = vpop.f32.mrf.mxu2  ;;  %v5859_v27 = vld [vmem:[%s7461_s2 + $0x228] sm:$0xff]  ;;  %v1909_v38 = vshrl.u32 %v1612_v17, 16  ;;  %v1886_v54 = vrot.slane %v1884_v63, 5 }
 0x14e   :  { %v1418_v53 = vadd.f32 %v1417_v12, %v1369_v35  ;;  %v1859_v61 = vor.u32 %v1858_v39, %v1855_v29  ;;  %v1836_v10 = vrot.slane %v1834_v57, 5  ;;  %v5883_v28 = vld [vmem:[%s7461_s2 + $0x2e8] sm:$0xff]  ;;  %3199 = vmatpush.bf16.msrb.mxu1 %v5859_v27  ;;  %v1912_v29 = vshll.u32 %v1612_v17, 16  ;;  %v1601_v12 = vld [vmem:[#allocation2 + $0xd0] sm:$0x11] }
 0x14f   :  { %v1762_v52 = vrot.slane %v1761_v50, 4  ;;  %v1794_v19 = vrot.slane %v1792_v60, 5  ;;  %3346 = vmatpush.bf16.msrb.mxu0 %v5883_v28  ;;  %v1374_v36 = vadd.f32 %v1373_v14, %v1324_v21  ;;  %v1911_v57 = vrot.slane %v1909_v38, 4  ;;  %v1614_v60 = vld [vmem:[#allocation2 + $0x158] sm:$0x11] }
 0x150   :  { %v6683_v26 = vpop.f32.mrf.mxu0  ;;  %v1467_v59 = vadd.f32 %v6651_v44, %v1418_v53  ;;  %v1832_v44 = vrot.slane %v1831_v56, 4  ;;  %v1860_v15 = vrot.slane %v1859_v61, 4  ;;  %v1883_v53 = vrot.slane %v1881_v62, 4  ;;  %v1610_v56 = vld [vmem:[#allocation2 + $0x138] sm:$0x11] }
 0x151   :  { %v1767_v30 = vsel %vm6590_vm13, %v1762_v52, %v1766_v9  ;;  %v1795_v39 = vsel %vm6590_vm13, %v1790_v18, %v1794_v19  ;;  %v1841_v52 = vrot.slane %v1839_v46, 4  ;;  %v1605_v9 = vld [vmem:[#allocation2 + $0xf0] sm:$0x11]  ;;  %v1918_v43 = vshll.u32 %v1614_v60, 16  ;;  %v1607_v46 = vld [vmem:[#allocation2 + $0x120] sm:$0xff] }
 0x152   :  { %1502 = vst [vmem:[%s7462_s3 + $0x18] sm:$0xff] %v1467_v59  ;;  %v1517_v55 = vadd.f32 %v1516_v5, %v1467_v59  ;;  %v1540_v7 = vmul.f32 %v1467_v59, %v1467_v59  ;;  %v5866_v5 = vld [vmem:[%s7461_s2 + $0x260] sm:$0xff]  ;;  %v1837_v22 = vsel %vm6590_vm13, %v1832_v44, %v1836_v10  ;;  %v2172_v41 = vunpack.c.h.b16 %v1767_v30 }
 0x153   :  { %3249 = vmatpush.bf16.msrb.mxu2 %v5866_v5  ;;  %v2182_v50 = vunpack.c.h.b16 %v1837_v22  ;;  %v2176_v59 = vunpack.c.h.b16 %v1795_v39  ;;  %v2171_v61 = vunpack.c.l.b16 %v1767_v30  ;;  %v2175_v0 = vunpack.c.l.b16 %v1795_v39  ;;  %v1611_v39 = vld [vmem:[#allocation2 + $0x140] sm:$0xff] }
 0x154   :  { %v1555_v11 = vadd.f32 %v1554_v37, %v1540_v7  ;;  %v1865_v37 = vsel %vm6590_vm13, %v1860_v15, %v1864_v16  ;;  %v1844_v7 = vrot.slane %v1842_v1, 5  ;;  %v2181_v44 = vunpack.c.l.b16 %v1837_v22 }
 0x155   :  { %v1420_v20 = vpop.f32.mrf.mxu3  ;;  %v2186_v51 = vunpack.c.h.b16 %v1865_v37  ;;  %v2185_v10 = vunpack.c.l.b16 %v1865_v37  ;;  %v2228_v17 = vpack.c.b16 %v2176_v59, %v2172_v41  ;;  %v2227_v18 = vpack.c.b16 %v2175_v0, %v2171_v61  ;;  %v1620_v37 = vld [vmem:[#allocation2 + $0x188] sm:$0xff] }
 0x156   :  { %v1421_v32 = vadd.f32 %v1420_v20, %v1372_v13  ;;  %v1887_v13 = vor.u32 %v1886_v54, %v1883_v53  ;;  %v1848_v20 = vshll.u32 %v1605_v9, 16  ;;  %v1845_v5 = vor.u32 %v1844_v7, %v1841_v52 }
 0x157   :  { %v2234_v14 = vpack.c.b16 %v2186_v51, %v2182_v50  ;;  %v2233_v30 = vpack.c.b16 %v2185_v10, %v2181_v44  ;;  %v1920_v22 = vrot.slane %v1918_v43, 5  ;;  %v5882_v51 = vld [vmem:[%s7461_s2 + $0x2e0] sm:$0xff]  ;;  %v1965_v54 = vshrl.u32 %v1620_v37, 16 }
 0x158   :  { %v6695_v4 = vpop.f32.mrf.mxu0  ;;  %v1470_v35 = vadd.f32 %v6683_v26, %v1421_v32  ;;  %v1888_v31 = vrot.slane %v1887_v13, 4  ;;  %v1846_v38 = vrot.slane %v1845_v5, 4  ;;  %v1867_v0 = vshrl.u32 %v1607_v46, 16  ;;  %3347 = vmatpush.bf16.msrb.mxu0 %v5882_v51 }
 0x159   :  { %2640 = vmatmul.bf16.gmra.mxu0 %v2230_v58  ;;  %v1914_v58 = vrot.slane %v1912_v29, 5  ;;  %v1850_v29 = vrot.slane %v1848_v20, 5  ;;  %v1967_v9 = vrot.slane %v1965_v54, 4 }
 0x15a   :  { %1503 = vst [vmem:[%s7462_s3 + $0x20] sm:$0xff] %v1470_v35  ;;  %v1518_v26 = vadd.f32 %v1517_v55, %v1470_v35  ;;  %v1541_v49 = vmul.f32 %v1470_v35, %v1470_v35  ;;  %v1376_v55 = vpop.f32.mrf.mxu2  ;;  %v1616_v35 = vld [vmem:[#allocation2 + $0x168] sm:$0xff] }
 0x15b   :  { %v1915_v16 = vor.u32 %v1914_v58, %v1911_v57  ;;  %v1940_v53 = vshll.u32 %v1616_v35, 16  ;;  %v1851_v59 = vsel %vm6590_vm13, %v1846_v38, %v1850_v29 }
 0x15c   :  { %2537 = vmatmul.bf16.gmra.mxu2 %v2224_v2  ;;  %2488 = vmatmul.bf16.gmra.mxu1 %v2223_v6  ;;  %v1556_v42 = vadd.f32 %v1555_v11, %v1541_v49  ;;  %v1820_v2 = vshll.u32 %v1601_v12, 16  ;;  %v1817_v6 = vor.u32 %v1816_v34, %v1813_v45  ;;  %v1890_v11 = vshll.u32 %v1610_v56, 16  ;;  %v5858_v34 = vld [vmem:[%s7461_s2 + $0x220] sm:$0xff] }
 0x15d   :  { %2591 = vmatmul.bf16.gmra.mxu3 %v2229_v40  ;;  %v1422_v3 = vpop.f32.mrf.mxu3  ;;  %v1327_v40 = vpop.f32.mrf.mxu1  ;;  %v1916_v33 = vrot.slane %v1915_v16, 4  ;;  %v1898_v56 = vshll.u32 %v1611_v39, 16  ;;  %3200 = vmatpush.bf16.msrb.mxu1 %v5858_v34  ;;  %v2184_v16 = vunpack.c.h.b16 %v1851_v59  ;;  %v2183_v43 = vunpack.c.l.b16 %v1851_v59 }
 0x15e   :  { %v1423_v8 = vadd.f32 %v1422_v3, %v1374_v36  ;;  %v1822_v19 = vrot.slane %v1820_v2, 5  ;;  %v1818_v25 = vrot.slane %v1817_v6, 4  ;;  %v1377_v23 = vadd.f32 %v1376_v55, %v1327_v40 }
 0x15f   :  { %v1968_v36 = vshll.u32 %v1620_v37, 16  ;;  %v1870_v2 = vshll.u32 %v1607_v46, 16  ;;  %v1900_v13 = vrot.slane %v1898_v56, 5  ;;  %v1615_v46 = vld [vmem:[#allocation2 + $0x160] sm:$0xff] }
 0x160   :  { %v6721_v48 = vpop.f32.mrf.mxu0  ;;  %v1472_v15 = vadd.f32 %v6695_v4, %v1423_v8  ;;  %v1892_v4 = vrot.slane %v1890_v11, 5  ;;  %v6734_v41 = vsel %vm6590_vm13, %v1818_v25, %v1822_v19  ;;  %v1942_v8 = vrot.slane %v1940_v53, 5  ;;  %v1609_v25 = vld [vmem:[#allocation2 + $0x130] sm:$0x11]  ;;  %v1628_v53 = vld [vmem:[#allocation2 + $0x1c8] sm:$0xff] }
 0x161   :  { %v2180_v61 = vunpack.c.h.b16 %v6734_v41  ;;  %v1970_v40 = vrot.slane %v1968_v36, 5  ;;  %v2179_v44 = vunpack.c.l.b16 %v6734_v41  ;;  %v1872_v19 = vrot.slane %v1870_v2, 5 }
 0x162   :  { %1504 = vst [vmem:[%s7462_s3 + $0x28] sm:$0xff] %v1472_v15  ;;  %v1519_v27 = vadd.f32 %v1518_v26, %v1472_v15  ;;  %v1542_v28 = vmul.f32 %v1472_v15, %v1472_v15  ;;  %v1378_v45 = vpop.f32.mrf.mxu2  ;;  %v6742_v1 = vsel %vm6590_vm13, %v1888_v31, %v1892_v4  ;;  %v6746_v26 = vsel %vm6590_vm13, %v1916_v33, %v1920_v22  ;;  %v1622_v15 = vld [vmem:[#allocation2 + $0x198] sm:$0x11] }
 0x163   :  { %v2190_v6 = vunpack.c.h.b16 %v6742_v1  ;;  %v2194_v52 = vunpack.c.h.b16 %v6746_v26  ;;  %v2193_v5 = vunpack.c.l.b16 %v6746_v26  ;;  %v5865_v31 = vld [vmem:[%s7461_s2 + $0x258] sm:$0xff]  ;;  %v1971_v33 = vor.u32 %v1970_v40, %v1967_v9 }
 0x164   :  { %v1557_v32 = vadd.f32 %v1556_v42, %v1542_v28  ;;  %v1895_v42 = vshrl.u32 %v1611_v39, 16  ;;  %v2189_v28 = vunpack.c.l.b16 %v6742_v1  ;;  %v5873_v4 = vld [vmem:[%s7461_s2 + $0x298] sm:$0xff]  ;;  %v1974_v22 = vshll.u32 %v1622_v15, 16  ;;  %3250 = vmatpush.bf16.msrb.mxu2 %v5865_v31 }
 0x165   :  { %v1425_v62 = vpop.f32.mrf.mxu3  ;;  %v1329_v49 = vpop.f32.mrf.mxu1  ;;  %v2238_v20 = vpack.c.b16 %v2194_v52, %v2190_v6  ;;  %v2232_v37 = vpack.c.b16 %v2184_v16, %v2180_v61  ;;  %v2231_v38 = vpack.c.b16 %v2183_v43, %v2179_v44  ;;  %v1876_v39 = vshll.u32 %v1609_v25, 16  ;;  %3299 = vmatpush.bf16.msrb.mxu3 %v5873_v4  ;;  %v1617_v44 = vld [vmem:[#allocation2 + $0x170] sm:$0x11] }
 0x166   :  { %v1426_v63 = vadd.f32 %v1425_v62, %v1377_v23  ;;  %v1379_v3 = vadd.f32 %v1378_v45, %v1329_v49  ;;  %v1897_v10 = vrot.slane %v1895_v42, 4  ;;  %v2237_v45 = vpack.c.b16 %v2193_v5, %v2189_v28  ;;  %v1624_v49 = vld [vmem:[#allocation2 + $0x1a8] sm:$0xff]  ;;  %v1619_v42 = vld [vmem:[#allocation2 + $0x180] sm:$0xff]  ;;  %v1630_v5 = vld [vmem:[#allocation2 + $0x1d8] sm:$0x11] }
 0x167   :  { %v1972_v1 = vrot.slane %v1971_v33, 4  ;;  %v1976_v26 = vrot.slane %v1974_v22, 5  ;;  %v1878_v36 = vrot.slane %v1876_v39, 5  ;;  %v1923_v56 = vshrl.u32 %v1615_v46, 16  ;;  %v5864_v39 = vld [vmem:[%s7461_s2 + $0x250] sm:$0xff] }
 0x168   :  { %v6727_v21 = vpop.f32.mrf.mxu0  ;;  %v1475_v12 = vadd.f32 %v6721_v48, %v1426_v63  ;;  %v1937_v48 = vshrl.u32 %v1616_v35, 16  ;;  %v1901_v62 = vor.u32 %v1900_v13, %v1897_v10  ;;  %v1993_v59 = vshrl.u32 %v1624_v49, 16  ;;  %3251 = vmatpush.bf16.msrb.mxu2 %v5864_v39 }
 0x169   :  { %2645 = vmatmul.bf16.gmra.mxu0 %v2234_v14  ;;  %v1618_v14 = vld [vmem:[#allocation2 + $0x178] sm:$0x11]  ;;  %v1996_v61 = vshll.u32 %v1624_v49, 16  ;;  %v1977_v6 = vsel %vm6590_vm13, %v1972_v1, %v1976_v26  ;;  %v2021_v52 = vshrl.u32 %v1628_v53, 16  ;;  %v1954_v9 = vshll.u32 %v1619_v42, 16 }
 0x16a   :  { %1505 = vst [vmem:[%s7462_s3 + $0x30] sm:$0xff] %v1475_v12  ;;  %v1520_v57 = vadd.f32 %v1519_v27, %v1475_v12  ;;  %v1543_v58 = vmul.f32 %v1475_v12, %v1475_v12  ;;  %v1939_v55 = vrot.slane %v1937_v48, 4  ;;  %v1902_v51 = vrot.slane %v1901_v62, 4 }
 0x16b   :  { %v1925_v10 = vrot.slane %v1923_v56, 4  ;;  %v1995_v15 = vrot.slane %v1993_v59, 4  ;;  %v1998_v16 = vrot.slane %v1996_v61, 5  ;;  %v1956_v28 = vrot.slane %v1954_v9, 5  ;;  %v1632_v59 = vld [vmem:[#allocation2 + $0x1e8] sm:$0xff] }
 0x16c   :  { %2542 = vmatmul.bf16.gmra.mxu2 %v2228_v17  ;;  %2493 = vmatmul.bf16.gmra.mxu1 %v2227_v18  ;;  %v1558_v60 = vadd.f32 %v1557_v32, %v1543_v58  ;;  %v1613_v17 = vld [vmem:[#allocation2 + $0x150] sm:$0x11]  ;;  %v1869_v18 = vrot.slane %v1867_v0, 4  ;;  %v1943_v23 = vor.u32 %v1942_v8, %v1939_v55  ;;  %v1946_v32 = vshll.u32 %v1618_v14, 16  ;;  %v5857_v58 = vld [vmem:[%s7461_s2 + $0x218] sm:$0xff] }
 0x16d   :  { %2596 = vmatmul.bf16.gmra.mxu3 %v2233_v30  ;;  %v1427_v7 = vpop.f32.mrf.mxu3  ;;  %v1951_v8 = vshrl.u32 %v1619_v42, 16  ;;  %3201 = vmatpush.bf16.msrb.mxu1 %v5857_v58  ;;  %v2202_v14 = vunpack.c.h.b16 %v1977_v6  ;;  %v2201_v62 = vunpack.c.l.b16 %v1977_v6  ;;  %v1623_v6 = vld [vmem:[#allocation2 + $0x1a0] sm:$0xff] }
 0x16e   :  { %v1428_v11 = vadd.f32 %v1427_v7, %v1379_v3  ;;  %v1873_v29 = vor.u32 %v1872_v19, %v1869_v18  ;;  %v1944_v12 = vrot.slane %v1943_v23, 4  ;;  %v1948_v34 = vrot.slane %v1946_v32, 5  ;;  %v5881_v3 = vld [vmem:[%s7461_s2 + $0x2d8] sm:$0xff]  ;;  %v1621_v23 = vld [vmem:[#allocation2 + $0x190] sm:$0x11] }
 0x16f   :  { %v2024_v7 = vshll.u32 %v1628_v53, 16  ;;  %3348 = vmatpush.bf16.msrb.mxu0 %v5881_v3  ;;  %v2023_v18 = vrot.slane %v2021_v52, 4  ;;  %v1960_v26 = vshll.u32 %v1621_v23, 16  ;;  %v1627_v52 = vld [vmem:[#allocation2 + $0x1c0] sm:$0xff] }
 0x170   :  { %v6748_v50 = vpop.f32.mrf.mxu0  ;;  %v1477_v27 = vadd.f32 %v6727_v21, %v1428_v11  ;;  %v1904_v21 = vshll.u32 %v1613_v17, 16  ;;  %v1874_v54 = vrot.slane %v1873_v29, 4  ;;  %v1626_v17 = vld [vmem:[#allocation2 + $0x1b8] sm:$0x11] }
 0x171   :  { %v2026_v19 = vrot.slane %v2024_v7, 5  ;;  %v1962_v3 = vrot.slane %v1960_v26, 5  ;;  %v1625_v26 = vld [vmem:[#allocation2 + $0x1b0] sm:$0x11] }
 0x172   :  { %1506 = vst [vmem:[%s7462_s3 + $0x38] sm:$0xff] %v1477_v27  ;;  %v6776_v63 = vadd.f32 %v1520_v57, %v1477_v27  ;;  %v1544_v35 = vmul.f32 %v1477_v27, %v1477_v27  ;;  %v1906_v48 = vrot.slane %v1904_v21, 5  ;;  %v1926_v57 = vshll.u32 %v1615_v46, 16 }
 0x173   :  { %v1879_v40 = vsel %vm6590_vm13, %v1874_v54, %v1878_v36  ;;  %v1953_v27 = vrot.slane %v1951_v8, 4  ;;  %v1999_v21 = vor.u32 %v1998_v16, %v1995_v15  ;;  %v2027_v46 = vor.u32 %v2026_v19, %v2023_v18  ;;  %v5856_v8 = vld [vmem:[%s7461_s2 + $0x210] sm:$0xff] }
 0x174   :  { %v6778_v41 = vadd.f32 %v1558_v60, %v1544_v35  ;;  %v1949_v60 = vsel %vm6590_vm13, %v1944_v12, %v1948_v34  ;;  %v1907_v55 = vsel %vm6590_vm13, %v1902_v51, %v1906_v48  ;;  %v1928_v13 = vrot.slane %v1926_v57, 5  ;;  %3202 = vmatpush.bf16.msrb.mxu1 %v5856_v8 }
 0x175   :  { %v6783_v0 = vpop.f32.mrf.mxu3  ;;  %v2198_v11 = vunpack.c.h.b16 %v1949_v60  ;;  %v2192_v43 = vunpack.c.h.b16 %v1907_v55  ;;  %v2191_v25 = vunpack.c.l.b16 %v1907_v55  ;;  %v2188_v31 = vunpack.c.h.b16 %v1879_v40 }
 0x176   :  { %v2187_v4 = vunpack.c.l.b16 %v1879_v40  ;;  %v1929_v32 = vor.u32 %v1928_v13, %v1925_v10  ;;  %v2197_v33 = vunpack.c.l.b16 %v1949_v60  ;;  %v2002_v35 = vshll.u32 %v1626_v17, 16  ;;  %v1636_v60 = vld [vmem:[#allocation2 + $0x208] sm:$0xff] }
 0x177   :  { %v2242_v22 = vpack.c.b16 %v2202_v14, %v2198_v11  ;;  %v2030_v12 = vshll.u32 %v1630_v5, 16  ;;  %v1957_v1 = vor.u32 %v1956_v28, %v1953_v27  ;;  %v2236_v49 = vpack.c.b16 %v2192_v43, %v2188_v31  ;;  %v5880_v11 = vld [vmem:[%s7461_s2 + $0x2d0] sm:$0xff] }
 0x178   :  { %v6765_v30 = vpop.f32.mrf.mxu0  ;;  %v2235_v51 = vpack.c.b16 %v2191_v25, %v2187_v4  ;;  %v1930_v54 = vrot.slane %v1929_v32, 4  ;;  %v2241_v36 = vpack.c.b16 %v2201_v62, %v2197_v33  ;;  %v2000_v42 = vrot.slane %v1999_v21, 4  ;;  %3349 = vmatpush.bf16.msrb.mxu0 %v5880_v11  ;;  %v1634_v21 = vld [vmem:[#allocation2 + $0x1f8] sm:$0x11] }
 0x179   :  { %2650 = vmatmul.bf16.gmra.mxu0 %v2238_v20  ;;  %v1932_v20 = vshll.u32 %v1617_v44, 16  ;;  %v2004_v56 = vrot.slane %v2002_v35, 5  ;;  %v2028_v57 = vrot.slane %v2027_v46, 4  ;;  %v2032_v58 = vrot.slane %v2030_v12, 5  ;;  %v1638_v12 = vld [vmem:[#allocation2 + $0x218] sm:$0x11] }
 0x17a   :  { %v1958_v61 = vrot.slane %v1957_v1, 4  ;;  %v2049_v40 = vshrl.u32 %v1632_v59, 16  ;;  %v2052_v44 = vshll.u32 %v1632_v59, 16  ;;  %v2077_v15 = vshrl.u32 %v1636_v60, 16  ;;  %v5871_v59 = vld [vmem:[%s7461_s2 + $0x288] sm:$0xff] }
 0x17b   :  { %v1934_v48 = vrot.slane %v1932_v20, 5  ;;  %v6817_v9 = vsel %vm6590_vm13, %v2000_v42, %v2004_v56  ;;  %v2033_v14 = vsel %vm6590_vm13, %v2028_v57, %v2032_v58  ;;  %v2080_v16 = vshll.u32 %v1636_v60, 16 }
 0x17c   :  { %2547 = vmatmul.bf16.gmra.mxu2 %v2232_v37  ;;  %2498 = vmatmul.bf16.gmra.mxu1 %v2231_v38  ;;  %v302_v37 = vld [vmem:[#allocation2 + $0x108] sm:$0x11]  ;;  %v1963_v17 = vsel %vm6590_vm13, %v1958_v61, %v1962_v3  ;;  %v1979_v18 = vshrl.u32 %v1623_v6, 16  ;;  %v1982_v19 = vshll.u32 %v1623_v6, 16  ;;  %v2007_v25 = vshrl.u32 %v1627_v52, 16 }
 0x17d   :  { %2601 = vmatmul.bf16.gmra.mxu3 %v2237_v45  ;;  %v6798_v38 = vpop.f32.mrf.mxu3  ;;  %v5872_v45 = vld [vmem:[%s7461_s2 + $0x290] sm:$0xff]  ;;  %v303_v53 = vsel %vm6037_vm7, 0, %v302_v37  ;;  %v1935_v55 = vsel %vm6590_vm13, %v1930_v54, %v1934_v48  ;;  %v2010_v5 = vshll.u32 %v1627_v52, 16  ;;  %v2206_v4 = vunpack.c.h.b16 %v6817_v9 }
 0x17e   :  { %3300 = vmatpush.bf16.msrb.mxu3 %v5872_v45  ;;  %304 = vst [vmem:[#allocation2 + $0x108] sm:$0x11] %v303_v53  ;;  %v2196_v20 = vunpack.c.h.b16 %v1935_v55  ;;  %v2195_v28 = vunpack.c.l.b16 %v1935_v55  ;;  %v2210_v23 = vunpack.c.h.b16 %v2033_v14  ;;  %v2051_v32 = vrot.slane %v2049_v40, 4  ;;  %v1629_v48 = vld [vmem:[#allocation2 + $0x1d0] sm:$0x11] }
 0x17f   :  { %v2054_v33 = vrot.slane %v2052_v44, 5  ;;  %v2079_v35 = vrot.slane %v2077_v15, 4  ;;  %v2082_v37 = vrot.slane %v2080_v16, 5  ;;  %v2199_v39 = vunpack.c.l.b16 %v1963_v17 }
 0x180   :  { %v6785_v2 = vpop.f32.mrf.mxu0  ;;  %v1981_v45 = vrot.slane %v1979_v18, 4  ;;  %v1984_v46 = vrot.slane %v1982_v19, 5  ;;  %v2246_v53 = vpack.c.b16 %v2210_v23, %v2206_v4  ;;  %v2209_v54 = vunpack.c.l.b16 %v2033_v14 }
 0x181   :  { %v2058_v42 = vshll.u32 %v1634_v21, 16  ;;  %v2083_v61 = vor.u32 %v2082_v37, %v2079_v35  ;;  %v2086_v3 = vshll.u32 %v1638_v12, 16  ;;  %v2239_v55 = vpack.c.b16 %v2199_v39, %v2195_v28  ;;  %v1635_v28 = vld [vmem:[#allocation2 + $0x200] sm:$0xff] }
 0x182   :  { %v1985_v52 = vor.u32 %v1984_v46, %v1981_v45  ;;  %3301 = vmatpush.bf16.msrb.mxu3 %v5871_v59  ;;  %v2063_v46 = vshrl.u32 %v1635_v28, 16 }
 0x183   :  { %v2060_v44 = vrot.slane %v2058_v42, 5  ;;  %v2084_v15 = vrot.slane %v2083_v61, 4  ;;  %v2088_v16 = vrot.slane %v2086_v3, 5 }
 0x185   :  { %v6819_v13 = vpop.f32.mrf.mxu3 }
 0x188   :  { %v6800_v29 = vpop.f32.mrf.mxu0 }
 0x189   :  { %v1332_v34 = vpop.f32.mrf.mxu1  ;;  %2655 = vmatmul.bf16.gmra.mxu0 %v2242_v22  ;;  %v2200_v22 = vunpack.c.h.b16 %v1963_v17 }
 0x18b   :  { %v2240_v60 = vpack.c.b16 %v2200_v22, %v2196_v20  ;;  %v1631_v20 = vld [vmem:[#allocation2 + $0x1e0] sm:$0xff]  ;;  %v2089_v22 = vsel %vm6590_vm13, %v2084_v15, %v2088_v16 }
 0x18c   :  { %2552 = vmatmul.bf16.gmra.mxu2 %v2236_v49  ;;  %2503 = vmatmul.bf16.gmra.mxu1 %v2235_v51  ;;  %v2012_v49 = vrot.slane %v2010_v5, 5  ;;  %v2205_v51 = vunpack.c.l.b16 %v6817_v9  ;;  %v2016_v9 = vshll.u32 %v1629_v48, 16  ;;  %v2035_v35 = vshrl.u32 %v1631_v20, 16 }
 0x18d   :  { %2606 = vmatmul.bf16.gmra.mxu3 %v2241_v36  ;;  %v2055_v36 = vor.u32 %v2054_v33, %v2051_v32  ;;  %v6839_v58 = vpop.f32.mrf.mxu3  ;;  %v5879_v32 = vld [vmem:[%s7461_s2 + $0x2c8] sm:$0xff]  ;;  %v2038_v45 = vshll.u32 %v1631_v20, 16 }
 0x18e   :  { %v2245_v40 = vpack.c.b16 %v2209_v54, %v2205_v51  ;;  %3350 = vmatpush.bf16.msrb.mxu0 %v5879_v32  ;;  %v2037_v48 = vrot.slane %v2035_v35, 4  ;;  %v5246_v35 = vld [vmem:[#allocation2 + $0x48] sm:$0xf0] }
 0x18f   :  { %v1381_v7 = vpop.f32.mrf.mxu2  ;;  %v2056_v14 = vrot.slane %v2055_v36, 4  ;;  %v2065_v36 = vrot.slane %v2063_v46, 4 }
 0x190   :  { %v1382_v10 = vadd.f32 %v1381_v7, %v1332_v34  ;;  %v1988_v7 = vshll.u32 %v1625_v26, 16 }
 0x191   :  { %v1334_v43 = vpop.f32.mrf.mxu1  ;;  %v2061_v33 = vsel %vm6590_vm13, %v2056_v14, %v2060_v44 }
 0x192   :  { %v1431_v27 = vadd.f32 %v6783_v0, %v1382_v10  ;;  %v6829_v31 = vpop.f32.mrf.mxu0  ;;  %v2009_v0 = vrot.slane %v2007_v25, 4  ;;  %v1990_v17 = vrot.slane %v1988_v7, 5  ;;  %v2018_v25 = vrot.slane %v2016_v9, 5  ;;  %v5862_v7 = vld [vmem:[%s7461_s2 + $0x240] sm:$0xff] }
 0x193   :  { %v2214_v12 = vunpack.c.h.b16 %v2061_v33  ;;  %v2213_v61 = vunpack.c.l.b16 %v2061_v33 }
 0x194   :  { %v1480_v62 = vadd.f32 %v6748_v50, %v1431_v27  ;;  %v2013_v8 = vor.u32 %v2012_v49, %v2009_v0  ;;  %v2066_v0 = vshll.u32 %v1635_v28, 16  ;;  %v5854_v28 = vld [vmem:[%s7461_s2 + $0x200] sm:$0xff] }
 0x196   :  { %1507 = vst [vmem:[%s7462_s3 + $0x100] sm:$0xff] %v1480_v62  ;;  %v1522_v34 = vadd.f32 %v6776_v63, %v1480_v62  ;;  %v1545_v1 = vmul.f32 %v1480_v62, %v1480_v62  ;;  %v5863_v63 = vld [vmem:[%s7461_s2 + $0x248] sm:$0xff]  ;;  %v2014_v19 = vrot.slane %v2013_v8, 4 }
 0x197   :  { %v1383_v50 = vpop.f32.mrf.mxu2  ;;  %3252 = vmatpush.bf16.msrb.mxu2 %v5863_v63  ;;  %v2068_v63 = vrot.slane %v2066_v0, 5 }
 0x198   :  { %v1384_v56 = vadd.f32 %v1383_v50, %v1334_v43  ;;  %v1560_v57 = vadd.f32 %v6778_v41, %v1545_v1  ;;  %v1986_v43 = vrot.slane %v1985_v52, 4  ;;  %v2019_v37 = vsel %vm6590_vm13, %v2014_v19, %v2018_v25 }
 0x199   :  { %v1337_v6 = vpop.f32.mrf.mxu1  ;;  %2660 = vmatmul.bf16.gmra.mxu0 %v2246_v53  ;;  %v2208_v49 = vunpack.c.h.b16 %v2019_v37  ;;  %v2207_v50 = vunpack.c.l.b16 %v2019_v37  ;;  %v2069_v14 = vor.u32 %v2068_v63, %v2065_v36  ;;  %v5244_v36 = vld [vmem:[#allocation2 + $0x28] sm:$0xf] }
 0x19a   :  { %v1433_v41 = vadd.f32 %v6798_v38, %v1384_v56  ;;  %v6849_v11 = vpop.f32.mrf.mxu0  ;;  %v6857_v23 = vpop.f32.mrf.mxu3  ;;  %v1991_v21 = vsel %vm6590_vm13, %v1986_v43, %v1990_v17 }
 0x19b   :  { %v2204_v1 = vunpack.c.h.b16 %v1991_v21  ;;  %v2203_v51 = vunpack.c.l.b16 %v1991_v21  ;;  %3253 = vmatpush.bf16.msrb.mxu2 %v5862_v7  ;;  %v2070_v20 = vrot.slane %v2069_v14, 4  ;;  %v240_v7 = vld [vmem:[#allocation2 + $0x118] sm:$0x11] }
 0x19c   :  { %2557 = vmatmul.bf16.gmra.mxu2 %v2240_v60  ;;  %2508 = vmatmul.bf16.gmra.mxu1 %v2239_v55  ;;  %v1482_v10 = vadd.f32 %v6765_v30, %v1433_v41  ;;  %v5855_v30 = vld [vmem:[%s7461_s2 + $0x208] sm:$0xff]  ;;  %v5870_v55 = vld [vmem:[%s7461_s2 + $0x280] sm:$0xff] }
 0x19d   :  { %2611 = vmatmul.bf16.gmra.mxu3 %v2245_v40  ;;  %3203 = vmatpush.bf16.msrb.mxu1 %v5855_v30  ;;  %v2244_v41 = vpack.c.b16 %v2208_v49, %v2204_v1  ;;  %v2243_v9 = vpack.c.b16 %v2207_v50, %v2203_v51 }
 0x19e   :  { %1508 = vst [vmem:[%s7462_s3 + $0x108] sm:$0xff] %v1482_v10  ;;  %v1523_v38 = vadd.f32 %v1522_v34, %v1482_v10  ;;  %v1546_v18 = vmul.f32 %v1482_v10, %v1482_v10  ;;  %v2218_v34 = vunpack.c.h.b16 %v2089_v22  ;;  %3302 = vmatpush.bf16.msrb.mxu3 %v5870_v55 }
 0x19f   :  { %v1386_v27 = vpop.f32.mrf.mxu2 }
 0x1a0   :  { %v1387_v5 = vadd.f32 %v1386_v27, %v1337_v6  ;;  %v1561_v4 = vadd.f32 %v1560_v57, %v1546_v18  ;;  %v1633_v57 = vld [vmem:[#allocation2 + $0x1f0] sm:$0x11]  ;;  %v2250_v59 = vpack.c.b16 %v2218_v34, %v2214_v12 }
 0x1a1   :  { %v1339_v62 = vpop.f32.mrf.mxu1  ;;  %v1637_v6 = vld [vmem:[#allocation2 + $0x210] sm:$0x11]  ;;  %v2044_v10 = vshll.u32 %v1633_v57, 16  ;;  %3204 = vmatpush.bf16.msrb.mxu1 %v5854_v28  ;;  %v356_v57 = vld [vmem:[#allocation2 + $0x228] sm:$0x11] }
 0x1a2   :  { %v1436_v39 = vadd.f32 %v6819_v13, %v1387_v5  ;;  %v2040_v13 = vrot.slane %v2038_v45, 5  ;;  %v1442_v52 = vpop.f32.mrf.mxu3  ;;  %v2072_v15 = vshll.u32 %v1637_v6, 16 }
 0x1a4   :  { %v1485_v26 = vadd.f32 %v6785_v2, %v1436_v39  ;;  %v2217_v2 = vunpack.c.l.b16 %v2089_v22  ;;  %v2041_v44 = vor.u32 %v2040_v13, %v2037_v48  ;;  %v2074_v27 = vrot.slane %v2072_v15, 5  ;;  %v5827_v15 = vld [vmem:[#allocation2 + $0x6c] sm:$0xf] }
 0x1a6   :  { %1509 = vst [vmem:[%s7462_s3 + $0x110] sm:$0xff] %v1485_v26  ;;  %v1524_v53 = vadd.f32 %v1523_v38, %v1485_v26  ;;  %v1547_v54 = vmul.f32 %v1485_v26, %v1485_v26  ;;  %v6875_v42 = vpop.f32.mrf.mxu0  ;;  %v2249_v16 = vpack.c.b16 %v2217_v2, %v2213_v61  ;;  %v2042_v18 = vrot.slane %v2041_v44, 4  ;;  %v5909_v61 = vld [vmem:[%s7461_s2 + $0x3b8] sm:$0xff] }
 0x1a7   :  { %v1388_v56 = vpop.f32.mrf.mxu2  ;;  %v357_v2 = vsel %vm6037_vm7, 0, %v356_v57  ;;  %4465 = vmatpush.bf16.msra.mxu3 %v5909_v61  ;;  %v5254_v57 = vld [vmem:[#allocation2 + $0x80] sm:$0xf0]  ;;  %v5276_v61 = vld [vmem:[#allocation2 + $0xa8] sm:$0xf] }
 0x1a8   :  { %v1389_v3 = vadd.f32 %v1388_v56, %v1339_v62  ;;  %v1562_v60 = vadd.f32 %v1561_v4, %v1547_v54  ;;  %v5878_v4 = vld [vmem:[%s7461_s2 + $0x2c0] sm:$0xff]  ;;  %v2075_v62 = vsel %vm6590_vm13, %v2070_v20, %v2074_v27  ;;  %358 = vst [vmem:[#allocation2 + $0x228] sm:$0x11] %v357_v2  ;;  %v5260_v27 = vld [vmem:[#allocation2 + $0x68] sm:$0xf] }
 0x1a9   :  { %v1342_v8 = vpop.f32.mrf.mxu1  ;;  %2665 = vmatmul.bf16.gmra.mxu0 %v2250_v59  ;;  %v2216_v45 = vunpack.c.h.b16 %v2075_v62  ;;  %v2215_v12 = vunpack.c.l.b16 %v2075_v62  ;;  %v5901_v59 = vld [vmem:[%s7461_s2 + $0x378] sm:$0xff] }
 0x1aa   :  { %v1438_v40 = vadd.f32 %v6839_v58, %v1389_v3  ;;  %v2046_v58 = vrot.slane %v2044_v10, 5  ;;  %3351 = vmatpush.bf16.msrb.mxu0 %v5878_v4  ;;  %4416 = vmatpush.bf16.msra.mxu2 %v5901_v59  ;;  %v241_v10 = vsel %vm6037_vm7, 0, %v240_v7  ;;  %v5908_v4 = vld [vmem:[%s7461_s2 + $0x3b0] sm:$0xff] }
 0x1ab   :  { %242 = vst [vmem:[#allocation2 + $0x118] sm:$0x11] %v241_v10  ;;  %4466 = vmatpush.bf16.msra.mxu3 %v5908_v4 }
 0x1ac   :  { %2562 = vmatmul.bf16.gmra.mxu2 %v2244_v41  ;;  %2513 = vmatmul.bf16.gmra.mxu1 %v2243_v9  ;;  %v1487_v43 = vadd.f32 %v6800_v29, %v1438_v40  ;;  %v2047_v33 = vsel %vm6590_vm13, %v2042_v18, %v2046_v58  ;;  %v5917_v9 = vld [vmem:[%s7461_s2 + $0x3f8] sm:$0xff]  ;;  %v5238_v58 = vld [vmem:[#allocation2 + $0x40] sm:$0xf0] }
 0x1ad   :  { %2616 = vmatmul.bf16.gmra.mxu3 %v2249_v16  ;;  %v2212_v37 = vunpack.c.h.b16 %v2047_v33  ;;  %v2211_v39 = vunpack.c.l.b16 %v2047_v33  ;;  %v5262_v16 = vld [vmem:[#allocation2 + $0x88] sm:$0xf0] }
 0x1ae   :  { %1510 = vst [vmem:[%s7462_s3 + $0x118] sm:$0xff] %v1487_v43  ;;  %v1525_v17 = vadd.f32 %v1524_v53, %v1487_v43  ;;  %v1548_v38 = vmul.f32 %v1487_v43, %v1487_v43  ;;  %v6888_v19 = vpop.f32.mrf.mxu0  ;;  %4514 = vmatpush.bf16.msra.mxu0 %v5917_v9  ;;  %v5265_v20 = vor.u32 %v5827_v15, %v5262_v16 }
 0x1af   :  { %v1391_v25 = vpop.f32.mrf.mxu2  ;;  %v2248_v53 = vpack.c.b16 %v2216_v45, %v2212_v37  ;;  %v2247_v54 = vpack.c.b16 %v2215_v12, %v2211_v39 }
 0x1b0   :  { %v1392_v30 = vadd.f32 %v1391_v25, %v1342_v8  ;;  %v1563_v29 = vadd.f32 %v1562_v60, %v1548_v38  ;;  %v1445_v5 = vpop.f32.mrf.mxu3  ;;  %v5824_v25 = vld [vmem:[#allocation2 + $0x3c] sm:$0xf0] }
 0x1b1   :  { %v1344_v32 = vpop.f32.mrf.mxu1 }
 0x1b2   :  { %v1441_v22 = vadd.f32 %v6857_v23, %v1392_v30  ;;  %v5823_v23 = vld [vmem:[#allocation2 + $0x2c] sm:$0xf]  ;;  %v410_v37 = vld [vmem:[#allocation2 + $0x118] sm:$0x11] }
 0x1b3   :  { %v5249_v26 = vor.u32 %v5823_v23, %v5246_v35  ;;  %v411_v45 = vsel %vm6037_vm7, 0, %v410_v37  ;;  %v5292_v37 = vld [vmem:[#allocation2 + $0xe8] sm:$0xf] }
 0x1b4   :  { %v1490_v21 = vadd.f32 %v6829_v31, %v1441_v22  ;;  %v5825_v31 = vld [vmem:[#allocation2 + $0x44] sm:$0xf0]  ;;  %v5236_v22 = vld [vmem:[#allocation2 + $0x20] sm:$0xf]  ;;  %412 = vst [vmem:[#allocation2 + $0x118] sm:$0x11] %v411_v45 }
 0x1b5   :  { %v5245_v56 = vor.u32 %v5825_v31, %v5244_v36 }
 0x1b6   :  { %1511 = vst [vmem:[%s7462_s3 + $0x120] sm:$0xff] %v1490_v21  ;;  %v1526_v46 = vadd.f32 %v1525_v17, %v1490_v21  ;;  %v1549_v0 = vmul.f32 %v1490_v21, %v1490_v21  ;;  %v6905_v34 = vpop.f32.mrf.mxu0  ;;  %v5237_v21 = vor.u32 %v5824_v25, %v5236_v22 }
 0x1b7   :  { %v1393_v1 = vpop.f32.mrf.mxu2 }
 0x1b8   :  { %v1394_v49 = vadd.f32 %v1393_v1, %v1344_v32  ;;  %v1564_v51 = vadd.f32 %v1563_v29, %v1549_v0  ;;  %v1447_v50 = vpop.f32.mrf.mxu3  ;;  %v5822_v32 = vld [vmem:[#allocation2 + $0x24] sm:$0xf] }
 0x1b9   :  { %v1347_v48 = vpop.f32.mrf.mxu1  ;;  %3352 = vmatmul.bf16.vlgmr.msrb.gmra.mxu0 %v5249_v26  ;;  %v5241_v62 = vor.u32 %v5822_v32, %v5238_v58  ;;  %v5892_v26 = vld [vmem:[%s7461_s2 + $0x330] sm:$0xff] }
 0x1ba   :  { %v1443_v13 = vadd.f32 %v1442_v52, %v1394_v49  ;;  %v5893_v52 = vld [vmem:[%s7461_s2 + $0x338] sm:$0xff] }
 0x1bb   :  { %4367 = vmatpush.bf16.msra.mxu1 %v5893_v52  ;;  %v5826_v52 = vld [vmem:[#allocation2 + $0x64] sm:$0xf] }
 0x1bc   :  { %2567 = vmatmul.bf16.gmra.mxu2 %v2248_v53  ;;  %2518 = vmatmul.bf16.gmra.mxu1 %v2247_v54  ;;  %v1492_v63 = vadd.f32 %v6849_v11, %v1443_v13  ;;  %v5831_v54 = vld [vmem:[#allocation2 + $0xac] sm:$0xf] }
 0x1bd   :  { %3303 = vmatmul.bf16.vlgmr.msrb.gmra.mxu3 %v5245_v56  ;;  %v5278_v13 = vld [vmem:[#allocation2 + $0xc8] sm:$0xf0] }
 0x1be   :  { %1512 = vst [vmem:[%s7462_s3 + $0x128] sm:$0xff] %v1492_v63  ;;  %v1527_v3 = vadd.f32 %v1526_v46, %v1492_v63  ;;  %v1550_v60 = vmul.f32 %v1492_v63, %v1492_v63  ;;  %v6919_v11 = vpop.f32.mrf.mxu0  ;;  %v5828_v63 = vld [vmem:[#allocation2 + $0x7c] sm:$0xf0]  ;;  %v5281_v59 = vor.u32 %v5831_v54, %v5278_v13 }
 0x1bf   :  { %v1396_v6 = vpop.f32.mrf.mxu2  ;;  %4368 = vmatpush.bf16.msra.mxu1 %v5892_v26 }
 0x1c0   :  { %v1397_v55 = vadd.f32 %v1396_v6, %v1347_v48  ;;  %v1565_v41 = vadd.f32 %v1564_v51, %v1550_v60  ;;  %v2582_v8 = vpop.f32.mrf.mxu3  ;;  %v5899_v60 = vld [vmem:[%s7461_s2 + $0x368] sm:$0xff] }
 0x1c1   :  { %v1349_v40 = vpop.f32.mrf.mxu1  ;;  %v5907_v6 = vld [vmem:[%s7461_s2 + $0x3a8] sm:$0xff] }
 0x1c2   :  { %v1446_v44 = vadd.f32 %v1445_v5, %v1397_v55  ;;  %v5829_v5 = vld [vmem:[#allocation2 + $0x84] sm:$0xf0]  ;;  %v5252_v55 = vld [vmem:[#allocation2 + $0x60] sm:$0xf]  ;;  %4467 = vmatpush.bf16.msra.mxu3 %v5907_v6  ;;  %v5310_v6 = vld [vmem:[#allocation2 + $0x168] sm:$0xf0] }
 0x1c3   :  { %v5261_v39 = vor.u32 %v5829_v5, %v5260_v27  ;;  %v5270_v5 = vld [vmem:[#allocation2 + $0xc0] sm:$0xf0] }
 0x1c4   :  { %v1495_v14 = vadd.f32 %v6875_v42, %v1446_v44  ;;  %v5900_v42 = vld [vmem:[%s7461_s2 + $0x370] sm:$0xff] }
 0x1c5   :  { %4417 = vmatpush.bf16.msra.mxu2 %v5900_v42  ;;  %v5830_v42 = vld [vmem:[#allocation2 + $0xa4] sm:$0xf] }
 0x1c6   :  { %1513 = vst [vmem:[%s7462_s3 + $0x130] sm:$0xff] %v1495_v14  ;;  %v1528_v43 = vadd.f32 %v1527_v3, %v1495_v14  ;;  %v1551_v17 = vmul.f32 %v1495_v14, %v1495_v14  ;;  %v6933_v38 = vpop.f32.mrf.mxu0 }
 0x1c7   :  { %v1398_v18 = vpop.f32.mrf.mxu2 }
 0x1c8   :  { %v1399_v28 = vadd.f32 %v1398_v18, %v1349_v40  ;;  %v1566_v30 = vadd.f32 %v1565_v41, %v1551_v17  ;;  %v2584_v29 = vpop.f32.mrf.mxu3  ;;  %v5257_v41 = vor.u32 %v5826_v52, %v5254_v57  ;;  %v5891_v17 = vld [vmem:[%s7461_s2 + $0x328] sm:$0xff]  ;;  %v5890_v57 = vld [vmem:[%s7461_s2 + $0x320] sm:$0xff] }
 0x1c9   :  { %v2484_v33 = vpop.f32.mrf.mxu1  ;;  %3357 = vmatmul.bf16.gmra.mxu0 %v5265_v20  ;;  %4418 = vmatpush.bf16.msra.mxu2 %v5899_v60  ;;  %v5834_v52 = vld [vmem:[#allocation2 + $0xe4] sm:$0xf] }
 0x1ca   :  { %v1448_v35 = vadd.f32 %v1447_v50, %v1399_v28  ;;  %v5916_v50 = vld [vmem:[%s7461_s2 + $0x3f0] sm:$0xff]  ;;  %4369 = vmatpush.bf16.msra.mxu1 %v5891_v17  ;;  %v5897_v17 = vld [vmem:[%s7461_s2 + $0x358] sm:$0xff] }
 0x1cb   :  { %4515 = vmatpush.bf16.msra.mxu0 %v5916_v50 }
 0x1cc   :  { %3254 = vmatmul.bf16.vlgmr.msrb.gmra.mxu2 %v5241_v62  ;;  %3205 = vmatmul.bf16.vlgmr.msrb.gmra.mxu1 %v5237_v21  ;;  %v1497_v46 = vadd.f32 %v6888_v19, %v1448_v35  ;;  %v5268_v62 = vld [vmem:[#allocation2 + $0xa0] sm:$0xf] }
 0x1cd   :  { %3308 = vmatmul.bf16.gmra.mxu3 %v5261_v39  ;;  %v5832_v21 = vld [vmem:[#allocation2 + $0xbc] sm:$0xf0] }
 0x1ce   :  { %1514 = vst [vmem:[%s7462_s3 + $0x138] sm:$0xff] %v1497_v46  ;;  %v6947_v0 = vadd.f32 %v1528_v43, %v1497_v46  ;;  %v1552_v12 = vmul.f32 %v1497_v46, %v1497_v46  ;;  %v6949_v23 = vpop.f32.mrf.mxu0  ;;  %v5898_v46 = vld [vmem:[%s7461_s2 + $0x360] sm:$0xff]  ;;  %4370 = vmatpush.bf16.msra.mxu1 %v5890_v57 }
 0x1cf   :  { %v2533_v1 = vpop.f32.mrf.mxu2  ;;  %4419 = vmatpush.bf16.msra.mxu2 %v5898_v46  ;;  %v5326_v46 = vld [vmem:[#allocation2 + $0x1a8] sm:$0xf0] }
 0x1d0   :  { %v2534_v49 = vadd.f32 %v2533_v1, %v2484_v33  ;;  %v6954_v51 = vadd.f32 %v1566_v30, %v1552_v12  ;;  %v2587_v19 = vpop.f32.mrf.mxu3  ;;  %v5835_v30 = vld [vmem:[#allocation2 + $0xec] sm:$0xf]  ;;  %v5837_v12 = vld [vmem:[#allocation2 + $0x104] sm:$0xf0]  ;;  %v5906_v1 = vld [vmem:[%s7461_s2 + $0x3a0] sm:$0xff] }
 0x1d1   :  { %v2486_v31 = vpop.f32.mrf.mxu1  ;;  %4468 = vmatpush.bf16.msra.mxu3 %v5906_v1 }
 0x1d2   :  { %v2583_v48 = vadd.f32 %v2582_v8, %v2534_v49  ;;  %v5253_v8 = vor.u32 %v5828_v63, %v5252_v55  ;;  %v5273_v49 = vor.u32 %v5830_v42, %v5270_v5 }
 0x1d3   :  { %4420 = vmatpush.bf16.msra.mxu2 %v5897_v17 }
 0x1d4   :  { %v2632_v53 = vadd.f32 %v6905_v34, %v2583_v48  ;;  %v5833_v34 = vld [vmem:[#allocation2 + $0xc4] sm:$0xf0] }
 0x1d5   :  { %v5277_v40 = vor.u32 %v5833_v34, %v5276_v61  ;;  %v5839_v34 = vld [vmem:[#allocation2 + $0x14c] sm:$0xf] }
 0x1d6   :  { %5154 = vst [vmem:[%s7462_s3 + $0x40] sm:$0xff] %v2632_v53  ;;  %v6963_v36 = vpop.f32.mrf.mxu0  ;;  %v2710_v10 = vmul.f32 %v2632_v53, %v2632_v53 }
 0x1d7   :  { %v2535_v56 = vpop.f32.mrf.mxu2 }
 0x1d8   :  { %v2536_v2 = vadd.f32 %v2535_v56, %v2486_v31  ;;  %v2589_v3 = vpop.f32.mrf.mxu3  ;;  %v5293_v31 = vor.u32 %v5837_v12, %v5292_v37  ;;  %v5838_v12 = vld [vmem:[#allocation2 + $0x144] sm:$0xf] }
 0x1d9   :  { %v2489_v7 = vpop.f32.mrf.mxu1  ;;  %3362 = vmatmul.bf16.gmra.mxu0 %v5281_v59 }
 0x1da   :  { %v2585_v9 = vadd.f32 %v2584_v29, %v2536_v2  ;;  %v5294_v29 = vld [vmem:[#allocation2 + $0x108] sm:$0xf0] }
 0x1db   :  { %v5297_v35 = vor.u32 %v5835_v30, %v5294_v29 }
 0x1dc   :  { %3259 = vmatmul.bf16.gmra.mxu2 %v5257_v41  ;;  %3210 = vmatmul.bf16.gmra.mxu1 %v5253_v8  ;;  %v2634_v44 = vadd.f32 %v6919_v11, %v2585_v9  ;;  %v5915_v11 = vld [vmem:[%s7461_s2 + $0x3e8] sm:$0xff] }
 0x1dd   :  { %3313 = vmatmul.bf16.gmra.mxu3 %v5277_v40  ;;  %4516 = vmatpush.bf16.msra.mxu0 %v5915_v11  ;;  %v5284_v40 = vld [vmem:[#allocation2 + $0xe0] sm:$0xf] }
 0x1de   :  { %5155 = vst [vmem:[%s7462_s3 + $0x48] sm:$0xff] %v2634_v44  ;;  %v2688_v14 = vadd.f32 %v2634_v44, %v2632_v53  ;;  %v2711_v15 = vmul.f32 %v2634_v44, %v2634_v44  ;;  %v6975_v16 = vpop.f32.mrf.mxu0  ;;  %v5836_v44 = vld [vmem:[#allocation2 + $0xfc] sm:$0xf0] }
 0x1df   :  { %v2538_v43 = vpop.f32.mrf.mxu2 }
 0x1e0   :  { %v2539_v18 = vadd.f32 %v2538_v43, %v2489_v7  ;;  %v2726_v58 = vadd.f32 %v2711_v15, %v2710_v10  ;;  %v2592_v25 = vpop.f32.mrf.mxu3  ;;  %v5286_v7 = vld [vmem:[#allocation2 + $0x100] sm:$0xf0]  ;;  %v5313_v10 = vor.u32 %v5839_v34, %v5310_v6 }
 0x1e1   :  { %v2491_v20 = vpop.f32.mrf.mxu1  ;;  %v5289_v11 = vor.u32 %v5834_v52, %v5286_v7 }
 0x1e2   :  { %v2588_v27 = vadd.f32 %v2587_v19, %v2539_v18  ;;  %v5269_v19 = vor.u32 %v5832_v21, %v5268_v62  ;;  %v5841_v18 = vld [vmem:[#allocation2 + $0x164] sm:$0xf0] }
 0x1e4   :  { %v2637_v28 = vadd.f32 %v6933_v38, %v2588_v27 }
 0x1e6   :  { %5156 = vst [vmem:[%s7462_s3 + $0x50] sm:$0xff] %v2637_v28  ;;  %v2689_v4 = vadd.f32 %v2688_v14, %v2637_v28  ;;  %v2712_v32 = vmul.f32 %v2637_v28, %v2637_v28  ;;  %v6987_v33 = vpop.f32.mrf.mxu0  ;;  %v5308_v14 = vld [vmem:[#allocation2 + $0x148] sm:$0xf] }
 0x1e7   :  { %v2540_v22 = vpop.f32.mrf.mxu2  ;;  %v5309_v28 = vor.u32 %v5841_v18, %v5308_v14 }
 0x1e8   :  { %v2541_v39 = vadd.f32 %v2540_v22, %v2491_v20  ;;  %v2727_v45 = vadd.f32 %v2726_v58, %v2712_v32  ;;  %v2594_v38 = vpop.f32.mrf.mxu3  ;;  %v5905_v58 = vld [vmem:[%s7461_s2 + $0x398] sm:$0xff]  ;;  %v5285_v20 = vor.u32 %v5836_v44, %v5284_v40  ;;  %v5888_v44 = vld [vmem:[%s7461_s2 + $0x310] sm:$0xff] }
 0x1e9   :  { %v2494_v26 = vpop.f32.mrf.mxu1  ;;  %3367 = vmatmul.bf16.gmra.mxu0 %v5297_v35  ;;  %4469 = vmatpush.bf16.msra.mxu3 %v5905_v58  ;;  %v5889_v32 = vld [vmem:[%s7461_s2 + $0x318] sm:$0xff]  ;;  %v5847_v58 = vld [vmem:[#allocation2 + $0x1cc] sm:$0xf] }
 0x1ea   :  { %v2590_v50 = vadd.f32 %v2589_v3, %v2541_v39  ;;  %4371 = vmatpush.bf16.msra.mxu1 %v5889_v32  ;;  %v248_v39 = vld [vmem:[#allocation2 + $0x238] sm:$0x11]  ;;  %v5340_v32 = vld [vmem:[#allocation2 + $0x1c8] sm:$0xf] }
 0x1eb   :  { %v249_v1 = vsel %vm6037_vm7, 0, %v248_v39 }
 0x1ec   :  { %3264 = vmatmul.bf16.gmra.mxu2 %v5273_v49  ;;  %3215 = vmatmul.bf16.gmra.mxu1 %v5269_v19  ;;  %v2639_v48 = vadd.f32 %v6949_v23, %v2590_v50  ;;  %v5914_v23 = vld [vmem:[%s7461_s2 + $0x3e0] sm:$0xff]  ;;  %250 = vst [vmem:[#allocation2 + $0x238] sm:$0x11] %v249_v1 }
 0x1ed   :  { %3318 = vmatmul.bf16.gmra.mxu3 %v5293_v31  ;;  %4517 = vmatpush.bf16.msra.mxu0 %v5914_v23  ;;  %v5300_v50 = vld [vmem:[#allocation2 + $0x140] sm:$0xf]  ;;  %v5904_v23 = vld [vmem:[%s7461_s2 + $0x390] sm:$0xff] }
 0x1ee   :  { %5157 = vst [vmem:[%s7462_s3 + $0x58] sm:$0xff] %v2639_v48  ;;  %v2690_v53 = vadd.f32 %v2689_v4, %v2639_v48  ;;  %v2713_v54 = vmul.f32 %v2639_v48, %v2639_v48  ;;  %v6999_v13 = vpop.f32.mrf.mxu0  ;;  %4470 = vmatpush.bf16.msra.mxu3 %v5904_v23  ;;  %4372 = vmatpush.bf16.msra.mxu1 %v5888_v44  ;;  %v7087_v23 = vld [vmem:[#allocation2 + $0x30] sm:$0x11] }
 0x1ef   :  { %v2543_v56 = vpop.f32.mrf.mxu2 }
 0x1f0   :  { %v2544_v63 = vadd.f32 %v2543_v56, %v2494_v26  ;;  %v2728_v59 = vadd.f32 %v2727_v45, %v2713_v54  ;;  %v2597_v61 = vpop.f32.mrf.mxu3  ;;  %v5302_v26 = vld [vmem:[#allocation2 + $0x160] sm:$0xf0] }
 0x1f1   :  { %v2496_v2 = vpop.f32.mrf.mxu1 }
 0x1f2   :  { %v2593_v3 = vadd.f32 %v2592_v25, %v2544_v63 }
 0x1f4   :  { %v2642_v60 = vadd.f32 %v6963_v36, %v2593_v3  ;;  %v5305_v3 = vor.u32 %v5838_v12, %v5302_v26  ;;  %v3475_v12 = vld [vmem:[#allocation2 + $0x48] sm:$0xff] }
 0x1f6   :  { %5158 = vst [vmem:[%s7462_s3 + $0x60] sm:$0xff] %v2642_v60  ;;  %v2691_v55 = vadd.f32 %v2690_v53, %v2642_v60  ;;  %v2714_v41 = vmul.f32 %v2642_v60, %v2642_v60  ;;  %v7011_v8 = vpop.f32.mrf.mxu0  ;;  %v5840_v53 = vld [vmem:[#allocation2 + $0x15c] sm:$0xf0] }
 0x1f7   :  { %v2545_v9 = vpop.f32.mrf.mxu2  ;;  %v5301_v60 = vor.u32 %v5840_v53, %v5300_v50  ;;  %v3471_v50 = vld [vmem:[#allocation2 + $0x28] sm:$0xff]  ;;  %v3580_v53 = vshll.u32 %v3475_v12, 16 }
 0x1f8   :  { %v2546_v15 = vadd.f32 %v2545_v9, %v2496_v2  ;;  %v2729_v43 = vadd.f32 %v2728_v59, %v2714_v41  ;;  %v2599_v36 = vpop.f32.mrf.mxu3  ;;  %v5896_v59 = vld [vmem:[%s7461_s2 + $0x350] sm:$0xff]  ;;  %v464_v9 = vld [vmem:[#allocation2 + $0x238] sm:$0x11] }
 0x1f9   :  { %v2499_v25 = vpop.f32.mrf.mxu1  ;;  %3372 = vmatmul.bf16.gmra.mxu0 %v5313_v10  ;;  %4421 = vmatpush.bf16.msra.mxu2 %v5896_v59  ;;  %v465_v10 = vsel %vm6037_vm7, 0, %v464_v9  ;;  %v5911_v59 = vld [vmem:[%s7461_s2 + $0x3c8] sm:$0xff] }
 0x1fa   :  { %v2595_v27 = vadd.f32 %v2594_v38, %v2546_v15  ;;  %v5843_v38 = vld [vmem:[#allocation2 + $0x18c] sm:$0xf]  ;;  %466 = vst [vmem:[#allocation2 + $0x238] sm:$0x11] %v465_v10  ;;  %v3544_v10 = vshll.u32 %v7087_v23, 16 }
 0x1fb   :  { %v5329_v54 = vor.u32 %v5843_v38, %v5326_v46  ;;  %v5851_v9 = vld [vmem:[#allocation2 + $0x20c] sm:$0xf] }
 0x1fc   :  { %3269 = vmatmul.bf16.gmra.mxu2 %v5289_v11  ;;  %3220 = vmatmul.bf16.gmra.mxu1 %v5285_v20  ;;  %v2644_v30 = vadd.f32 %v6975_v16, %v2595_v27  ;;  %v5913_v16 = vld [vmem:[%s7461_s2 + $0x3d8] sm:$0xff]  ;;  %v5842_v11 = vld [vmem:[#allocation2 + $0x184] sm:$0xf]  ;;  %v3546_v23 = vrot.slane %v3544_v10, 5 }
 0x1fd   :  { %3323 = vmatmul.bf16.gmra.mxu3 %v5309_v28  ;;  %4518 = vmatpush.bf16.msra.mxu0 %v5913_v16  ;;  %v5318_v20 = vld [vmem:[#allocation2 + $0x1a0] sm:$0xf0]  ;;  %v5849_v16 = vld [vmem:[#allocation2 + $0x1e4] sm:$0xf0] }
 0x1fe   :  { %5159 = vst [vmem:[%s7462_s3 + $0x68] sm:$0xff] %v2644_v30  ;;  %v2692_v29 = vadd.f32 %v2691_v55, %v2644_v30  ;;  %v2715_v42 = vmul.f32 %v2644_v30, %v2644_v30  ;;  %v7023_v5 = vpop.f32.mrf.mxu0  ;;  %v5321_v39 = vor.u32 %v5842_v11, %v5318_v20  ;;  %v5341_v46 = vor.u32 %v5849_v16, %v5340_v32  ;;  %v5853_v16 = vld [vmem:[#allocation2 + $0x224] sm:$0xf0] }
 0x1ff   :  { %v2548_v4 = vpop.f32.mrf.mxu2 }
 0x200   :  { %v2549_v22 = vadd.f32 %v2548_v4, %v2499_v25  ;;  %v2730_v62 = vadd.f32 %v2729_v43, %v2715_v42  ;;  %v2602_v21 = vpop.f32.mrf.mxu3  ;;  %v5912_v43 = vld [vmem:[%s7461_s2 + $0x3d0] sm:$0xff]  ;;  %v5342_v25 = vld [vmem:[#allocation2 + $0x1e8] sm:$0xf0]  ;;  %v5844_v42 = vld [vmem:[#allocation2 + $0x19c] sm:$0xf0] }
 0x201   :  { %v2501_v35 = vpop.f32.mrf.mxu1  ;;  %4519 = vmatpush.bf16.msra.mxu0 %v5912_v43  ;;  %v5345_v4 = vor.u32 %v5847_v58, %v5342_v25  ;;  %v5846_v58 = vld [vmem:[#allocation2 + $0x1c4] sm:$0xf] }
 0x202   :  { %v2598_v37 = vadd.f32 %v2597_v61, %v2549_v22  ;;  %v5845_v61 = vld [vmem:[#allocation2 + $0x1a4] sm:$0xf0] }
 0x204   :  { %v2647_v45 = vadd.f32 %v6987_v33, %v2598_v37  ;;  %v5324_v33 = vld [vmem:[#allocation2 + $0x188] sm:$0xf] }
 0x205   :  { %v5325_v6 = vor.u32 %v5845_v61, %v5324_v33  ;;  %v5887_v33 = vld [vmem:[%s7461_s2 + $0x308] sm:$0xff]  ;;  %4520 = vmatpush.bf16.msra.mxu0 %v5911_v59 }
 0x206   :  { %5160 = vst [vmem:[%s7462_s3 + $0x70] sm:$0xff] %v2647_v45  ;;  %v2693_v49 = vadd.f32 %v2692_v29, %v2647_v45  ;;  %v2716_v19 = vmul.f32 %v2647_v45, %v2647_v45  ;;  %v7037_v31 = vpop.f32.mrf.mxu0  ;;  %v5316_v29 = vld [vmem:[#allocation2 + $0x180] sm:$0xf]  ;;  %4373 = vmatpush.bf16.msra.mxu1 %v5887_v33  ;;  %v3479_v59 = vld [vmem:[#allocation2 + $0x68] sm:$0xff] }
 0x207   :  { %v2550_v48 = vpop.f32.mrf.mxu2  ;;  %v5317_v45 = vor.u32 %v5844_v42, %v5316_v29  ;;  %v5848_v29 = vld [vmem:[#allocation2 + $0x1dc] sm:$0xf0]  ;;  %v3605_v10 = vshrl.u32 %v3479_v59, 16 }
 0x208   :  { %v2551_v56 = vadd.f32 %v2550_v48, %v2501_v35  ;;  %v2731_v57 = vadd.f32 %v2730_v62, %v2716_v19  ;;  %v2604_v63 = vpop.f32.mrf.mxu3  ;;  %v5903_v35 = vld [vmem:[%s7461_s2 + $0x388] sm:$0xff]  ;;  %v3577_v48 = vshrl.u32 %v3475_v12, 16 }
 0x209   :  { %v2504_v2 = vpop.f32.mrf.mxu1  ;;  %3377 = vmatmul.bf16.gmra.mxu0 %v5329_v54  ;;  %4471 = vmatpush.bf16.msra.mxu3 %v5903_v35  ;;  %v5902_v35 = vld [vmem:[%s7461_s2 + $0x380] sm:$0xff] }
 0x20a   :  { %v2600_v34 = vadd.f32 %v2599_v36, %v2551_v56  ;;  %v3470_v56 = vld [vmem:[#allocation2 + $0x20] sm:$0xff] }
 0x20b   :  { %v3538_v44 = vshll.u32 %v3470_v56, 16 }
 0x20c   :  { %3274 = vmatmul.bf16.gmra.mxu2 %v5305_v3  ;;  %3225 = vmatmul.bf16.gmra.mxu1 %v5301_v60  ;;  %v2649_v52 = vadd.f32 %v6999_v13, %v2600_v34  ;;  %v3552_v3 = vshll.u32 %v3471_v50, 16  ;;  %v3474_v34 = vld [vmem:[#allocation2 + $0x40] sm:$0xff] }
 0x20d   :  { %3328 = vmatmul.bf16.gmra.mxu3 %v5325_v6  ;;  %v3535_v6 = vshrl.u32 %v3470_v56, 16  ;;  %v3566_v43 = vshll.u32 %v3474_v34, 16 }
 0x20e   :  { %5161 = vst [vmem:[%s7462_s3 + $0x78] sm:$0xff] %v2649_v52  ;;  %v2694_v7 = vadd.f32 %v2693_v49, %v2649_v52  ;;  %v2717_v55 = vmul.f32 %v2649_v52, %v2649_v52  ;;  %v7049_v41 = vpop.f32.mrf.mxu0  ;;  %v3579_v52 = vrot.slane %v3577_v48, 4  ;;  %4472 = vmatpush.bf16.msra.mxu3 %v5902_v35 }
 0x20f   :  { %v2553_v40 = vpop.f32.mrf.mxu2  ;;  %v3537_v20 = vrot.slane %v3535_v6, 4  ;;  %v3568_v12 = vrot.slane %v3566_v43, 5 }
 0x210   :  { %v2554_v14 = vadd.f32 %v2553_v40, %v2504_v2  ;;  %v2732_v13 = vadd.f32 %v2731_v57, %v2717_v55  ;;  %v2607_v15 = vpop.f32.mrf.mxu3  ;;  %v3549_v2 = vshrl.u32 %v3471_v50, 16  ;;  %v5358_v40 = vld [vmem:[#allocation2 + $0x228] sm:$0xf0] }
 0x211   :  { %v2506_v36 = vpop.f32.mrf.mxu1  ;;  %v5361_v42 = vor.u32 %v5851_v9, %v5358_v40  ;;  %v5886_v9 = vld [vmem:[%s7461_s2 + $0x300] sm:$0xff] }
 0x212   :  { %v2603_v17 = vadd.f32 %v2602_v21, %v2554_v14  ;;  %v5895_v21 = vld [vmem:[%s7461_s2 + $0x348] sm:$0xff]  ;;  %v3473_v14 = vld [vmem:[#allocation2 + $0x38] sm:$0x11]  ;;  %4374 = vmatpush.bf16.msra.mxu1 %v5886_v9 }
 0x213   :  { %4422 = vmatpush.bf16.msra.mxu2 %v5895_v21  ;;  %v5894_v21 = vld [vmem:[%s7461_s2 + $0x340] sm:$0xff] }
 0x214   :  { %v2652_v18 = vadd.f32 %v7011_v8, %v2603_v17  ;;  %v3551_v17 = vrot.slane %v3549_v2, 4 }
 0x216   :  { %5162 = vst [vmem:[%s7462_s3 + $0x140] sm:$0xff] %v2652_v18  ;;  %v2695_v24 = vadd.f32 %v2694_v7, %v2652_v18  ;;  %v2718_v27 = vmul.f32 %v2652_v18, %v2652_v18  ;;  %v7063_v28 = vpop.f32.mrf.mxu0  ;;  %v3582_v7 = vrot.slane %v3580_v53, 5  ;;  %v3554_v18 = vrot.slane %v3552_v3, 5 }
 0x217   :  { %v2555_v30 = vpop.f32.mrf.mxu2  ;;  %4423 = vmatpush.bf16.msra.mxu2 %v5894_v21 }
 0x218   :  { %v2556_v22 = vadd.f32 %v2555_v30, %v2506_v36  ;;  %v2733_v62 = vadd.f32 %v2732_v13, %v2718_v27  ;;  %v7065_v8 = vpop.f32.mrf.mxu3  ;;  %v3563_v13 = vshrl.u32 %v3474_v34, 16  ;;  %v3477_v36 = vld [vmem:[#allocation2 + $0x58] sm:$0x11]  ;;  %v5332_v30 = vld [vmem:[#allocation2 + $0x1c0] sm:$0xf] }
 0x219   :  { %v2509_v37 = vpop.f32.mrf.mxu1  ;;  %3382 = vmatmul.bf16.gmra.mxu0 %v5345_v4  ;;  %v5356_v4 = vld [vmem:[#allocation2 + $0x208] sm:$0xf]  ;;  %v5333_v50 = vor.u32 %v5848_v29, %v5332_v30 }
 0x21a   :  { %v2605_v38 = vadd.f32 %v2604_v63, %v2556_v22 }
 0x21c   :  { %3279 = vmatmul.bf16.gmra.mxu2 %v5321_v39  ;;  %3230 = vmatmul.bf16.gmra.mxu1 %v5317_v45  ;;  %v2654_v1 = vadd.f32 %v7023_v5, %v2605_v38  ;;  %v3586_v39 = vshll.u32 %v3477_v36, 16  ;;  %v3476_v38 = vld [vmem:[#allocation2 + $0x50] sm:$0x11] }
 0x21d   :  { %3333 = vmatmul.bf16.gmra.mxu3 %v5341_v46  ;;  %v3565_v46 = vrot.slane %v3563_v13, 4  ;;  %v3572_v56 = vshll.u32 %v3476_v38, 16  ;;  %v3484_v38 = vld [vmem:[#allocation2 + $0x90] sm:$0x11] }
 0x21e   :  { %5163 = vst [vmem:[%s7462_s3 + $0x148] sm:$0xff] %v2654_v1  ;;  %v2696_v26 = vadd.f32 %v2695_v24, %v2654_v1  ;;  %v2719_v49 = vmul.f32 %v2654_v1, %v2654_v1  ;;  %v7077_v19 = vpop.f32.mrf.mxu0  ;;  %v3583_v24 = vor.u32 %v3582_v7, %v3579_v52  ;;  %v3555_v1 = vor.u32 %v3554_v18, %v3551_v17  ;;  %v3478_v7 = vld [vmem:[#allocation2 + $0x60] sm:$0xff] }
 0x21f   :  { %v2558_v54 = vpop.f32.mrf.mxu2  ;;  %v3569_v2 = vor.u32 %v3568_v12, %v3565_v46  ;;  %v5910_v17 = vld [vmem:[%s7461_s2 + $0x3c0] sm:$0xff]  ;;  %v3481_v46 = vld [vmem:[#allocation2 + $0x78] sm:$0x11]  ;;  %v3628_v9 = vshll.u32 %v3484_v38, 16 }
 0x220   :  { %v2559_v57 = vadd.f32 %v2558_v54, %v2509_v37  ;;  %v2734_v5 = vadd.f32 %v2733_v62, %v2719_v49  ;;  %v7082_v63 = vpop.f32.mrf.mxu3  ;;  %v3540_v37 = vrot.slane %v3538_v44, 5  ;;  %v3584_v53 = vrot.slane %v3583_v24, 4  ;;  %4521 = vmatpush.bf16.msra.mxu0 %v5910_v17  ;;  %v3485_v12 = vld [vmem:[#allocation2 + $0x98] sm:$0x11] }
 0x221   :  { %v2511_v61 = vpop.f32.mrf.mxu1  ;;  %v5357_v54 = vor.u32 %v5853_v16, %v5356_v4  ;;  %v3556_v52 = vrot.slane %v3555_v1, 4  ;;  %v3591_v24 = vshrl.u32 %v3478_v7, 16  ;;  %v5850_v1 = vld [vmem:[#allocation2 + $0x204] sm:$0xf] }
 0x222   :  { %v2608_v60 = vadd.f32 %v2607_v15, %v2559_v57  ;;  %v5334_v15 = vld [vmem:[#allocation2 + $0x1e0] sm:$0xf0]  ;;  %v3588_v57 = vrot.slane %v3586_v39, 5 }
 0x223   :  { %v5337_v49 = vor.u32 %v5846_v58, %v5334_v15 }
 0x224   :  { %v2657_v55 = vadd.f32 %v7037_v31, %v2608_v60  ;;  %v3483_v60 = vld [vmem:[#allocation2 + $0x88] sm:$0xff] }
 0x225   :  { %v3633_v18 = vshrl.u32 %v3483_v60, 16  ;;  %v3636_v58 = vshll.u32 %v3483_v60, 16  ;;  %v3480_v60 = vld [vmem:[#allocation2 + $0x70] sm:$0x11] }
 0x226   :  { %5164 = vst [vmem:[%s7462_s3 + $0x150] sm:$0xff] %v2657_v55  ;;  %v2697_v25 = vadd.f32 %v2696_v26, %v2657_v55  ;;  %v2720_v11 = vmul.f32 %v2657_v55, %v2657_v55  ;;  %v7094_v31 = vpop.f32.mrf.mxu0  ;;  %v3558_v26 = vshll.u32 %v3473_v14, 16  ;;  %v3608_v14 = vshll.u32 %v3479_v59, 16 }
 0x227   :  { %v2560_v27 = vpop.f32.mrf.mxu2  ;;  %v3635_v35 = vrot.slane %v3633_v18, 4  ;;  %v3600_v18 = vshll.u32 %v3480_v60, 16 }
 0x228   :  { %v2561_v32 = vadd.f32 %v2560_v27, %v2511_v61  ;;  %v2735_v22 = vadd.f32 %v2734_v5, %v2720_v11  ;;  %v7096_v62 = vpop.f32.mrf.mxu3  ;;  %v3482_v5 = vld [vmem:[#allocation2 + $0x80] sm:$0xff]  ;;  %v3541_v61 = vor.u32 %v3540_v37, %v3537_v20  ;;  %v3560_v3 = vrot.slane %v3558_v26, 5 }
 0x229   :  { %v2514_v45 = vpop.f32.mrf.mxu1  ;;  %3387 = vmatmul.bf16.gmra.mxu0 %v5361_v42  ;;  %v3619_v40 = vshrl.u32 %v3482_v5, 16  ;;  %v3622_v44 = vshll.u32 %v3482_v5, 16  ;;  %v3570_v11 = vrot.slane %v3569_v2, 4  ;;  %v3574_v20 = vrot.slane %v3572_v56, 5  ;;  %v5852_v56 = vld [vmem:[#allocation2 + $0x21c] sm:$0xf0] }
 0x22a   :  { %v2610_v48 = vadd.f32 %v7065_v8, %v2561_v32  ;;  %v3561_v30 = vsel %vm6590_vm13, %v3556_v52, %v3560_v3  ;;  %v3594_v42 = vshll.u32 %v3478_v7, 16  ;;  %v3610_v21 = vrot.slane %v3608_v14, 5 }
 0x22b   :  { %v3621_v4 = vrot.slane %v3619_v40, 4  ;;  %v3624_v32 = vrot.slane %v3622_v44, 5  ;;  %v3638_v37 = vrot.slane %v3636_v58, 5  ;;  %v3614_v40 = vshll.u32 %v3481_v46, 16 }
 0x22c   :  { %3284 = vmatmul.bf16.gmra.mxu2 %v5337_v49  ;;  %3235 = vmatmul.bf16.gmra.mxu1 %v5333_v50  ;;  %v2659_v33 = vadd.f32 %v7049_v41, %v2610_v48  ;;  %v7113_v41 = vsel %vm6590_vm13, %v3584_v53, %v3588_v57  ;;  %v3593_v50 = vrot.slane %v3591_v24, 4  ;;  %v3596_v48 = vrot.slane %v3594_v42, 5 }
 0x22d   :  { %3338 = vmatmul.bf16.gmra.mxu3 %v5357_v54  ;;  %v4054_v29 = vunpack.c.h.b16 %v7113_v41  ;;  %v5350_v54 = vld [vmem:[#allocation2 + $0x220] sm:$0xf0]  ;;  %v4053_v5 = vunpack.c.l.b16 %v7113_v41  ;;  %v3625_v59 = vor.u32 %v3624_v32, %v3621_v4 }
 0x22e   :  { %5165 = vst [vmem:[%s7462_s3 + $0x158] sm:$0xff] %v2659_v33  ;;  %v2698_v8 = vadd.f32 %v2697_v25, %v2659_v33  ;;  %v2721_v34 = vmul.f32 %v2659_v33, %v2659_v33  ;;  %v7109_v6 = vpop.f32.mrf.mxu0  ;;  %v3542_v25 = vrot.slane %v3541_v61, 4  ;;  %v5348_v33 = vld [vmem:[#allocation2 + $0x200] sm:$0xf]  ;;  %v5353_v44 = vor.u32 %v5850_v1, %v5350_v54 }
 0x22f   :  { %v2563_v55 = vpop.f32.mrf.mxu2  ;;  %v3597_v17 = vor.u32 %v3596_v48, %v3593_v50  ;;  %v3626_v58 = vrot.slane %v3625_v59, 4  ;;  %v3602_v50 = vrot.slane %v3600_v18, 5  ;;  %v3486_v48 = vld [vmem:[#allocation2 + $0xa0] sm:$0xff] }
 0x230   :  { %v2564_v13 = vadd.f32 %v2563_v55, %v2514_v45  ;;  %v2736_v43 = vadd.f32 %v2735_v22, %v2721_v34  ;;  %v7118_v36 = vpop.f32.mrf.mxu3  ;;  %v3607_v22 = vrot.slane %v3605_v10, 4  ;;  %v7130_v39 = vsel %vm6590_vm13, %v3542_v25, %v3546_v23 }
 0x231   :  { %v2516_v15 = vpop.f32.mrf.mxu1  ;;  %v4050_v45 = vunpack.c.h.b16 %v3561_v30  ;;  %v3642_v34 = vshll.u32 %v3485_v12, 16  ;;  %v4049_v55 = vunpack.c.l.b16 %v3561_v30  ;;  %v5349_v10 = vor.u32 %v5852_v56, %v5348_v33 }
 0x232   :  { %v2613_v27 = vadd.f32 %v7082_v63, %v2564_v13  ;;  %v7134_v63 = vsel %vm6590_vm13, %v3570_v11, %v3574_v20  ;;  %v3611_v61 = vor.u32 %v3610_v21, %v3607_v22  ;;  %v3487_v13 = vld [vmem:[#allocation2 + $0xa8] sm:$0xff]  ;;  %v3616_v30 = vrot.slane %v3614_v40, 5 }
 0x233   :  { %v4114_v57 = vpack.c.b16 %v4054_v29, %v4050_v45  ;;  %v4052_v7 = vunpack.c.h.b16 %v7134_v63  ;;  %v4051_v14 = vunpack.c.l.b16 %v7134_v63  ;;  %v3644_v24 = vrot.slane %v3642_v34, 5 }
 0x234   :  { %v2662_v16 = vadd.f32 %v7063_v28, %v2613_v27  ;;  %v3612_v11 = vrot.slane %v3611_v61, 4  ;;  %v3630_v27 = vrot.slane %v3628_v9, 5  ;;  %v3661_v29 = vshrl.u32 %v3487_v13, 16 }
 0x236   :  { %5166 = vst [vmem:[%s7462_s3 + $0x160] sm:$0xff] %v2662_v16  ;;  %v2699_v28 = vadd.f32 %v2698_v8, %v2662_v16  ;;  %v2722_v26 = vmul.f32 %v2662_v16, %v2662_v16  ;;  %v7139_v49 = vpop.f32.mrf.mxu0  ;;  %v3639_v8 = vor.u32 %v3638_v37, %v3635_v35  ;;  %v4047_v35 = vunpack.c.l.b16 %v7130_v39 }
 0x237   :  { %v2565_v53 = vpop.f32.mrf.mxu2  ;;  %v3598_v37 = vrot.slane %v3597_v17, 4  ;;  %v7157_v63 = vsel %vm6590_vm13, %v3626_v58, %v3630_v27  ;;  %v3617_v12 = vsel %vm6590_vm13, %v3612_v11, %v3616_v30 }
 0x238   :  { %v2566_v23 = vadd.f32 %v2565_v53, %v2516_v15  ;;  %v2737_v2 = vadd.f32 %v2736_v43, %v2722_v26  ;;  %v7142_v3 = vpop.f32.mrf.mxu3  ;;  %v4113_v43 = vpack.c.b16 %v4053_v5, %v4049_v55  ;;  %v3491_v15 = vld [vmem:[#allocation2 + $0xc8] sm:$0xff]  ;;  %v3640_v20 = vrot.slane %v3639_v8, 4  ;;  %v3493_v5 = vld [vmem:[#allocation2 + $0xd8] sm:$0x11] }
 0x239   :  { %v2519_v52 = vpop.f32.mrf.mxu1  ;;  %4522 = vmatmul.bf16.vlgmr.msra.gmra.mxu0 %v4114_v57  ;;  %v3689_v22 = vshrl.u32 %v3491_v15, 16  ;;  %v3692_v21 = vshll.u32 %v3491_v15, 16  ;;  %v3663_v53 = vrot.slane %v3661_v29, 4  ;;  %v4111_v56 = vpack.c.b16 %v4051_v14, %v4047_v35  ;;  %v3489_v57 = vld [vmem:[#allocation2 + $0xb8] sm:$0x11] }
 0x23a   :  { %v2615_v41 = vadd.f32 %v7096_v62, %v2566_v23  ;;  %v3664_v62 = vshll.u32 %v3487_v13, 16  ;;  %v3645_v1 = vsel %vm6590_vm13, %v3640_v20, %v3644_v24  ;;  %v3603_v23 = vsel %vm6590_vm13, %v3598_v37, %v3602_v50  ;;  %v3495_v37 = vld [vmem:[#allocation2 + $0xe8] sm:$0xff]  ;;  %v7196_v50 = vld [vmem:[#allocation2 + $0xd0] sm:$0x11] }
 0x23b   :  { %v3691_v59 = vrot.slane %v3689_v22, 4  ;;  %v3694_v61 = vrot.slane %v3692_v21, 5  ;;  %v4058_v60 = vunpack.c.h.b16 %v3617_v12  ;;  %v4062_v8 = vunpack.c.h.b16 %v3645_v1 }
 0x23c   :  { %3289 = vmatmul.bf16.gmra.mxu2 %v5353_v44  ;;  %3240 = vmatmul.bf16.gmra.mxu1 %v5349_v10  ;;  %v2664_v25 = vadd.f32 %v7077_v19, %v2615_v41  ;;  %v4048_v19 = vunpack.c.h.b16 %v7130_v39  ;;  %v3488_v39 = vld [vmem:[#allocation2 + $0xb0] sm:$0x11]  ;;  %v3666_v54 = vrot.slane %v3664_v62, 5  ;;  %v3650_v55 = vshll.u32 %v3486_v48, 16 }
 0x23d   :  { %4473 = vmatmul.bf16.vlgmr.msra.gmra.mxu3 %v4113_v43  ;;  %v3656_v9 = vshll.u32 %v3488_v39, 16  ;;  %v3670_v40 = vshll.u32 %v3489_v57, 16  ;;  %v3698_v44 = vshll.u32 %v3493_v5, 16  ;;  %v1530_v10 = vrot.slane %v6947_v0, 4 }
 0x23e   :  { %5167 = vst [vmem:[%s7462_s3 + $0x168] sm:$0xff] %v2664_v25  ;;  %v2700_v42 = vadd.f32 %v2699_v28, %v2664_v25  ;;  %v2723_v4 = vmul.f32 %v2664_v25, %v2664_v25  ;;  %v7151_v32 = vpop.f32.mrf.mxu0  ;;  %v4112_v26 = vpack.c.b16 %v4052_v7, %v4048_v19  ;;  %v3647_v7 = vshrl.u32 %v3486_v48, 16 }
 0x23f   :  { %v2568_v16 = vpop.f32.mrf.mxu2  ;;  %v3695_v43 = vor.u32 %v3694_v61, %v3691_v59  ;;  %v4118_v18 = vpack.c.b16 %v4062_v8, %v4058_v60  ;;  %v4057_v58 = vunpack.c.l.b16 %v3617_v12  ;;  %v4061_v15 = vunpack.c.l.b16 %v3645_v1 }
 0x240   :  { %v2569_v45 = vadd.f32 %v2568_v16, %v2519_v52  ;;  %v2738_v38 = vadd.f32 %v2737_v2, %v2723_v4  ;;  %v7159_v46 = vpop.f32.mrf.mxu3  ;;  %v4060_v2 = vunpack.c.h.b16 %v7157_v63  ;;  %v4059_v52 = vunpack.c.l.b16 %v7157_v63  ;;  %v3490_v16 = vld [vmem:[#allocation2 + $0xc0] sm:$0xff] }
 0x241   :  { %v2521_v28 = vpop.f32.mrf.mxu1  ;;  %v7180_v24 = vrot.slane %v3647_v7, 4  ;;  %v7182_v27 = vrot.slane %v3650_v55, 5  ;;  %v4056_v29 = vunpack.c.h.b16 %v3603_v23  ;;  %v4055_v62 = vunpack.c.l.b16 %v3603_v23 }
 0x242   :  { %v2618_v33 = vadd.f32 %v7118_v36, %v2569_v45  ;;  %v3667_v36 = vor.u32 %v3666_v54, %v3663_v53  ;;  %v3672_v4 = vrot.slane %v3670_v40, 5  ;;  %v1531_v22 = vadd.f32 %v1530_v10, %v6947_v0 }
 0x243   :  { %v3696_v19 = vrot.slane %v3695_v43, 4  ;;  %v3700_v35 = vrot.slane %v3698_v44, 5  ;;  %v7187_v45 = vpack.c.b16 %v4060_v2, %v4056_v29  ;;  %v7190_v1 = vpack.c.b16 %v4059_v52, %v4055_v62  ;;  %v3497_v43 = vld [vmem:[#allocation2 + $0xf8] sm:$0x11] }
 0x244   :  { %v2667_v34 = vadd.f32 %v7094_v31, %v2618_v33  ;;  %v1568_v31 = vrot.slane %v6954_v51, 4  ;;  %v3653_v0 = vor.u32 %v7182_v27, %v7180_v24  ;;  %v3675_v48 = vshrl.u32 %v3490_v16, 16  ;;  %v3501_v27 = vld [vmem:[#allocation2 + $0x118] sm:$0x11] }
 0x245   :  { %v1532_v53 = vrot.slane %v1531_v22, 2  ;;  %v3720_v59 = vshll.u32 %v3495_v37, 16 }
 0x246   :  { %5168 = vst [vmem:[%s7462_s3 + $0x170] sm:$0xff] %v2667_v34  ;;  %v2701_v41 = vadd.f32 %v2700_v42, %v2667_v34  ;;  %v2724_v14 = vmul.f32 %v2667_v34, %v2667_v34  ;;  %v7175_v13 = vpop.f32.mrf.mxu0  ;;  %v3668_v42 = vrot.slane %v3667_v36, 4  ;;  %v1569_v63 = vadd.f32 %v1568_v31, %v6954_v51 }
 0x247   :  { %v2570_v17 = vpop.f32.mrf.mxu2  ;;  %v3678_v51 = vshll.u32 %v3490_v16, 16  ;;  %v3684_v34 = vshll.u32 %v7196_v50, 16  ;;  %v3677_v55 = vrot.slane %v3675_v48, 4  ;;  %v1533_v44 = vadd.f32 %v1532_v53, %v1531_v22 }
 0x248   :  { %v2571_v25 = vadd.f32 %v2570_v17, %v2521_v28  ;;  %v2739_v11 = vadd.f32 %v2738_v38, %v2724_v14  ;;  %v7178_v20 = vpop.f32.mrf.mxu3  ;;  %v4117_v38 = vpack.c.b16 %v4061_v15, %v4057_v58  ;;  %v7194_v28 = vrot.slane %v3656_v9, 5 }
 0x249   :  { %v3206_v30 = vpop.f32.mrf.mxu1  ;;  %4527 = vmatmul.bf16.gmra.mxu0 %v4118_v18  ;;  %v3673_v39 = vsel %vm6590_vm13, %v3668_v42, %v3672_v4  ;;  %v1570_v57 = vrot.slane %v1569_v63, 2  ;;  %v3722_v17 = vrot.slane %v3720_v59, 5  ;;  %v3680_v24 = vrot.slane %v3678_v51, 5 }
 0x24a   :  { %v2620_v21 = vadd.f32 %v7142_v3, %v2571_v25  ;;  %v3499_v3 = vld [vmem:[#allocation2 + $0x108] sm:$0xff]  ;;  %v4066_v9 = vunpack.c.h.b16 %v3673_v39  ;;  %v4065_v29 = vunpack.c.l.b16 %v3673_v39  ;;  %v3726_v42 = vshll.u32 %v3497_v43, 16  ;;  %v3498_v43 = vld [vmem:[#allocation2 + $0x100] sm:$0xff] }
 0x24b   :  { %v3745_v61 = vshrl.u32 %v3499_v3, 16  ;;  %v3748_v23 = vshll.u32 %v3499_v3, 16  ;;  %v1571_v31 = vadd.f32 %v1570_v57, %v1569_v63  ;;  %v1534_v4 = vrot.slane %v1533_v44, 1 }
 0x24c   :  { %4424 = vmatmul.bf16.vlgmr.msra.gmra.mxu2 %v4112_v26  ;;  %4375 = vmatmul.bf16.vlgmr.msra.gmra.mxu1 %v4111_v56  ;;  %v2669_v12 = vadd.f32 %v7109_v6, %v2620_v21  ;;  %v3717_v26 = vshrl.u32 %v3495_v37, 16  ;;  %v3701_v56 = vsel %vm6590_vm13, %v3696_v19, %v3700_v35  ;;  %v3494_v19 = vld [vmem:[#allocation2 + $0xe0] sm:$0xff]  ;;  %v3681_v50 = vor.u32 %v3680_v24, %v3677_v55 }
 0x24d   :  { %4478 = vmatmul.bf16.gmra.mxu3 %v4117_v38  ;;  %v4070_v36 = vunpack.c.h.b16 %v3701_v56  ;;  %v3747_v18 = vrot.slane %v3745_v61, 4  ;;  %v3750_v58 = vrot.slane %v3748_v23, 5  ;;  %v4069_v62 = vunpack.c.l.b16 %v3701_v56 }
 0x24e   :  { %5169 = vst [vmem:[%s7462_s3 + $0x178] sm:$0xff] %v2669_v12  ;;  %v2702_v6 = vadd.f32 %v2701_v41, %v2669_v12  ;;  %v2725_v54 = vmul.f32 %v2669_v12, %v2669_v12  ;;  %v7203_v33 = vpop.f32.mrf.mxu0  ;;  %v3719_v40 = vrot.slane %v3717_v26, 4  ;;  %v1572_v35 = vrot.slane %v1571_v31, 1 }
 0x24f   :  { %v3255_v5 = vpop.f32.mrf.mxu2  ;;  %v4122_v16 = vpack.c.b16 %v4070_v36, %v4066_v9  ;;  %v3751_v63 = vor.u32 %v3750_v58, %v3747_v18  ;;  %v3754_v38 = vshll.u32 %v3501_v27, 16  ;;  %v4121_v39 = vpack.c.b16 %v4069_v62, %v4065_v29  ;;  %v3503_v9 = vld [vmem:[#allocation2 + $0x148] sm:$0xff] }
 0x250   :  { %v3256_v2 = vadd.f32 %v3255_v5, %v3206_v30  ;;  %v2703_v60 = vrot.slane %v2702_v6, 4  ;;  %v2740_v8 = vadd.f32 %v2739_v11, %v2725_v54  ;;  %v7208_v52 = vpop.f32.mrf.mxu3  ;;  %v3654_v30 = vrot.slane %v3653_v0, 4 }
 0x251   :  { %v3208_v7 = vpop.f32.mrf.mxu1  ;;  %v3703_v26 = vshrl.u32 %v3494_v19, 16  ;;  %v3706_v53 = vshll.u32 %v3494_v19, 16  ;;  %v1535_v54 = vadd.f32 %v1534_v4, %v1533_v44  ;;  %v1573_v59 = vadd.f32 %v1572_v35, %v1571_v31 }
 0x252   :  { %v2704_v10 = vadd.f32 %v2703_v60, %v2702_v6  ;;  %v2741_v41 = vrot.slane %v2740_v8, 4  ;;  %v3305_v14 = vadd.f32 %v7159_v46, %v3256_v2  ;;  %v3728_v6 = vrot.slane %v3726_v42, 5 }
 0x253   :  { %v3752_v23 = vrot.slane %v3751_v63, 4  ;;  %v3756_v2 = vrot.slane %v3754_v38, 5  ;;  %v3686_v55 = vrot.slane %v3684_v34, 5  ;;  %v7228_v36 = vsel %vm6590_vm13, %v3654_v30, %v7194_v28  ;;  %v3496_v34 = vld [vmem:[#allocation2 + $0xf0] sm:$0x11] }
 0x254   :  { %v2705_v15 = vrot.slane %v2704_v10, 2  ;;  %v2742_v25 = vadd.f32 %v2741_v41, %v2740_v8  ;;  %v3354_v11 = vadd.f32 %v7139_v49, %v3305_v14  ;;  %v3723_v49 = vor.u32 %v3722_v17, %v3719_v40 }
 0x255   :  { %v3705_v40 = vrot.slane %v3703_v26, 4  ;;  %v3708_v44 = vrot.slane %v3706_v53, 5  ;;  %v3757_v17 = vsel %vm6590_vm13, %v3752_v23, %v3756_v2  ;;  %v3773_v18 = vshrl.u32 %v3503_v9, 16 }
 0x256   :  { %v2706_v22 = vadd.f32 %v2705_v15, %v2704_v10  ;;  %v2743_v21 = vrot.slane %v2742_v25, 2  ;;  %5490 = vst [vmem:[%s7462_s3 + $0x80] sm:$0xff] %v3354_v11  ;;  %v7215_v46 = vpop.f32.mrf.mxu0  ;;  %v3724_v61 = vrot.slane %v3723_v49, 4  ;;  %v3507_v10 = vld [vmem:[#allocation2 + $0x168] sm:$0xff]  ;;  %v3432_v14 = vmul.f32 %v3354_v11, %v3354_v11 }
 0x257   :  { %v3257_v37 = vpop.f32.mrf.mxu2  ;;  %v3776_v58 = vshll.u32 %v3503_v9, 16  ;;  %v3801_v27 = vshrl.u32 %v3507_v10, 16  ;;  %v3712_v62 = vshll.u32 %v3496_v34, 16  ;;  %v3731_v42 = vshrl.u32 %v3498_v43, 16  ;;  %v3502_v34 = vld [vmem:[#allocation2 + $0x140] sm:$0xff] }
 0x258   :  { %v2707_v12 = vrot.slane %v2706_v22, 1  ;;  %v2744_v0 = vadd.f32 %v2743_v21, %v2742_v25  ;;  %v3258_v3 = vadd.f32 %v3257_v37, %v3208_v7  ;;  %v7217_v48 = vpop.f32.mrf.mxu3  ;;  %v3729_v31 = vsel %vm6590_vm13, %v3724_v61, %v3728_v6  ;;  %v3509_v6 = vld [vmem:[#allocation2 + $0x178] sm:$0x11] }
 0x259   :  { %v3211_v51 = vpop.f32.mrf.mxu1  ;;  %4532 = vmatmul.bf16.gmra.mxu0 %v4122_v16  ;;  %v3734_v4 = vshll.u32 %v3498_v43, 16  ;;  %v4063_v16 = vunpack.c.l.b16 %v7228_v36  ;;  %v3709_v19 = vor.u32 %v3708_v44, %v3705_v40  ;;  %v4074_v35 = vunpack.c.h.b16 %v3729_v31 }
 0x25a   :  { %v2708_v56 = vadd.f32 %v2707_v12, %v2706_v22  ;;  %v2745_v57 = vrot.slane %v2744_v0, 1  ;;  %v3307_v5 = vadd.f32 %v7178_v20, %v3258_v3  ;;  %v3682_v20 = vrot.slane %v3681_v50, 4 }
 0x25b   :  { %v4064_v22 = vunpack.c.h.b16 %v7228_v36  ;;  %v4078_v37 = vunpack.c.h.b16 %v3757_v17  ;;  %v3775_v49 = vrot.slane %v3773_v18, 4  ;;  %v3778_v63 = vrot.slane %v3776_v58, 5  ;;  %v3506_v58 = vld [vmem:[#allocation2 + $0x160] sm:$0xff] }
 0x25c   :  { %v7220_v60 = vadd.f32 %v2708_v56, %v1535_v54  ;;  %v2746_v8 = vadd.f32 %v2745_v57, %v2744_v0  ;;  %4429 = vmatmul.bf16.gmra.mxu2 %v7187_v45  ;;  %4380 = vmatmul.bf16.gmra.mxu1 %v7190_v1  ;;  %v3356_v7 = vadd.f32 %v7151_v32, %v3307_v5  ;;  %v3505_v0 = vld [vmem:[#allocation2 + $0x158] sm:$0x11]  ;;  %v3803_v3 = vrot.slane %v3801_v27, 4  ;;  %v3500_v56 = vld [vmem:[#allocation2 + $0x110] sm:$0x11] }
 0x25d   :  { %4483 = vmatmul.bf16.gmra.mxu3 %v4121_v39  ;;  %v3687_v29 = vsel %vm6590_vm13, %v3682_v20, %v3686_v55  ;;  %v3714_v39 = vrot.slane %v3712_v62, 5  ;;  %v3733_v26 = vrot.slane %v3731_v42, 4  ;;  %v3736_v53 = vrot.slane %v3734_v4, 5 }
 0x25e   :  { %v7230_v41 = vadd.f32 %v2746_v8, %v1573_v59  ;;  %5491 = vst [vmem:[%s7462_s3 + $0x88] sm:$0xff] %v3356_v7  ;;  %v3410_v32 = vadd.f32 %v3356_v7, %v3354_v11  ;;  %v3433_v45 = vmul.f32 %v3356_v7, %v3356_v7  ;;  %v7235_v1 = vpop.f32.mrf.mxu0  ;;  %v3804_v11 = vshll.u32 %v3507_v10, 16 }
 0x25f   :  { %v3260_v28 = vpop.f32.mrf.mxu2  ;;  %v4068_v38 = vunpack.c.h.b16 %v3687_v29  ;;  %v3710_v57 = vrot.slane %v3709_v19, 4  ;;  %v4073_v59 = vunpack.c.l.b16 %v3729_v31  ;;  %v4126_v61 = vpack.c.b16 %v4078_v37, %v4074_v35 }
 0x260   :  { %v3261_v15 = vadd.f32 %v3260_v28, %v3211_v51  ;;  %v3448_v25 = vadd.f32 %v3433_v45, %v3432_v14  ;;  %v7241_v24 = vpop.f32.mrf.mxu3  ;;  %v3806_v50 = vrot.slane %v3804_v11, 5  ;;  %v4067_v51 = vunpack.c.l.b16 %v3687_v29  ;;  %v3515_v11 = vld [vmem:[#allocation2 + $0x1a8] sm:$0xff] }
 0x261   :  { %v3213_v30 = vpop.f32.mrf.mxu1  ;;  %v4077_v23 = vunpack.c.l.b16 %v3757_v17  ;;  %v3779_v2 = vor.u32 %v3778_v63, %v3775_v49  ;;  %v3782_v8 = vshll.u32 %v3505_v0, 16  ;;  %v3810_v20 = vshll.u32 %v3509_v6, 16  ;;  %v3511_v17 = vld [vmem:[#allocation2 + $0x188] sm:$0xff] }
 0x262   :  { %v3310_v21 = vadd.f32 %v7208_v52, %v3261_v15  ;;  %v3807_v36 = vor.u32 %v3806_v50, %v3803_v3  ;;  %v3737_v44 = vor.u32 %v3736_v53, %v3733_v26  ;;  %v3740_v10 = vshll.u32 %v3500_v56, 16 }
 0x263   :  { %v4120_v14 = vpack.c.b16 %v4068_v38, %v4064_v22  ;;  %v7259_v43 = vsel %vm6590_vm13, %v3710_v57, %v3714_v39  ;;  %v4125_v28 = vpack.c.b16 %v4077_v23, %v4073_v59  ;;  %v3780_v31 = vrot.slane %v3779_v2, 4 }
 0x264   :  { %v3359_v12 = vadd.f32 %v7175_v13, %v3310_v21  ;;  %v3784_v15 = vrot.slane %v3782_v8, 5  ;;  %v3812_v27 = vrot.slane %v3810_v20, 5  ;;  %v3742_v29 = vrot.slane %v3740_v10, 5  ;;  %v3517_v20 = vld [vmem:[#allocation2 + $0x1b8] sm:$0x11] }
 0x265   :  { %v3762_v62 = vshll.u32 %v3502_v34, 16  ;;  %v3829_v21 = vshrl.u32 %v3511_v17, 16  ;;  %v3787_v19 = vshrl.u32 %v3506_v58, 16  ;;  %v3790_v35 = vshll.u32 %v3506_v58, 16 }
 0x266   :  { %5492 = vst [vmem:[%s7462_s3 + $0x90] sm:$0xff] %v3359_v12  ;;  %v3411_v52 = vadd.f32 %v3410_v32, %v3359_v12  ;;  %v3434_v54 = vmul.f32 %v3359_v12, %v3359_v12  ;;  %v7252_v5 = vpop.f32.mrf.mxu0  ;;  %v4119_v32 = vpack.c.b16 %v4067_v51, %v4063_v16  ;;  %v3857_v37 = vshrl.u32 %v3515_v11, 16 }
 0x267   :  { %v3262_v13 = vpop.f32.mrf.mxu2  ;;  %v3860_v49 = vshll.u32 %v3515_v11, 16  ;;  %v3785_v0 = vsel %vm6590_vm13, %v3780_v31, %v3784_v15  ;;  %v4072_v39 = vunpack.c.h.b16 %v7259_v43  ;;  %v3764_v53 = vrot.slane %v3762_v62, 5 }
 0x268   :  { %v3263_v7 = vadd.f32 %v3262_v13, %v3213_v30  ;;  %v3449_v55 = vadd.f32 %v3448_v25, %v3434_v54  ;;  %v7254_v9 = vpop.f32.mrf.mxu3  ;;  %v3808_v25 = vrot.slane %v3807_v36, 4  ;;  %v3738_v30 = vrot.slane %v3737_v44, 4  ;;  %v3504_v54 = vld [vmem:[#allocation2 + $0x150] sm:$0x11] }
 0x269   :  { %v3216_v40 = vpop.f32.mrf.mxu1  ;;  %4537 = vmatmul.bf16.gmra.mxu0 %v4126_v61  ;;  %v3831_v56 = vrot.slane %v3829_v21, 4  ;;  %v4082_v59 = vunpack.c.h.b16 %v3785_v0  ;;  %v3513_v61 = vld [vmem:[#allocation2 + $0x198] sm:$0x11]  ;;  %v3859_v23 = vrot.slane %v3857_v37, 4  ;;  %v3862_v2 = vrot.slane %v3860_v49, 5 }
 0x26a   :  { %v3312_v45 = vadd.f32 %v7217_v48, %v3263_v7  ;;  %v3759_v48 = vshrl.u32 %v3502_v34, 16  ;;  %v3813_v3 = vsel %vm6590_vm13, %v3808_v25, %v3812_v27  ;;  %v3743_v51 = vsel %vm6590_vm13, %v3738_v30, %v3742_v29  ;;  %v3508_v44 = vld [vmem:[#allocation2 + $0x170] sm:$0x11] }
 0x26b   :  { %v4086_v13 = vunpack.c.h.b16 %v3813_v3  ;;  %v4076_v8 = vunpack.c.h.b16 %v3743_v51  ;;  %v3792_v36 = vrot.slane %v3790_v35, 5  ;;  %v3866_v58 = vshll.u32 %v3517_v20, 16  ;;  %v3512_v20 = vld [vmem:[#allocation2 + $0x190] sm:$0x11] }
 0x26c   :  { %4434 = vmatmul.bf16.gmra.mxu2 %v4120_v14  ;;  %4385 = vmatmul.bf16.gmra.mxu1 %v4119_v32  ;;  %v3361_v18 = vadd.f32 %v7203_v33, %v3312_v45  ;;  %v3832_v33 = vshll.u32 %v3511_v17, 16  ;;  %v3761_v26 = vrot.slane %v3759_v48, 4  ;;  %v4081_v14 = vunpack.c.l.b16 %v3785_v0 }
 0x26d   :  { %4488 = vmatmul.bf16.gmra.mxu3 %v4125_v28  ;;  %v3838_v28 = vshll.u32 %v3513_v61, 16  ;;  %v4085_v17 = vunpack.c.l.b16 %v3813_v3  ;;  %v3796_v11 = vshll.u32 %v3508_v44, 16  ;;  %v4124_v29 = vpack.c.b16 %v4076_v8, %v4072_v39 }
 0x26e   :  { %5493 = vst [vmem:[%s7462_s3 + $0x98] sm:$0xff] %v3361_v18  ;;  %v3412_v42 = vadd.f32 %v3411_v52, %v3361_v18  ;;  %v3435_v4 = vmul.f32 %v3361_v18, %v3361_v18  ;;  %v7265_v22 = vpop.f32.mrf.mxu0  ;;  %v4071_v52 = vunpack.c.l.b16 %v7259_v43  ;;  %v3834_v57 = vrot.slane %v3832_v33, 5  ;;  %v3510_v33 = vld [vmem:[#allocation2 + $0x180] sm:$0xff] }
 0x26f   :  { %v3265_v16 = vpop.f32.mrf.mxu2  ;;  %v3765_v10 = vor.u32 %v3764_v53, %v3761_v26  ;;  %v3863_v18 = vor.u32 %v3862_v2, %v3859_v23  ;;  %v4129_v35 = vpack.c.b16 %v4085_v17, %v4081_v14  ;;  %v3868_v49 = vrot.slane %v3866_v58, 5 }
 0x270   :  { %v3266_v63 = vadd.f32 %v3265_v16, %v3216_v40  ;;  %v3450_v38 = vadd.f32 %v3449_v55, %v3435_v4  ;;  %v7267_v12 = vpop.f32.mrf.mxu3  ;;  %v3789_v55 = vrot.slane %v3787_v19, 4  ;;  %v4075_v40 = vunpack.c.l.b16 %v3743_v51 }
 0x271   :  { %v3218_v50 = vpop.f32.mrf.mxu1  ;;  %v3835_v43 = vor.u32 %v3834_v57, %v3831_v56  ;;  %v3766_v62 = vrot.slane %v3765_v10, 4  ;;  %v3840_v19 = vrot.slane %v3838_v28, 5  ;;  %v3864_v37 = vrot.slane %v3863_v18, 4 }
 0x272   :  { %v3315_v6 = vadd.f32 %v7241_v24, %v3266_v63  ;;  %v3768_v24 = vshll.u32 %v3504_v54, 16  ;;  %v3793_v27 = vor.u32 %v3792_v36, %v3789_v55  ;;  %v4123_v4 = vpack.c.b16 %v4075_v40, %v4071_v52  ;;  %v3519_v63 = vld [vmem:[#allocation2 + $0x1c8] sm:$0xff]  ;;  %v3514_v52 = vld [vmem:[#allocation2 + $0x1a0] sm:$0xff] }
 0x273   :  { %v3836_v16 = vrot.slane %v3835_v43, 4  ;;  %v3798_v3 = vrot.slane %v3796_v11, 5  ;;  %v3818_v39 = vshll.u32 %v3510_v33, 16  ;;  %v3885_v54 = vshrl.u32 %v3519_v63, 16  ;;  %v3525_v11 = vld [vmem:[#allocation2 + $0x1f8] sm:$0x11] }
 0x274   :  { %v3364_v7 = vadd.f32 %v7215_v46, %v3315_v6  ;;  %v4130_v46 = vpack.c.b16 %v4086_v13, %v4082_v59  ;;  %v3794_v0 = vrot.slane %v3793_v27, 4  ;;  %v3869_v57 = vsel %vm6590_vm13, %v3864_v37, %v3868_v49  ;;  %v3521_v27 = vld [vmem:[#allocation2 + $0x1d8] sm:$0x11] }
 0x275   :  { %v3888_v59 = vshll.u32 %v3519_v63, 16  ;;  %v3820_v44 = vrot.slane %v3818_v39, 5  ;;  %v3843_v10 = vshrl.u32 %v3514_v52, 16  ;;  %v4094_v43 = vunpack.c.h.b16 %v3869_v57 }
 0x276   :  { %5494 = vst [vmem:[%s7462_s3 + $0xa0] sm:$0xff] %v3364_v7  ;;  %v3413_v32 = vadd.f32 %v3412_v42, %v3364_v7  ;;  %v3436_v45 = vmul.f32 %v3364_v7, %v3364_v7  ;;  %v7282_v34 = vpop.f32.mrf.mxu0  ;;  %v3770_v42 = vrot.slane %v3768_v24, 5  ;;  %v3799_v8 = vsel %vm6590_vm13, %v3794_v0, %v3798_v3 }
 0x277   :  { %v3267_v31 = vpop.f32.mrf.mxu2  ;;  %v3846_v24 = vshll.u32 %v3514_v52, 16  ;;  %v3887_v28 = vrot.slane %v3885_v54, 4  ;;  %v4084_v18 = vunpack.c.h.b16 %v3799_v8  ;;  %v3894_v37 = vshll.u32 %v3521_v27, 16 }
 0x278   :  { %v3268_v15 = vadd.f32 %v3267_v31, %v3218_v50  ;;  %v3451_v25 = vadd.f32 %v3450_v38, %v3436_v45  ;;  %v7284_v30 = vpop.f32.mrf.mxu3  ;;  %v3523_v50 = vld [vmem:[#allocation2 + $0x1e8] sm:$0xff]  ;;  %v7290_v51 = vsel %vm6590_vm13, %v3766_v62, %v3770_v42  ;;  %v3890_v31 = vrot.slane %v3888_v59, 5 }
 0x279   :  { %v3221_v48 = vpop.f32.mrf.mxu1  ;;  %4542 = vmatmul.bf16.gmra.mxu0 %v4130_v46  ;;  %v3913_v13 = vshrl.u32 %v3523_v50, 16  ;;  %v3916_v61 = vshll.u32 %v3523_v50, 16  ;;  %v4080_v7 = vunpack.c.h.b16 %v7290_v51  ;;  %v3848_v62 = vrot.slane %v3846_v24, 5 }
 0x27a   :  { %v3317_v21 = vadd.f32 %v7254_v9, %v3268_v15  ;;  %v3815_v9 = vshrl.u32 %v3510_v33, 16  ;;  %v4083_v15 = vunpack.c.l.b16 %v3799_v8  ;;  %v3922_v63 = vshll.u32 %v3525_v11, 16 }
 0x27b   :  { %v3915_v46 = vrot.slane %v3913_v13, 4  ;;  %v3918_v17 = vrot.slane %v3916_v61, 5  ;;  %v4128_v50 = vpack.c.b16 %v4084_v18, %v4080_v7  ;;  %v3531_v7 = vld [vmem:[#allocation2 + $0x228] sm:$0xff] }
 0x27c   :  { %4439 = vmatmul.bf16.gmra.mxu2 %v4124_v29  ;;  %4390 = vmatmul.bf16.gmra.mxu1 %v4123_v4  ;;  %v3366_v38 = vadd.f32 %v7235_v1, %v3317_v21  ;;  %v3841_v1 = vsel %vm6590_vm13, %v3836_v16, %v3840_v19  ;;  %v3817_v40 = vrot.slane %v3815_v9, 4  ;;  %v3516_v21 = vld [vmem:[#allocation2 + $0x1b0] sm:$0x11]  ;;  %v4093_v19 = vunpack.c.l.b16 %v3869_v57 }
 0x27d   :  { %4493 = vmatmul.bf16.gmra.mxu3 %v4129_v35  ;;  %v4090_v45 = vunpack.c.h.b16 %v3841_v1  ;;  %v4089_v42 = vunpack.c.l.b16 %v3841_v1  ;;  %v3891_v35 = vor.u32 %v3890_v31, %v3887_v28  ;;  %v3919_v49 = vor.u32 %v3918_v17, %v3915_v46 }
 0x27e   :  { %5495 = vst [vmem:[%s7462_s3 + $0xa8] sm:$0xff] %v3366_v38  ;;  %v3414_v26 = vadd.f32 %v3413_v32, %v3366_v38  ;;  %v3437_v53 = vmul.f32 %v3366_v38, %v3366_v38  ;;  %v7295_v6 = vpop.f32.mrf.mxu0  ;;  %v4079_v32 = vunpack.c.l.b16 %v7290_v51  ;;  %v3821_v29 = vor.u32 %v3820_v44, %v3817_v40  ;;  %v3518_v44 = vld [vmem:[#allocation2 + $0x1c0] sm:$0xff] }
 0x27f   :  { %v3270_v56 = vpop.f32.mrf.mxu2  ;;  %v4134_v16 = vpack.c.b16 %v4094_v43, %v4090_v45  ;;  %v4133_v54 = vpack.c.b16 %v4093_v19, %v4089_v42  ;;  %v3896_v57 = vrot.slane %v3894_v37, 5  ;;  %v3920_v59 = vrot.slane %v3919_v49, 4 }
 0x280   :  { %v3271_v23 = vadd.f32 %v3270_v56, %v3221_v48  ;;  %v3452_v2 = vadd.f32 %v3451_v25, %v3437_v53  ;;  %v7304_v55 = vpop.f32.mrf.mxu3  ;;  %v3824_v25 = vshll.u32 %v3512_v20, 16  ;;  %v3845_v48 = vrot.slane %v3843_v10, 4  ;;  %v3522_v10 = vld [vmem:[#allocation2 + $0x1e0] sm:$0xff] }
 0x281   :  { %v3223_v36 = vpop.f32.mrf.mxu1  ;;  %v4127_v9 = vpack.c.b16 %v4083_v15, %v4079_v32  ;;  %v3822_v52 = vrot.slane %v3821_v29, 4  ;;  %v3892_v56 = vrot.slane %v3891_v35, 4  ;;  %v3924_v13 = vrot.slane %v3922_v63, 5 }
 0x282   :  { %v3320_v14 = vadd.f32 %v7267_v12, %v3271_v23  ;;  %v3849_v39 = vor.u32 %v3848_v62, %v3845_v48  ;;  %v3826_v1 = vrot.slane %v3824_v25, 5  ;;  %v3527_v23 = vld [vmem:[#allocation2 + $0x208] sm:$0xff]  ;;  %v3969_v46 = vshrl.u32 %v3531_v7, 16 }
 0x283   :  { %v3941_v32 = vshrl.u32 %v3527_v23, 16  ;;  %v3944_v45 = vshll.u32 %v3527_v23, 16  ;;  %v3972_v17 = vshll.u32 %v3531_v7, 16  ;;  %v3871_v15 = vshrl.u32 %v3518_v44, 16 }
 0x284   :  { %v3369_v58 = vadd.f32 %v7252_v5, %v3320_v14  ;;  %v3827_v20 = vsel %vm6590_vm13, %v3822_v52, %v3826_v1  ;;  %v3925_v14 = vsel %vm6590_vm13, %v3920_v59, %v3924_v13  ;;  %v3874_v25 = vshll.u32 %v3518_v44, 16  ;;  %v3524_v52 = vld [vmem:[#allocation2 + $0x1f0] sm:$0x11] }
 0x285   :  { %v3899_v27 = vshrl.u32 %v3522_v10, 16  ;;  %v4088_v11 = vunpack.c.h.b16 %v3827_v20  ;;  %v4087_v48 = vunpack.c.l.b16 %v3827_v20  ;;  %v3902_v62 = vshll.u32 %v3522_v10, 16 }
 0x286   :  { %5496 = vst [vmem:[%s7462_s3 + $0xb0] sm:$0xff] %v3369_v58  ;;  %v3415_v12 = vadd.f32 %v3414_v26, %v3369_v58  ;;  %v3438_v4 = vmul.f32 %v3369_v58, %v3369_v58  ;;  %v7312_v33 = vpop.f32.mrf.mxu0  ;;  %v3852_v26 = vshll.u32 %v3516_v21, 16  ;;  %v3946_v21 = vrot.slane %v3944_v45, 5 }
 0x287   :  { %v3272_v5 = vpop.f32.mrf.mxu2  ;;  %v3971_v35 = vrot.slane %v3969_v46, 4  ;;  %v3974_v37 = vrot.slane %v3972_v17, 5  ;;  %v3873_v63 = vrot.slane %v3871_v15, 4 }
 0x288   :  { %v3273_v38 = vadd.f32 %v3272_v5, %v3223_v36  ;;  %v3453_v0 = vadd.f32 %v3452_v2, %v3438_v4  ;;  %v7314_v3 = vpop.f32.mrf.mxu3  ;;  %v3850_v2 = vrot.slane %v3849_v39, 4  ;;  %v3854_v8 = vrot.slane %v3852_v26, 5  ;;  %v3529_v5 = vld [vmem:[#allocation2 + $0x218] sm:$0x11] }
 0x289   :  { %v3226_v51 = vpop.f32.mrf.mxu1  ;;  %4547 = vmatmul.bf16.gmra.mxu0 %v4134_v16  ;;  %v3943_v4 = vrot.slane %v3941_v32, 4  ;;  %v3904_v39 = vrot.slane %v3902_v62, 5  ;;  %v3975_v23 = vor.u32 %v3974_v37, %v3971_v35 }
 0x28a   :  { %v3322_v53 = vadd.f32 %v7284_v30, %v3273_v38  ;;  %v3855_v58 = vsel %vm6590_vm13, %v3850_v2, %v3854_v8  ;;  %v3876_v38 = vrot.slane %v3874_v25, 5 }
 0x28b   :  { %v4092_v16 = vunpack.c.h.b16 %v3855_v58  ;;  %v4091_v49 = vunpack.c.l.b16 %v3855_v58 }
 0x28c   :  { %4444 = vmatmul.bf16.gmra.mxu2 %v4128_v50  ;;  %4395 = vmatmul.bf16.gmra.mxu1 %v4127_v9  ;;  %v3371_v61 = vadd.f32 %v7265_v22, %v3322_v53  ;;  %v3897_v22 = vsel %vm6590_vm13, %v3892_v56, %v3896_v57  ;;  %v3533_v50 = vld [vmem:[#allocation2 + $0x238] sm:$0x11]  ;;  %v3520_v9 = vld [vmem:[#allocation2 + $0x1d0] sm:$0x11]  ;;  %v3947_v56 = vor.u32 %v3946_v21, %v3943_v4  ;;  %v3950_v57 = vshll.u32 %v3529_v5, 16 }
 0x28d   :  { %4498 = vmatmul.bf16.gmra.mxu3 %v4133_v54  ;;  %v4098_v42 = vunpack.c.h.b16 %v3897_v22  ;;  %v4097_v53 = vunpack.c.l.b16 %v3897_v22  ;;  %v4101_v54 = vunpack.c.l.b16 %v3925_v14  ;;  %v3978_v2 = vshll.u32 %v3533_v50, 16 }
 0x28e   :  { %5497 = vst [vmem:[%s7462_s3 + $0xb8] sm:$0xff] %v3371_v61  ;;  %v3416_v30 = vadd.f32 %v3415_v12, %v3371_v61  ;;  %v3439_v36 = vmul.f32 %v3371_v61, %v3371_v61  ;;  %v7323_v40 = vpop.f32.mrf.mxu0  ;;  %v4102_v12 = vunpack.c.h.b16 %v3925_v14  ;;  %v4132_v8 = vpack.c.b16 %v4092_v16, %v4088_v11 }
 0x28f   :  { %v3275_v24 = vpop.f32.mrf.mxu2  ;;  %v4131_v20 = vpack.c.b16 %v4091_v49, %v4087_v48  ;;  %v4137_v22 = vpack.c.b16 %v4101_v54, %v4097_v53  ;;  %v3952_v14 = vrot.slane %v3950_v57, 5  ;;  %v3948_v45 = vrot.slane %v3947_v56, 4  ;;  %v3528_v56 = vld [vmem:[#allocation2 + $0x210] sm:$0x11] }
 0x290   :  { %v3276_v43 = vadd.f32 %v3275_v24, %v3226_v51  ;;  %v3454_v28 = vadd.f32 %v3453_v0, %v3439_v36  ;;  %v7329_v31 = vpop.f32.mrf.mxu3  ;;  %v3901_v0 = vrot.slane %v3899_v27, 4  ;;  %v4138_v1 = vpack.c.b16 %v4102_v12, %v4098_v42  ;;  %v3526_v27 = vld [vmem:[#allocation2 + $0x200] sm:$0xff] }
 0x291   :  { %v3228_v18 = vpop.f32.mrf.mxu1  ;;  %v3880_v36 = vshll.u32 %v3520_v9, 16  ;;  %v3908_v24 = vshll.u32 %v3524_v52, 16  ;;  %v3953_v42 = vsel %vm6590_vm13, %v3948_v45, %v3952_v14  ;;  %v3927_v16 = vshrl.u32 %v3526_v27, 16 }
 0x292   :  { %v3325_v29 = vadd.f32 %v7304_v55, %v3276_v43  ;;  %v3905_v10 = vor.u32 %v3904_v39, %v3901_v0  ;;  %v3976_v43 = vrot.slane %v3975_v23, 4  ;;  %v3930_v35 = vshll.u32 %v3526_v27, 16 }
 0x293   :  { %v3882_v17 = vrot.slane %v3880_v36, 5  ;;  %v3910_v15 = vrot.slane %v3908_v24, 5  ;;  %v3929_v39 = vrot.slane %v3927_v16, 4  ;;  %v3936_v24 = vshll.u32 %v3528_v56, 16 }
 0x294   :  { %v3374_v19 = vadd.f32 %v7282_v34, %v3325_v29  ;;  %v3906_v58 = vrot.slane %v3905_v10, 4  ;;  %v3530_v29 = vld [vmem:[#allocation2 + $0x220] sm:$0xff]  ;;  %v3932_v52 = vrot.slane %v3930_v35, 5 }
 0x295   :  { %v3955_v37 = vshrl.u32 %v3530_v29, 16  ;;  %v3958_v49 = vshll.u32 %v3530_v29, 16 }
 0x296   :  { %5498 = vst [vmem:[%s7462_s3 + $0x180] sm:$0xff] %v3374_v19  ;;  %v3417_v55 = vadd.f32 %v3416_v30, %v3374_v19  ;;  %v3440_v51 = vmul.f32 %v3374_v19, %v3374_v19  ;;  %v7338_v26 = vpop.f32.mrf.mxu0  ;;  %v3877_v30 = vor.u32 %v3876_v38, %v3873_v63  ;;  %v3911_v19 = vsel %vm6590_vm13, %v3906_v58, %v3910_v15 }
 0x297   :  { %v3277_v34 = vpop.f32.mrf.mxu2  ;;  %v4106_v63 = vunpack.c.h.b16 %v3953_v42  ;;  %v4099_v9 = vunpack.c.l.b16 %v3911_v19  ;;  %v3960_v57 = vrot.slane %v3958_v49, 5  ;;  %v3933_v10 = vor.u32 %v3932_v52, %v3929_v39 }
 0x298   :  { %v3278_v59 = vadd.f32 %v3277_v34, %v3228_v18  ;;  %v3455_v13 = vadd.f32 %v3454_v28, %v3440_v51  ;;  %v7340_v61 = vpop.f32.mrf.mxu3  ;;  %v3980_v28 = vrot.slane %v3978_v2, 5  ;;  %v3878_v46 = vrot.slane %v3877_v30, 4 }
 0x299   :  { %v3231_v7 = vpop.f32.mrf.mxu1  ;;  %4552 = vmatmul.bf16.gmra.mxu0 %v4138_v1 }
 0x29a   :  { %v3327_v44 = vadd.f32 %v7314_v3, %v3278_v59  ;;  %v3981_v12 = vsel %vm6590_vm13, %v3976_v43, %v3980_v28  ;;  %v3883_v21 = vsel %vm6590_vm13, %v3878_v46, %v3882_v17  ;;  %v3934_v46 = vrot.slane %v3933_v10, 4 }
 0x29b   :  { %v4110_v38 = vunpack.c.h.b16 %v3981_v12  ;;  %v4096_v0 = vunpack.c.h.b16 %v3883_v21  ;;  %v4095_v51 = vunpack.c.l.b16 %v3883_v21  ;;  %v3938_v17 = vrot.slane %v3936_v24, 5 }
 0x29c   :  { %4449 = vmatmul.bf16.gmra.mxu2 %v4132_v8  ;;  %4400 = vmatmul.bf16.gmra.mxu1 %v4131_v20  ;;  %v3376_v32 = vadd.f32 %v7295_v6, %v3327_v44  ;;  %v3532_v8 = vld [vmem:[#allocation2 + $0x230] sm:$0x11] }
 0x29d   :  { %4503 = vmatmul.bf16.gmra.mxu3 %v4137_v22  ;;  %v4142_v59 = vpack.c.b16 %v4110_v38, %v4106_v63  ;;  %v4135_v20 = vpack.c.b16 %v4099_v9, %v4095_v51  ;;  %v3964_v14 = vshll.u32 %v3532_v8, 16 }
 0x29e   :  { %5499 = vst [vmem:[%s7462_s3 + $0x188] sm:$0xff] %v3376_v32  ;;  %v3418_v18 = vadd.f32 %v3417_v55, %v3376_v32  ;;  %v3441_v3 = vmul.f32 %v3376_v32, %v3376_v32  ;;  %v7347_v25 = vpop.f32.mrf.mxu0  ;;  %v4100_v55 = vunpack.c.h.b16 %v3911_v19 }
 0x29f   :  { %v3280_v11 = vpop.f32.mrf.mxu2  ;;  %v3966_v58 = vrot.slane %v3964_v14, 5 }
 0x2a0   :  { %v3281_v6 = vadd.f32 %v3280_v11, %v3231_v7  ;;  %v3456_v48 = vadd.f32 %v3455_v13, %v3441_v3  ;;  %v7349_v62 = vpop.f32.mrf.mxu3  ;;  %v4105_v13 = vunpack.c.l.b16 %v3953_v42  ;;  %v4136_v30 = vpack.c.b16 %v4100_v55, %v4096_v0 }
 0x2a1   :  { %v3233_v4 = vpop.f32.mrf.mxu1 }
 0x2a2   :  { %v3330_v5 = vadd.f32 %v7329_v31, %v3281_v6  ;;  %v3957_v31 = vrot.slane %v3955_v37, 4 }
 0x2a4   :  { %v3379_v50 = vadd.f32 %v7312_v33, %v3330_v5  ;;  %v4109_v33 = vunpack.c.l.b16 %v3981_v12  ;;  %v3961_v22 = vor.u32 %v3960_v57, %v3957_v31 }
 0x2a6   :  { %5500 = vst [vmem:[%s7462_s3 + $0x190] sm:$0xff] %v3379_v50  ;;  %v3419_v53 = vadd.f32 %v3418_v18, %v3379_v50  ;;  %v3442_v34 = vmul.f32 %v3379_v50, %v3379_v50  ;;  %v7364_v1 = vpop.f32.mrf.mxu0  ;;  %v4141_v32 = vpack.c.b16 %v4109_v33, %v4105_v13  ;;  %v3962_v3 = vrot.slane %v3961_v22, 4 }
 0x2a7   :  { %v3282_v54 = vpop.f32.mrf.mxu2 }
 0x2a8   :  { %v3283_v23 = vadd.f32 %v3282_v54, %v3233_v4  ;;  %v3457_v2 = vadd.f32 %v3456_v48, %v3442_v34  ;;  %v3336_v7 = vpop.f32.mrf.mxu3  ;;  %v3967_v48 = vsel %vm6590_vm13, %v3962_v3, %v3966_v58 }
 0x2a9   :  { %v3236_v36 = vpop.f32.mrf.mxu1  ;;  %4557 = vmatmul.bf16.gmra.mxu0 %v4142_v59  ;;  %v4108_v21 = vunpack.c.h.b16 %v3967_v48  ;;  %v4107_v5 = vunpack.c.l.b16 %v3967_v48 }
 0x2aa   :  { %v3332_v44 = vadd.f32 %v7340_v61, %v3283_v23 }
 0x2ac   :  { %4454 = vmatmul.bf16.gmra.mxu2 %v4136_v30  ;;  %4405 = vmatmul.bf16.gmra.mxu1 %v4135_v20  ;;  %v3381_v45 = vadd.f32 %v7323_v40, %v3332_v44  ;;  %v3939_v40 = vsel %vm6590_vm13, %v3934_v46, %v3938_v17 }
 0x2ad   :  { %4508 = vmatmul.bf16.gmra.mxu3 %v4141_v32  ;;  %v4104_v12 = vunpack.c.h.b16 %v3939_v40  ;;  %v4103_v4 = vunpack.c.l.b16 %v3939_v40 }
 0x2ae   :  { %5501 = vst [vmem:[%s7462_s3 + $0x198] sm:$0xff] %v3381_v45  ;;  %v3420_v43 = vadd.f32 %v3419_v53, %v3381_v45  ;;  %v3443_v28 = vmul.f32 %v3381_v45, %v3381_v45  ;;  %v3390_v18 = vpop.f32.mrf.mxu0 }
 0x2af   :  { %v3285_v61 = vpop.f32.mrf.mxu2  ;;  %v4140_v47 = vpack.c.b16 %v4108_v21, %v4104_v12  ;;  %v4139_v0 = vpack.c.b16 %v4107_v5, %v4103_v4 }
 0x2b0   :  { %v3286_v15 = vadd.f32 %v3285_v61, %v3236_v36  ;;  %v3458_v27 = vadd.f32 %v3457_v2, %v3443_v28  ;;  %v3339_v11 = vpop.f32.mrf.mxu3 }
 0x2b1   :  { %v3238_v29 = vpop.f32.mrf.mxu1 }
 0x2b2   :  { %v3335_v6 = vadd.f32 %v7349_v62, %v3286_v15 }
 0x2b4   :  { %v3384_v42 = vadd.f32 %v7338_v26, %v3335_v6 }
 0x2b6   :  { %5502 = vst [vmem:[%s7462_s3 + $0x1a0] sm:$0xff] %v3384_v42  ;;  %v3421_v16 = vadd.f32 %v3420_v43, %v3384_v42  ;;  %v3444_v19 = vmul.f32 %v3384_v42, %v3384_v42  ;;  %v4523_v35 = vpop.f32.mrf.mxu0 }
 0x2b7   :  { %v3287_v37 = vpop.f32.mrf.mxu2 }
 0x2b8   :  { %v3288_v49 = vadd.f32 %v3287_v37, %v3238_v29  ;;  %v3459_v63 = vadd.f32 %v3458_v27, %v3444_v19  ;;  %v3341_v62 = vpop.f32.mrf.mxu3 }
 0x2b9   :  { %v3241_v38 = vpop.f32.mrf.mxu1 }
 0x2ba   :  { %v3337_v50 = vadd.f32 %v3336_v7, %v3288_v49 }
 0x2bc   :  { %4459 = vmatmul.bf16.gmra.mxu2 %v4140_v47  ;;  %4410 = vmatmul.bf16.gmra.mxu1 %v4139_v0  ;;  %v3386_v26 = vadd.f32 %v7347_v25, %v3337_v50 }
 0x2be   :  { %5503 = vst [vmem:[%s7462_s3 + $0x1a8] sm:$0xff] %v3386_v26  ;;  %v3422_v55 = vadd.f32 %v3421_v16, %v3386_v26  ;;  %v3445_v51 = vmul.f32 %v3386_v26, %v3386_v26  ;;  %v4525_v39 = vpop.f32.mrf.mxu0 }
 0x2bf   :  { %v3290_v9 = vpop.f32.mrf.mxu2 }
 0x2c0   :  { %v3291_v53 = vadd.f32 %v3290_v9, %v3241_v38  ;;  %v3460_v34 = vadd.f32 %v3459_v63, %v3445_v51  ;;  %v4474_v52 = vpop.f32.mrf.mxu3 }
 0x2c1   :  { %v3243_v31 = vpop.f32.mrf.mxu1 }
 0x2c2   :  { %v3340_v54 = vadd.f32 %v3339_v11, %v3291_v53 }
 0x2c4   :  { %v3389_v56 = vadd.f32 %v7364_v1, %v3340_v54 }
 0x2c6   :  { %5504 = vst [vmem:[%s7462_s3 + $0x1b0] sm:$0xff] %v3389_v56  ;;  %v3423_v25 = vadd.f32 %v3422_v55, %v3389_v56  ;;  %v3446_v57 = vmul.f32 %v3389_v56, %v3389_v56  ;;  %v4528_v8 = vpop.f32.mrf.mxu0 }
 0x2c7   :  { %v3292_v59 = vpop.f32.mrf.mxu2 }
 0x2c8   :  { %v3293_v13 = vadd.f32 %v3292_v59, %v3243_v31  ;;  %v3461_v33 = vadd.f32 %v3460_v34, %v3446_v57  ;;  %v4476_v23 = vpop.f32.mrf.mxu3 }
 0x2c9   :  { %v4376_v2 = vpop.f32.mrf.mxu1 }
 0x2ca   :  { %v3342_v7 = vadd.f32 %v3341_v62, %v3293_v13 }
 0x2cc   :  { %v3391_v30 = vadd.f32 %v3390_v18, %v3342_v7 }
 0x2ce   :  { %5505 = vst [vmem:[%s7462_s3 + $0x1b8] sm:$0xff] %v3391_v30  ;;  %v3424_v36 = vadd.f32 %v3423_v25, %v3391_v30  ;;  %v3447_v1 = vmul.f32 %v3391_v30, %v3391_v30  ;;  %v4530_v28 = vpop.f32.mrf.mxu0 }
 0x2cf   :  { %v4425_v20 = vpop.f32.mrf.mxu2 }
 0x2d0   :  { %v4426_v44 = vadd.f32 %v4425_v20, %v4376_v2  ;;  %v3425_v10 = vrot.slane %v3424_v36, 4  ;;  %v3462_v24 = vadd.f32 %v3461_v33, %v3447_v1  ;;  %v4479_v22 = vpop.f32.mrf.mxu3 }
 0x2d1   :  { %v4378_v14 = vpop.f32.mrf.mxu1 }
 0x2d2   :  { %v3426_v32 = vadd.f32 %v3425_v10, %v3424_v36  ;;  %v3463_v45 = vrot.slane %v3462_v24, 4  ;;  %v4475_v43 = vadd.f32 %v4474_v52, %v4426_v44 }
 0x2d4   :  { %v3427_v46 = vrot.slane %v3426_v32, 2  ;;  %v3464_v17 = vadd.f32 %v3463_v45, %v3462_v24  ;;  %v4524_v61 = vadd.f32 %v4523_v35, %v4475_v43 }
 0x2d6   :  { %v3428_v18 = vadd.f32 %v3427_v46, %v3426_v32  ;;  %v3465_v3 = vrot.slane %v3464_v17, 2  ;;  %5698 = vst [vmem:[%s7462_s3 + $0xc0] sm:$0xff] %v4524_v61  ;;  %v4533_v16 = vpop.f32.mrf.mxu0  ;;  %v4602_v5 = vmul.f32 %v4524_v61, %v4524_v61 }
 0x2d7   :  { %v4427_v58 = vpop.f32.mrf.mxu2 }
 0x2d8   :  { %v3429_v15 = vrot.slane %v3428_v18, 1  ;;  %v3466_v27 = vadd.f32 %v3465_v3, %v3464_v17  ;;  %v4428_v11 = vadd.f32 %v4427_v58, %v4378_v14  ;;  %v4481_v29 = vpop.f32.mrf.mxu3 }
 0x2d9   :  { %v4381_v40 = vpop.f32.mrf.mxu1 }
 0x2da   :  { %v3430_v6 = vadd.f32 %v3429_v15, %v3428_v18  ;;  %v3467_v48 = vrot.slane %v3466_v27, 1  ;;  %v4477_v42 = vadd.f32 %v4476_v23, %v4428_v11 }
 0x2dc   :  { %v7395_v12 = vadd.f32 %v3430_v6, %v7220_v60  ;;  %v3468_v4 = vadd.f32 %v3467_v48, %v3466_v27  ;;  %v4526_v21 = vadd.f32 %v4525_v39, %v4477_v42 }
 0x2de   :  { %v7398_v19 = vadd.f32 %v3468_v4, %v7230_v41  ;;  %5699 = vst [vmem:[%s7462_s3 + $0xc8] sm:$0xff] %v4526_v21  ;;  %v4580_v35 = vadd.f32 %v4526_v21, %v4524_v61  ;;  %v4603_v37 = vmul.f32 %v4526_v21, %v4526_v21  ;;  %v4535_v55 = vpop.f32.mrf.mxu0 }
 0x2df   :  { %v4430_v49 = vpop.f32.mrf.mxu2 }
 0x2e0   :  { %v4431_v63 = vadd.f32 %v4430_v49, %v4381_v40  ;;  %v4618_v62 = vadd.f32 %v4603_v37, %v4602_v5  ;;  %v4484_v38 = vpop.f32.mrf.mxu3 }
 0x2e1   :  { %v4383_v47 = vpop.f32.mrf.mxu1 }
 0x2e2   :  { %v4480_v60 = vadd.f32 %v4479_v22, %v4431_v63 }
 0x2e4   :  { %v4529_v0 = vadd.f32 %v4528_v8, %v4480_v60 }
 0x2e6   :  { %5700 = vst [vmem:[%s7462_s3 + $0xd0] sm:$0xff] %v4529_v0  ;;  %v4581_v41 = vadd.f32 %v4580_v35, %v4529_v0  ;;  %v4604_v50 = vmul.f32 %v4529_v0, %v4529_v0  ;;  %v4538_v33 = vpop.f32.mrf.mxu0 }
 0x2e7   :  { %v4432_v26 = vpop.f32.mrf.mxu2 }
 0x2e8   :  { %v4433_v51 = vadd.f32 %v4432_v26, %v4383_v47  ;;  %v4619_v9 = vadd.f32 %v4618_v62, %v4604_v50  ;;  %v4486_v39 = vpop.f32.mrf.mxu3 }
 0x2e9   :  { %v4386_v53 = vpop.f32.mrf.mxu1 }
 0x2ea   :  { %v4482_v34 = vadd.f32 %v4481_v29, %v4433_v51 }
 0x2ec   :  { %v4531_v52 = vadd.f32 %v4530_v28, %v4482_v34 }
 0x2ee   :  { %5701 = vst [vmem:[%s7462_s3 + $0xd8] sm:$0xff] %v4531_v52  ;;  %v4582_v31 = vadd.f32 %v4581_v41, %v4531_v52  ;;  %v4605_v54 = vmul.f32 %v4531_v52, %v4531_v52  ;;  %v4540_v24 = vpop.f32.mrf.mxu0 }
 0x2ef   :  { %v4435_v56 = vpop.f32.mrf.mxu2 }
 0x2f0   :  { %v4436_v25 = vadd.f32 %v4435_v56, %v4386_v53  ;;  %v4620_v57 = vadd.f32 %v4619_v9, %v4605_v54  ;;  %v4489_v59 = vpop.f32.mrf.mxu3 }
 0x2f1   :  { %v4388_v13 = vpop.f32.mrf.mxu1 }
 0x2f2   :  { %v4485_v23 = vadd.f32 %v4484_v38, %v4436_v25 }
 0x2f4   :  { %v4534_v2 = vadd.f32 %v4533_v16, %v4485_v23 }
 0x2f6   :  { %5702 = vst [vmem:[%s7462_s3 + $0xe0] sm:$0xff] %v4534_v2  ;;  %v7412_v8 = vadd.f32 %v4582_v31, %v4534_v2  ;;  %v4606_v7 = vmul.f32 %v4534_v2, %v4534_v2  ;;  %v4543_v17 = vpop.f32.mrf.mxu0 }
 0x2f7   :  { %v4437_v30 = vpop.f32.mrf.mxu2 }
 0x2f8   :  { %v4438_v36 = vadd.f32 %v4437_v30, %v4388_v13  ;;  %v7414_v1 = vadd.f32 %v4620_v57, %v4606_v7  ;;  %v4491_v20 = vpop.f32.mrf.mxu3 }
 0x2f9   :  { %v4391_v44 = vpop.f32.mrf.mxu1 }
 0x2fa   :  { %v4487_v10 = vadd.f32 %v4486_v39, %v4438_v36 }
 0x2fc   :  { %v4536_v22 = vadd.f32 %v4535_v55, %v4487_v10 }
 0x2fe   :  { %5703 = vst [vmem:[%s7462_s3 + $0xe8] sm:$0xff] %v4536_v22  ;;  %v4545_v29 = vpop.f32.mrf.mxu0  ;;  %v4607_v13 = vmul.f32 %v4536_v22, %v4536_v22  ;;  %v4584_v23 = vadd.f32 %v7412_v8, %v4536_v22 }
 0x2ff   :  { %v4440_v14 = vpop.f32.mrf.mxu2 }
 0x300   :  { %v4441_v32 = vadd.f32 %v4440_v14, %v4391_v44  ;;  %v4494_v43 = vpop.f32.mrf.mxu3  ;;  %v4622_v36 = vadd.f32 %v7414_v1, %v4607_v13 }
 0x301   :  { %v4393_v45 = vpop.f32.mrf.mxu1 }
 0x302   :  { %v4490_v28 = vadd.f32 %v4489_v59, %v4441_v32 }
 0x304   :  { %v4539_v46 = vadd.f32 %v4538_v33, %v4490_v28 }
 0x306   :  { %5704 = vst [vmem:[%s7462_s3 + $0xf0] sm:$0xff] %v4539_v46  ;;  %v4548_v35 = vpop.f32.mrf.mxu0  ;;  %v4608_v2 = vmul.f32 %v4539_v46, %v4539_v46 }
 0x307   :  { %v4442_v61 = vpop.f32.mrf.mxu2 }
 0x308   :  { %v4443_v18 = vadd.f32 %v4442_v61, %v4393_v45  ;;  %v4496_v15 = vpop.f32.mrf.mxu3  ;;  %v4623_v14 = vadd.f32 %v4622_v36, %v4608_v2 }
 0x309   :  { %v4396_v3 = vpop.f32.mrf.mxu1 }
 0x30a   :  { %v4492_v58 = vadd.f32 %v4491_v20, %v4443_v18  ;;  %v4585_v20 = vadd.f32 %v4584_v23, %v4539_v46 }
 0x30c   :  { %v4541_v27 = vadd.f32 %v4540_v24, %v4492_v58 }
 0x30e   :  { %5705 = vst [vmem:[%s7462_s3 + $0xf8] sm:$0xff] %v4541_v27  ;;  %v4550_v0 = vpop.f32.mrf.mxu0  ;;  %v4609_v44 = vmul.f32 %v4541_v27, %v4541_v27  ;;  %v4586_v32 = vadd.f32 %v4585_v20, %v4541_v27 }
 0x30f   :  { %v4445_v11 = vpop.f32.mrf.mxu2 }
 0x310   :  { %v4446_v40 = vadd.f32 %v4445_v11, %v4396_v3  ;;  %v4499_v4 = vpop.f32.mrf.mxu3  ;;  %v4624_v28 = vadd.f32 %v4623_v14, %v4609_v44 }
 0x311   :  { %v4398_v6 = vpop.f32.mrf.mxu1 }
 0x312   :  { %v4495_v48 = vadd.f32 %v4494_v43, %v4446_v40 }
 0x314   :  { %v4544_v42 = vadd.f32 %v4543_v17, %v4495_v48 }
 0x316   :  { %5706 = vst [vmem:[%s7462_s3 + $0x1c0] sm:$0xff] %v4544_v42  ;;  %v4553_v53 = vpop.f32.mrf.mxu0  ;;  %v4610_v45 = vmul.f32 %v4544_v42, %v4544_v42  ;;  %v4587_v17 = vadd.f32 %v4586_v32, %v4544_v42 }
 0x317   :  { %v4447_v21 = vpop.f32.mrf.mxu2 }
 0x318   :  { %v4448_v16 = vadd.f32 %v4447_v21, %v4398_v6  ;;  %v4501_v62 = vpop.f32.mrf.mxu3  ;;  %v4625_v18 = vadd.f32 %v4624_v28, %v4610_v45 }
 0x319   :  { %v4401_v5 = vpop.f32.mrf.mxu1 }
 0x31a   :  { %v4497_v37 = vadd.f32 %v4496_v15, %v4448_v16 }
 0x31c   :  { %v4546_v49 = vadd.f32 %v4545_v29, %v4497_v37 }
 0x31e   :  { %5707 = vst [vmem:[%s7462_s3 + $0x1c8] sm:$0xff] %v4546_v49  ;;  %v4555_v59 = vpop.f32.mrf.mxu0  ;;  %v4611_v8 = vmul.f32 %v4546_v49, %v4546_v49  ;;  %v4588_v3 = vadd.f32 %v4587_v17, %v4546_v49 }
 0x31f   :  { %v4450_v63 = vpop.f32.mrf.mxu2 }
 0x320   :  { %v4451_v38 = vadd.f32 %v4450_v63, %v4401_v5  ;;  %v4504_v51 = vpop.f32.mrf.mxu3  ;;  %v4626_v58 = vadd.f32 %v4625_v18, %v4611_v8 }
 0x321   :  { %v4403_v47 = vpop.f32.mrf.mxu1 }
 0x322   :  { %v4500_v60 = vadd.f32 %v4499_v4, %v4451_v38 }
 0x324   :  { %v4549_v41 = vadd.f32 %v4548_v35, %v4500_v60 }
 0x326   :  { %5708 = vst [vmem:[%s7462_s3 + $0x1d0] sm:$0xff] %v4549_v41  ;;  %v4558_v61 = vpop.f32.mrf.mxu0  ;;  %v4612_v1 = vmul.f32 %v4549_v41, %v4549_v41  ;;  %v4589_v15 = vadd.f32 %v4588_v3, %v4549_v41 }
 0x327   :  { %v4452_v50 = vpop.f32.mrf.mxu2 }
 0x328   :  { %v4453_v26 = vadd.f32 %v4452_v50, %v4403_v47  ;;  %v4506_v56 = vpop.f32.mrf.mxu3  ;;  %v4627_v40 = vadd.f32 %v4626_v58, %v4612_v1 }
 0x329   :  { %v4406_v55 = vpop.f32.mrf.mxu1 }
 0x32a   :  { %v4502_v9 = vadd.f32 %v4501_v62, %v4453_v26 }
 0x32c   :  { %v4551_v39 = vadd.f32 %v4550_v0, %v4502_v9 }
 0x32e   :  { %5709 = vst [vmem:[%s7462_s3 + $0x1d8] sm:$0xff] %v4551_v39  ;;  %v4613_v11 = vmul.f32 %v4551_v39, %v4551_v39  ;;  %v4590_v6 = vadd.f32 %v4589_v15, %v4551_v39  ;;  %v4560_v38 = vpop.f32.mrf.mxu0 }
 0x32f   :  { %v4455_v34 = vpop.f32.mrf.mxu2 }
 0x330   :  { %v4456_v52 = vadd.f32 %v4455_v34, %v4406_v55  ;;  %v4509_v24 = vpop.f32.mrf.mxu3  ;;  %v4628_v21 = vadd.f32 %v4627_v40, %v4613_v11 }
 0x331   :  { %v4408_v31 = vpop.f32.mrf.mxu1 }
 0x332   :  { %v4505_v54 = vadd.f32 %v4504_v51, %v4456_v52 }
 0x334   :  { %v4554_v25 = vadd.f32 %v4553_v53, %v4505_v54 }
 0x336   :  { %5710 = vst [vmem:[%s7462_s3 + $0x1e0] sm:$0xff] %v4554_v25  ;;  %v4614_v48 = vmul.f32 %v4554_v25, %v4554_v25  ;;  %v4591_v16 = vadd.f32 %v4590_v6, %v4554_v25 }
 0x337   :  { %v4457_v57 = vpop.f32.mrf.mxu2 }
 0x338   :  { %v4458_v33 = vadd.f32 %v4457_v57, %v4408_v31  ;;  %v4511_v4 = vpop.f32.mrf.mxu3  ;;  %v4629_v37 = vadd.f32 %v4628_v21, %v4614_v48 }
 0x339   :  { %v4411_v30 = vpop.f32.mrf.mxu1 }
 0x33a   :  { %v4507_v7 = vadd.f32 %v4506_v56, %v4458_v33 }
 0x33c   :  { %v4556_v10 = vadd.f32 %v4555_v59, %v4507_v7 }
 0x33e   :  { %5711 = vst [vmem:[%s7462_s3 + $0x1e8] sm:$0xff] %v4556_v10  ;;  %v4615_v5 = vmul.f32 %v4556_v10, %v4556_v10  ;;  %v4592_v49 = vadd.f32 %v4591_v16, %v4556_v10 }
 0x33f   :  { %v4460_v43 = vpop.f32.mrf.mxu2 }
 0x340   :  { %v4461_v22 = vadd.f32 %v4460_v43, %v4411_v30  ;;  %v4630_v47 = vadd.f32 %v4629_v37, %v4615_v5 }
 0x341   :  { %v4413_v27 = vpop.f32.mrf.mxu1 }
 0x342   :  { %v4510_v46 = vadd.f32 %v4509_v24, %v4461_v22 }
 0x344   :  { %v4559_v29 = vadd.f32 %v4558_v61, %v4510_v46 }
 0x346   :  { %5712 = vst [vmem:[%s7462_s3 + $0x1f0] sm:$0xff] %v4559_v29  ;;  %v4616_v63 = vmul.f32 %v4559_v29, %v4559_v29  ;;  %v4593_v60 = vadd.f32 %v4592_v49, %v4559_v29 }
 0x347   :  { %v4462_v42 = vpop.f32.mrf.mxu2 }
 0x348   :  { %v4463_v35 = vadd.f32 %v4462_v42, %v4413_v27  ;;  %v4631_v41 = vadd.f32 %v4630_v47, %v4616_v63 }
 0x34a   :  { %v4512_v62 = vadd.f32 %v4511_v4, %v4463_v35 }
 0x34c   :  { %v4561_v0 = vadd.f32 %v4560_v38, %v4512_v62 }
 0x34e   :  { %5713 = vst [vmem:[%s7462_s3 + $0x1f8] sm:$0xff] %v4561_v0  ;;  %v4594_v50 = vadd.f32 %v4593_v60, %v4561_v0  ;;  %v4617_v26 = vmul.f32 %v4561_v0, %v4561_v0 }
 0x350   :  { %v4595_v55 = vrot.slane %v4594_v50, 4  ;;  %v4632_v51 = vadd.f32 %v4631_v41, %v4617_v26 }
 0x352   :  { %v4596_v9 = vadd.f32 %v4595_v55, %v4594_v50  ;;  %v4633_v39 = vrot.slane %v4632_v51, 4 }
 0x354   :  { %v4597_v53 = vrot.slane %v4596_v9, 2  ;;  %v4634_v34 = vadd.f32 %v4633_v39, %v4632_v51 }
 0x356   :  { %v4598_v52 = vadd.f32 %v4597_v53, %v4596_v9  ;;  %v4635_v31 = vrot.slane %v4634_v34, 2 }
 0x358   :  { %v4599_v54 = vrot.slane %v4598_v52, 1  ;;  %v4636_v56 = vadd.f32 %v4635_v31, %v4634_v34 }
 0x35a   :  { %v4600_v25 = vadd.f32 %v4599_v54, %v4598_v52  ;;  %v4637_v57 = vrot.slane %v4636_v56, 1 }
 0x35c   :  { %v4601_v59 = vadd.f32 %v4600_v25, %v7395_v12  ;;  %v4638_v13 = vadd.f32 %v4637_v57, %v4636_v56 }
 0x35e   :  { %v4639_v33 = vadd.f32 %v4638_v13, %v7398_v19  ;;  %4640 = vst [vmem:[%s7463_s4] sm:$0x1] %v4601_v59 }
 0x360   :  { %4641 = vst [vmem:[%s7463_s4 + $0x1] sm:$0x1] %v4639_v33 }

</bundles_post_ra>
